<compile_context>
chip_gen: v6e
topology: v6e:2x2x1
jax: 0.10.0
libtpu: 0.0.40
codegen_flags: <defaults>
</compile_context>

<pallas_src>
import functools

import jax
import jax.numpy as jnp
from jax.experimental import pallas as pl
from jax.experimental.pallas import tpu as pltpu


def _point_to_anchor_kernel(rois_ref, fb_ref, wwf_ref, bwf_ref, wp_ref, bp_ref,
                            y_ref, *, n_bbox_per_step, nb, bs2, channels):
    """One grid step processes R = n_bbox_per_step * nb roi rows.

    rois_ref : (R, C)          rois features (MXU-operand dtype)
    fb_ref   : (nb, bs2, C)    channels-last feature blocks, shared by all bboxes
    wwf_ref  : (C, 2C)         [W_weight | W_fuse]  fused 1x1-conv weight
    bwf_ref  : (1, 2C)         [b_weight | b_fuse]  fused bias (f32)
    wp_ref   : (C, bs2)        point_weight_conv1x1 weight
    bp_ref   : (1, bs2)        point_weight bias (f32)
    y_ref    : (R, 2C)         packed output [fused | out] (f32)
    """
    C = channels
    x = rois_ref[...]

    # Fused 1x1 convs: relu(x @ [Ww|Wf] + [bw|bf])  -> one wide MXU matmul.
    y = jnp.dot(x, wwf_ref[...], preferred_element_type=jnp.float32) + bwf_ref[...]
    y = jnp.maximum(y, 0.0)                      # (R, 2C), f32
    fw = y[:, :C]                                # relu(conv_weight(rois))
    ff = y[:, C:]                                # relu(conv_fuse(rois))

    # point weights: fw @ Wp + bp   (f32 accumulation on the MXU)
    pw = jnp.dot(fw.astype(wp_ref.dtype), wp_ref[...],
                 preferred_element_type=jnp.float32) + bp_ref[...]   # (R, bs2)

    fb = fb_ref[...].astype(jnp.float32)         # (nb, bs2, C)

    # Weighted sum over the bs*bs points, as an unrolled accumulate (no (R,bs2,C)
    # broadcast temp). Rows for bbox ib share the same feature blocks fb.
    outs = []
    for ib in range(n_bbox_per_step):
        pw_b = pw[ib * nb:(ib + 1) * nb, :]      # (nb, bs2)
        acc = pw_b[:, 0:1] * fb[:, 0, :]
        for k in range(1, bs2):
            acc = acc + pw_b[:, k:k + 1] * fb[:, k, :]
        outs.append(acc)                         # (nb, C)
    o = outs[0] if n_bbox_per_step == 1 else jnp.concatenate(outs, axis=0)  # (R, C)

    # Lane-dense packed store: [fused | out].
    y_ref[...] = jnp.concatenate([ff + o, o], axis=-1).astype(y_ref.dtype)


def _build_feature_blocks(feature, fswb, block_size, layout):
    """-> (N*fswb*fswb, bs*bs, C) with fb[(n*fswb+i)*fswb+j, p*bs+q, c] = f[n,c,i*bs+p,j*bs+q]."""
    bs = block_size
    if layout == "NCHW":
        N, C, H, W = feature.shape
        fb = (feature.reshape(N, C, fswb, bs, fswb, bs)
                     .transpose(0, 2, 4, 3, 5, 1))          # (N, fswb, fswb, bs, bs, C)
    elif layout == "NHWC":
        N, H, W, C = feature.shape
        fb = (feature.reshape(N, fswb, bs, fswb, bs, C)
                     .transpose(0, 1, 3, 2, 4, 5))          # (N, fswb, fswb, bs, bs, C)
    else:
        raise ValueError(f"unknown feature layout {layout!r}")
    return fb.reshape(N * fswb * fswb, bs * bs, C)


def point_to_anchor_forward(feature, rois_feature, feature_size_with_block,
                            params, n_bbox, block_size, *,
                            mxu_dtype=jnp.float32,
                            bbox_per_step=None,
                            feature_layout="NCHW"):
    """feature: (N,C,H,W) NCHW (or NHWC with feature_layout='NHWC');
    rois_feature: (M, C, 1, 1), M = n_bbox * N * fswb * fswb."""
    bs = block_size
    fswb = feature_size_with_block
    if feature_layout == "NCHW":
        N, C, H, W = feature.shape
    else:
        N, H, W, C = feature.shape
    assert H == fswb * bs and W == fswb * bs
    NB = N * fswb * fswb
    M = n_bbox * NB
    BS2 = bs * bs
    assert rois_feature.shape == (M, C, 1, 1)

    if bbox_per_step is None:
        # One step over all rois at these sizes. At production scale pick a
        # divisor of n_bbox giving >=256-row tiles (and an even step count on v7x).
        bbox_per_step = n_bbox
    assert n_bbox % bbox_per_step == 0
    n_steps = n_bbox // bbox_per_step
    R = bbox_per_step * NB

    # MXU operands (optionally bf16 on v6e/v7x); biases + feature blocks stay f32.
    rois = rois_feature.reshape(M, C).astype(mxu_dtype)

    # TODO(synk): at production scale feed `feature` channels-last (NHWC) or gather
    # blocks in-kernel via manual DMA; the NCHW path below is a full HBM round-trip.
    fb = _build_feature_blocks(feature, fswb, bs, feature_layout).astype(jnp.float32)

    ww, bw, wf, bf, wp, bp = params
    wwf = jnp.concatenate([ww, wf], axis=1).astype(mxu_dtype)        # (C, 2C)
    bwf = jnp.concatenate([bw, bf], axis=0).reshape(1, 2 * C).astype(jnp.float32)
    wp_ = wp.astype(mxu_dtype)                                       # (C, BS2)
    bp_ = bp.reshape(1, BS2).astype(jnp.float32)

    kernel = functools.partial(_point_to_anchor_kernel,
                               n_bbox_per_step=bbox_per_step,
                               nb=NB, bs2=BS2, channels=C)

    packed = pl.pallas_call(
        kernel,
        out_shape=jax.ShapeDtypeStruct((M, 2 * C), jnp.float32),
        grid=(n_steps,),
        in_specs=[
            pl.BlockSpec((R, C),       lambda s: (s, 0)),     # rois rows for this step
            pl.BlockSpec((NB, BS2, C), lambda s: (0, 0, 0)),  # feature blocks (shared)
            pl.BlockSpec((C, 2 * C),   lambda s: (0, 0)),     # [W_weight | W_fuse]
            pl.BlockSpec((1, 2 * C),   lambda s: (0, 0)),     # [b_weight | b_fuse]
            pl.BlockSpec((C, BS2),     lambda s: (0, 0)),     # W_point
            pl.BlockSpec((1, BS2),     lambda s: (0, 0)),     # b_point
        ],
        out_specs=pl.BlockSpec((R, 2 * C), lambda s: (s, 0)),  # [fused | out] packed
        compiler_params=pltpu.CompilerParams(
            dimension_semantics=("parallel",),
            vmem_limit_bytes=32 * 1024 * 1024),
    )(rois, fb, wwf, bwf, wp_, bp_)

    fused = packed[:, :C].reshape(M, C, 1, 1)
    out = packed[:, C:].reshape(M, C, 1, 1)
    return fused, out


def point_to_anchor_reference(feature, rois_feature, feature_size_with_block,
                              params, n_bbox, block_size, mxu_dtype=jnp.float32):
    """Pure-JAX reference mirroring the PyTorch forward (with optional matching
    bf16 operand casts), for verification."""
    N, C, H, W = feature.shape
    bs = block_size
    fswb = feature_size_with_block
    NB = N * fswb * fswb
    M = n_bbox * NB
    ww, bw, wf, bf, wp, bp = params

    x = rois_feature.reshape(M, C).astype(mxu_dtype)
    fw = jax.nn.relu(jnp.dot(x, ww.astype(mxu_dtype),
                             preferred_element_type=jnp.float32) + bw)
    ff = jax.nn.relu(jnp.dot(x, wf.astype(mxu_dtype),
                             preferred_element_type=jnp.float32) + bf)
    pw = jnp.dot(fw.astype(mxu_dtype), wp.astype(mxu_dtype),
                 preferred_element_type=jnp.float32) + bp            # (M, BS2)

    fb = _build_feature_blocks(feature, fswb, bs, "NCHW").astype(jnp.float32)
    fb_full = jnp.tile(fb, (n_bbox, 1, 1))            # roi row order == (ib, n, i, j)
    out = jnp.sum(pw[:, :, None] * fb_full, axis=1)   # (M, C)
    fused = ff + out
    return fused.reshape(M, C, 1, 1), out.reshape(M, C, 1, 1)


def init_params(key, in_channels, block_size):
    """Deterministic synthetic parameters (PyTorch Conv2d 1x1 weight (O,I,1,1) + bias (O,)),
    stored as (I, O) matrices so every 1x1 conv is x @ W + b."""
    C = in_channels
    BS2 = block_size * block_size
    k = jax.random.split(key, 6)
    scale = 1.0 / jnp.sqrt(jnp.float32(C))
    ww = jax.random.uniform(k[0], (C, C), jnp.float32, -scale, scale)
    bw = jax.random.uniform(k[1], (C,),   jnp.float32, -scale, scale)
    wf = jax.random.uniform(k[2], (C, C), jnp.float32, -scale, scale)
    bf = jax.random.uniform(k[3], (C,),   jnp.float32, -scale, scale)
    wp = jax.random.uniform(k[4], (C, BS2), jnp.float32, -scale, scale)
    bp = jax.random.uniform(k[5], (BS2,),   jnp.float32, -scale, scale)
    return (ww, bw, wf, bf, wp, bp)


if __name__ == "__main__":
    # Small deterministic shapes consistent with the module.
    N = 2                 # batch
    C = 32                # in_channels
    block_size = 4
    fswb = 4              # feature_size_with_block
    H = W = fswb * block_size   # 16
    n_bbox = 3
    M = n_bbox * N * fswb * fswb  # 96 rois

    key = jax.random.PRNGKey(0)
    k_feat, k_rois, k_par = jax.random.split(key, 3)
    feature = jax.random.normal(k_feat, (N, C, H, W), jnp.float32)
    rois_feature = jax.random.normal(k_rois, (M, C, 1, 1), jnp.float32)
    params = init_params(k_par, C, block_size)

    # --- f32 MXU path (exact-tolerance check vs. PyTorch-equivalent reference) ---
    fwd = jax.jit(functools.partial(point_to_anchor_forward,
                                    n_bbox=n_bbox, block_size=block_size),
                  static_argnums=(2,))
    fused, out = fwd(feature, rois_feature, fswb, params)
    jax.block_until_ready((fused, out))

    fused_ref, out_ref = point_to_anchor_reference(
        feature, rois_feature, fswb, params, n_bbox, block_size)

    assert fused.shape == (M, C, 1, 1) and out.shape == (M, C, 1, 1)
    assert jnp.allclose(out, out_ref, atol=1e-4, rtol=1e-4)
    assert jnp.allclose(fused, fused_ref, atol=1e-4, rtol=1e-4)

    # --- bf16-operand MXU path (v6e/v7x recommendation); reference applies the
    #     same operand casts so only accumulation-order noise remains. ---
    fwd_bf16 = jax.jit(functools.partial(point_to_anchor_forward,
                                         n_bbox=n_bbox, block_size=block_size,
                                         mxu_dtype=jnp.bfloat16),
                       static_argnums=(2,))
    fused_b, out_b = fwd_bf16(feature, rois_feature, fswb, params)
    jax.block_until_ready((fused_b, out_b))

    fused_bref, out_bref = point_to_anchor_reference(
        feature, rois_feature, fswb, params, n_bbox, block_size,
        mxu_dtype=jnp.bfloat16)
    assert jnp.allclose(out_b, out_bref, atol=2e-3, rtol=2e-3)
    assert jnp.allclose(fused_b, fused_bref, atol=2e-3, rtol=2e-3)

    print("KERNEL_OK")
</pallas_src>

<mosaic_0001>
module attributes {stable_mosaic.version = 11 : i64} {
  func.func @_point_to_anchor_kernel(%arg0: i32, %arg1: memref<96x32xf32, #tpu.memory_space<vmem>>, %arg2: memref<32x16x32xf32, #tpu.memory_space<vmem>>, %arg3: memref<32x64xf32, #tpu.memory_space<vmem>>, %arg4: memref<1x64xf32, #tpu.memory_space<vmem>>, %arg5: memref<32x16xf32, #tpu.memory_space<vmem>>, %arg6: memref<1x16xf32, #tpu.memory_space<vmem>>, %arg7: memref<96x64xf32, #tpu.memory_space<vmem>>) attributes {dimension_semantics = [#tpu.dimension_semantics<parallel>], iteration_bounds = array<i64: 1>, scalar_prefetch = 0 : i64, scratch_operands = 0 : i64, tpu.core_type = #tpu.core_type<tc>, window_params = [{transform_indices = @transform_0, window_bounds = array<i64: 96, 32>}, {pipeline_mode = #tpu.pipeline_mode<synchronous>, transform_indices = @transform_1, window_bounds = array<i64: 32, 16, 32>}, {pipeline_mode = #tpu.pipeline_mode<synchronous>, transform_indices = @transform_2, window_bounds = array<i64: 32, 64>}, {pipeline_mode = #tpu.pipeline_mode<synchronous>, transform_indices = @transform_3, window_bounds = array<i64: 1, 64>}, {pipeline_mode = #tpu.pipeline_mode<synchronous>, transform_indices = @transform_4, window_bounds = array<i64: 32, 16>}, {pipeline_mode = #tpu.pipeline_mode<synchronous>, transform_indices = @transform_5, window_bounds = array<i64: 1, 16>}, {transform_indices = @transform_6, window_bounds = array<i64: 96, 64>}]} {
    %c0 = arith.constant 0 : index
    %c0_0 = arith.constant 0 : index
    %0 = vector.load %arg1[%c0, %c0_0] : memref<96x32xf32, #tpu.memory_space<vmem>>, vector<96x32xf32>
    %c0_1 = arith.constant 0 : index
    %c0_2 = arith.constant 0 : index
    %1 = vector.load %arg3[%c0_1, %c0_2] : memref<32x64xf32, #tpu.memory_space<vmem>>, vector<32x64xf32>
    %cst = arith.constant dense<0.000000e+00> : vector<96x64xf32>
    %2 = tpu.matmul %0, %1, %cst {dimension_numbers = #tpu.dot_dimension_numbers<[1], [0], [0], [1], [0, 0, 1, 1], [], []>} : vector<96x32xf32>, vector<32x64xf32>, vector<96x64xf32> -> vector<96x64xf32>
    %c0_3 = arith.constant 0 : index
    %c0_4 = arith.constant 0 : index
    %3 = vector.load %arg4[%c0_3, %c0_4] : memref<1x64xf32, #tpu.memory_space<vmem>>, vector<1x64xf32>
    %4 = vector.broadcast %3 : vector<1x64xf32> to vector<96x64xf32>
    %5 = arith.addf %2, %4 : vector<96x64xf32>
    %cst_5 = arith.constant 0.000000e+00 : f32
    %6 = vector.broadcast %cst_5 : f32 to vector<96x64xf32>
    %7 = arith.maximumf %5, %6 : vector<96x64xf32>
    %8 = vector.extract_strided_slice %7 {offsets = [0, 0], sizes = [96, 32], strides = [1, 1]} : vector<96x64xf32> to vector<96x32xf32>
    %9 = vector.extract_strided_slice %7 {offsets = [0, 32], sizes = [96, 32], strides = [1, 1]} : vector<96x64xf32> to vector<96x32xf32>
    %c0_6 = arith.constant 0 : index
    %c0_7 = arith.constant 0 : index
    %10 = vector.load %arg5[%c0_6, %c0_7] : memref<32x16xf32, #tpu.memory_space<vmem>>, vector<32x16xf32>
    %cst_8 = arith.constant dense<0.000000e+00> : vector<96x16xf32>
    %11 = tpu.matmul %8, %10, %cst_8 {dimension_numbers = #tpu.dot_dimension_numbers<[1], [0], [0], [1], [0, 0, 1, 1], [], []>} : vector<96x32xf32>, vector<32x16xf32>, vector<96x16xf32> -> vector<96x16xf32>
    %c0_9 = arith.constant 0 : index
    %c0_10 = arith.constant 0 : index
    %12 = vector.load %arg6[%c0_9, %c0_10] : memref<1x16xf32, #tpu.memory_space<vmem>>, vector<1x16xf32>
    %13 = vector.broadcast %12 : vector<1x16xf32> to vector<96x16xf32>
    %14 = arith.addf %11, %13 : vector<96x16xf32>
    %c0_11 = arith.constant 0 : index
    %c0_12 = arith.constant 0 : index
    %c0_13 = arith.constant 0 : index
    %15 = vector.load %arg2[%c0_11, %c0_12, %c0_13] : memref<32x16x32xf32, #tpu.memory_space<vmem>>, vector<32x16x32xf32>
    %16 = vector.extract_strided_slice %14 {offsets = [0, 0], sizes = [32, 16], strides = [1, 1]} : vector<96x16xf32> to vector<32x16xf32>
    %17 = vector.extract_strided_slice %16 {offsets = [0, 0], sizes = [32, 1], strides = [1, 1]} : vector<32x16xf32> to vector<32x1xf32>
    %18 = vector.extract_strided_slice %15 {offsets = [0, 0, 0], sizes = [32, 1, 32], strides = [1, 1, 1]} : vector<32x16x32xf32> to vector<32x1x32xf32>
    %19 = vector.shape_cast %18 : vector<32x1x32xf32> to vector<32x32xf32>
    %20 = vector.broadcast %17 : vector<32x1xf32> to vector<32x32xf32>
    %21 = arith.mulf %20, %19 : vector<32x32xf32>
    %22 = vector.extract_strided_slice %16 {offsets = [0, 1], sizes = [32, 1], strides = [1, 1]} : vector<32x16xf32> to vector<32x1xf32>
    %23 = vector.extract_strided_slice %15 {offsets = [0, 1, 0], sizes = [32, 1, 32], strides = [1, 1, 1]} : vector<32x16x32xf32> to vector<32x1x32xf32>
    %24 = vector.shape_cast %23 : vector<32x1x32xf32> to vector<32x32xf32>
    %25 = vector.broadcast %22 : vector<32x1xf32> to vector<32x32xf32>
    %26 = arith.mulf %25, %24 : vector<32x32xf32>
    %27 = arith.addf %21, %26 : vector<32x32xf32>
    %28 = vector.extract_strided_slice %16 {offsets = [0, 2], sizes = [32, 1], strides = [1, 1]} : vector<32x16xf32> to vector<32x1xf32>
    %29 = vector.extract_strided_slice %15 {offsets = [0, 2, 0], sizes = [32, 1, 32], strides = [1, 1, 1]} : vector<32x16x32xf32> to vector<32x1x32xf32>
    %30 = vector.shape_cast %29 : vector<32x1x32xf32> to vector<32x32xf32>
    %31 = vector.broadcast %28 : vector<32x1xf32> to vector<32x32xf32>
    %32 = arith.mulf %31, %30 : vector<32x32xf32>
    %33 = arith.addf %27, %32 : vector<32x32xf32>
    %34 = vector.extract_strided_slice %16 {offsets = [0, 3], sizes = [32, 1], strides = [1, 1]} : vector<32x16xf32> to vector<32x1xf32>
    %35 = vector.extract_strided_slice %15 {offsets = [0, 3, 0], sizes = [32, 1, 32], strides = [1, 1, 1]} : vector<32x16x32xf32> to vector<32x1x32xf32>
    %36 = vector.shape_cast %35 : vector<32x1x32xf32> to vector<32x32xf32>
    %37 = vector.broadcast %34 : vector<32x1xf32> to vector<32x32xf32>
    %38 = arith.mulf %37, %36 : vector<32x32xf32>
    %39 = arith.addf %33, %38 : vector<32x32xf32>
    %40 = vector.extract_strided_slice %16 {offsets = [0, 4], sizes = [32, 1], strides = [1, 1]} : vector<32x16xf32> to vector<32x1xf32>
    %41 = vector.extract_strided_slice %15 {offsets = [0, 4, 0], sizes = [32, 1, 32], strides = [1, 1, 1]} : vector<32x16x32xf32> to vector<32x1x32xf32>
    %42 = vector.shape_cast %41 : vector<32x1x32xf32> to vector<32x32xf32>
    %43 = vector.broadcast %40 : vector<32x1xf32> to vector<32x32xf32>
    %44 = arith.mulf %43, %42 : vector<32x32xf32>
    %45 = arith.addf %39, %44 : vector<32x32xf32>
    %46 = vector.extract_strided_slice %16 {offsets = [0, 5], sizes = [32, 1], strides = [1, 1]} : vector<32x16xf32> to vector<32x1xf32>
    %47 = vector.extract_strided_slice %15 {offsets = [0, 5, 0], sizes = [32, 1, 32], strides = [1, 1, 1]} : vector<32x16x32xf32> to vector<32x1x32xf32>
    %48 = vector.shape_cast %47 : vector<32x1x32xf32> to vector<32x32xf32>
    %49 = vector.broadcast %46 : vector<32x1xf32> to vector<32x32xf32>
    %50 = arith.mulf %49, %48 : vector<32x32xf32>
    %51 = arith.addf %45, %50 : vector<32x32xf32>
    %52 = vector.extract_strided_slice %16 {offsets = [0, 6], sizes = [32, 1], strides = [1, 1]} : vector<32x16xf32> to vector<32x1xf32>
    %53 = vector.extract_strided_slice %15 {offsets = [0, 6, 0], sizes = [32, 1, 32], strides = [1, 1, 1]} : vector<32x16x32xf32> to vector<32x1x32xf32>
    %54 = vector.shape_cast %53 : vector<32x1x32xf32> to vector<32x32xf32>
    %55 = vector.broadcast %52 : vector<32x1xf32> to vector<32x32xf32>
    %56 = arith.mulf %55, %54 : vector<32x32xf32>
    %57 = arith.addf %51, %56 : vector<32x32xf32>
    %58 = vector.extract_strided_slice %16 {offsets = [0, 7], sizes = [32, 1], strides = [1, 1]} : vector<32x16xf32> to vector<32x1xf32>
    %59 = vector.extract_strided_slice %15 {offsets = [0, 7, 0], sizes = [32, 1, 32], strides = [1, 1, 1]} : vector<32x16x32xf32> to vector<32x1x32xf32>
    %60 = vector.shape_cast %59 : vector<32x1x32xf32> to vector<32x32xf32>
    %61 = vector.broadcast %58 : vector<32x1xf32> to vector<32x32xf32>
    %62 = arith.mulf %61, %60 : vector<32x32xf32>
    %63 = arith.addf %57, %62 : vector<32x32xf32>
    %64 = vector.extract_strided_slice %16 {offsets = [0, 8], sizes = [32, 1], strides = [1, 1]} : vector<32x16xf32> to vector<32x1xf32>
    %65 = vector.extract_strided_slice %15 {offsets = [0, 8, 0], sizes = [32, 1, 32], strides = [1, 1, 1]} : vector<32x16x32xf32> to vector<32x1x32xf32>
    %66 = vector.shape_cast %65 : vector<32x1x32xf32> to vector<32x32xf32>
    %67 = vector.broadcast %64 : vector<32x1xf32> to vector<32x32xf32>
    %68 = arith.mulf %67, %66 : vector<32x32xf32>
    %69 = arith.addf %63, %68 : vector<32x32xf32>
    %70 = vector.extract_strided_slice %16 {offsets = [0, 9], sizes = [32, 1], strides = [1, 1]} : vector<32x16xf32> to vector<32x1xf32>
    %71 = vector.extract_strided_slice %15 {offsets = [0, 9, 0], sizes = [32, 1, 32], strides = [1, 1, 1]} : vector<32x16x32xf32> to vector<32x1x32xf32>
    %72 = vector.shape_cast %71 : vector<32x1x32xf32> to vector<32x32xf32>
    %73 = vector.broadcast %70 : vector<32x1xf32> to vector<32x32xf32>
    %74 = arith.mulf %73, %72 : vector<32x32xf32>
    %75 = arith.addf %69, %74 : vector<32x32xf32>
    %76 = vector.extract_strided_slice %16 {offsets = [0, 10], sizes = [32, 1], strides = [1, 1]} : vector<32x16xf32> to vector<32x1xf32>
    %77 = vector.extract_strided_slice %15 {offsets = [0, 10, 0], sizes = [32, 1, 32], strides = [1, 1, 1]} : vector<32x16x32xf32> to vector<32x1x32xf32>
    %78 = vector.shape_cast %77 : vector<32x1x32xf32> to vector<32x32xf32>
    %79 = vector.broadcast %76 : vector<32x1xf32> to vector<32x32xf32>
    %80 = arith.mulf %79, %78 : vector<32x32xf32>
    %81 = arith.addf %75, %80 : vector<32x32xf32>
    %82 = vector.extract_strided_slice %16 {offsets = [0, 11], sizes = [32, 1], strides = [1, 1]} : vector<32x16xf32> to vector<32x1xf32>
    %83 = vector.extract_strided_slice %15 {offsets = [0, 11, 0], sizes = [32, 1, 32], strides = [1, 1, 1]} : vector<32x16x32xf32> to vector<32x1x32xf32>
    %84 = vector.shape_cast %83 : vector<32x1x32xf32> to vector<32x32xf32>
    %85 = vector.broadcast %82 : vector<32x1xf32> to vector<32x32xf32>
    %86 = arith.mulf %85, %84 : vector<32x32xf32>
    %87 = arith.addf %81, %86 : vector<32x32xf32>
    %88 = vector.extract_strided_slice %16 {offsets = [0, 12], sizes = [32, 1], strides = [1, 1]} : vector<32x16xf32> to vector<32x1xf32>
    %89 = vector.extract_strided_slice %15 {offsets = [0, 12, 0], sizes = [32, 1, 32], strides = [1, 1, 1]} : vector<32x16x32xf32> to vector<32x1x32xf32>
    %90 = vector.shape_cast %89 : vector<32x1x32xf32> to vector<32x32xf32>
    %91 = vector.broadcast %88 : vector<32x1xf32> to vector<32x32xf32>
    %92 = arith.mulf %91, %90 : vector<32x32xf32>
    %93 = arith.addf %87, %92 : vector<32x32xf32>
    %94 = vector.extract_strided_slice %16 {offsets = [0, 13], sizes = [32, 1], strides = [1, 1]} : vector<32x16xf32> to vector<32x1xf32>
    %95 = vector.extract_strided_slice %15 {offsets = [0, 13, 0], sizes = [32, 1, 32], strides = [1, 1, 1]} : vector<32x16x32xf32> to vector<32x1x32xf32>
    %96 = vector.shape_cast %95 : vector<32x1x32xf32> to vector<32x32xf32>
    %97 = vector.broadcast %94 : vector<32x1xf32> to vector<32x32xf32>
    %98 = arith.mulf %97, %96 : vector<32x32xf32>
    %99 = arith.addf %93, %98 : vector<32x32xf32>
    %100 = vector.extract_strided_slice %16 {offsets = [0, 14], sizes = [32, 1], strides = [1, 1]} : vector<32x16xf32> to vector<32x1xf32>
    %101 = vector.extract_strided_slice %15 {offsets = [0, 14, 0], sizes = [32, 1, 32], strides = [1, 1, 1]} : vector<32x16x32xf32> to vector<32x1x32xf32>
    %102 = vector.shape_cast %101 : vector<32x1x32xf32> to vector<32x32xf32>
    %103 = vector.broadcast %100 : vector<32x1xf32> to vector<32x32xf32>
    %104 = arith.mulf %103, %102 : vector<32x32xf32>
    %105 = arith.addf %99, %104 : vector<32x32xf32>
    %106 = vector.extract_strided_slice %16 {offsets = [0, 15], sizes = [32, 1], strides = [1, 1]} : vector<32x16xf32> to vector<32x1xf32>
    %107 = vector.extract_strided_slice %15 {offsets = [0, 15, 0], sizes = [32, 1, 32], strides = [1, 1, 1]} : vector<32x16x32xf32> to vector<32x1x32xf32>
    %108 = vector.shape_cast %107 : vector<32x1x32xf32> to vector<32x32xf32>
    %109 = vector.broadcast %106 : vector<32x1xf32> to vector<32x32xf32>
    %110 = arith.mulf %109, %108 : vector<32x32xf32>
    %111 = arith.addf %105, %110 : vector<32x32xf32>
    %112 = vector.extract_strided_slice %14 {offsets = [32, 0], sizes = [32, 16], strides = [1, 1]} : vector<96x16xf32> to vector<32x16xf32>
    %113 = vector.extract_strided_slice %112 {offsets = [0, 0], sizes = [32, 1], strides = [1, 1]} : vector<32x16xf32> to vector<32x1xf32>
    %114 = vector.extract_strided_slice %15 {offsets = [0, 0, 0], sizes = [32, 1, 32], strides = [1, 1, 1]} : vector<32x16x32xf32> to vector<32x1x32xf32>
    %115 = vector.shape_cast %114 : vector<32x1x32xf32> to vector<32x32xf32>
    %116 = vector.broadcast %113 : vector<32x1xf32> to vector<32x32xf32>
    %117 = arith.mulf %116, %115 : vector<32x32xf32>
    %118 = vector.extract_strided_slice %112 {offsets = [0, 1], sizes = [32, 1], strides = [1, 1]} : vector<32x16xf32> to vector<32x1xf32>
    %119 = vector.extract_strided_slice %15 {offsets = [0, 1, 0], sizes = [32, 1, 32], strides = [1, 1, 1]} : vector<32x16x32xf32> to vector<32x1x32xf32>
    %120 = vector.shape_cast %119 : vector<32x1x32xf32> to vector<32x32xf32>
    %121 = vector.broadcast %118 : vector<32x1xf32> to vector<32x32xf32>
    %122 = arith.mulf %121, %120 : vector<32x32xf32>
    %123 = arith.addf %117, %122 : vector<32x32xf32>
    %124 = vector.extract_strided_slice %112 {offsets = [0, 2], sizes = [32, 1], strides = [1, 1]} : vector<32x16xf32> to vector<32x1xf32>
    %125 = vector.extract_strided_slice %15 {offsets = [0, 2, 0], sizes = [32, 1, 32], strides = [1, 1, 1]} : vector<32x16x32xf32> to vector<32x1x32xf32>
    %126 = vector.shape_cast %125 : vector<32x1x32xf32> to vector<32x32xf32>
    %127 = vector.broadcast %124 : vector<32x1xf32> to vector<32x32xf32>
    %128 = arith.mulf %127, %126 : vector<32x32xf32>
    %129 = arith.addf %123, %128 : vector<32x32xf32>
    %130 = vector.extract_strided_slice %112 {offsets = [0, 3], sizes = [32, 1], strides = [1, 1]} : vector<32x16xf32> to vector<32x1xf32>
    %131 = vector.extract_strided_slice %15 {offsets = [0, 3, 0], sizes = [32, 1, 32], strides = [1, 1, 1]} : vector<32x16x32xf32> to vector<32x1x32xf32>
    %132 = vector.shape_cast %131 : vector<32x1x32xf32> to vector<32x32xf32>
    %133 = vector.broadcast %130 : vector<32x1xf32> to vector<32x32xf32>
    %134 = arith.mulf %133, %132 : vector<32x32xf32>
    %135 = arith.addf %129, %134 : vector<32x32xf32>
    %136 = vector.extract_strided_slice %112 {offsets = [0, 4], sizes = [32, 1], strides = [1, 1]} : vector<32x16xf32> to vector<32x1xf32>
    %137 = vector.extract_strided_slice %15 {offsets = [0, 4, 0], sizes = [32, 1, 32], strides = [1, 1, 1]} : vector<32x16x32xf32> to vector<32x1x32xf32>
    %138 = vector.shape_cast %137 : vector<32x1x32xf32> to vector<32x32xf32>
    %139 = vector.broadcast %136 : vector<32x1xf32> to vector<32x32xf32>
    %140 = arith.mulf %139, %138 : vector<32x32xf32>
    %141 = arith.addf %135, %140 : vector<32x32xf32>
    %142 = vector.extract_strided_slice %112 {offsets = [0, 5], sizes = [32, 1], strides = [1, 1]} : vector<32x16xf32> to vector<32x1xf32>
    %143 = vector.extract_strided_slice %15 {offsets = [0, 5, 0], sizes = [32, 1, 32], strides = [1, 1, 1]} : vector<32x16x32xf32> to vector<32x1x32xf32>
    %144 = vector.shape_cast %143 : vector<32x1x32xf32> to vector<32x32xf32>
    %145 = vector.broadcast %142 : vector<32x1xf32> to vector<32x32xf32>
    %146 = arith.mulf %145, %144 : vector<32x32xf32>
    %147 = arith.addf %141, %146 : vector<32x32xf32>
    %148 = vector.extract_strided_slice %112 {offsets = [0, 6], sizes = [32, 1], strides = [1, 1]} : vector<32x16xf32> to vector<32x1xf32>
    %149 = vector.extract_strided_slice %15 {offsets = [0, 6, 0], sizes = [32, 1, 32], strides = [1, 1, 1]} : vector<32x16x32xf32> to vector<32x1x32xf32>
    %150 = vector.shape_cast %149 : vector<32x1x32xf32> to vector<32x32xf32>
    %151 = vector.broadcast %148 : vector<32x1xf32> to vector<32x32xf32>
    %152 = arith.mulf %151, %150 : vector<32x32xf32>
    %153 = arith.addf %147, %152 : vector<32x32xf32>
    %154 = vector.extract_strided_slice %112 {offsets = [0, 7], sizes = [32, 1], strides = [1, 1]} : vector<32x16xf32> to vector<32x1xf32>
    %155 = vector.extract_strided_slice %15 {offsets = [0, 7, 0], sizes = [32, 1, 32], strides = [1, 1, 1]} : vector<32x16x32xf32> to vector<32x1x32xf32>
    %156 = vector.shape_cast %155 : vector<32x1x32xf32> to vector<32x32xf32>
    %157 = vector.broadcast %154 : vector<32x1xf32> to vector<32x32xf32>
    %158 = arith.mulf %157, %156 : vector<32x32xf32>
    %159 = arith.addf %153, %158 : vector<32x32xf32>
    %160 = vector.extract_strided_slice %112 {offsets = [0, 8], sizes = [32, 1], strides = [1, 1]} : vector<32x16xf32> to vector<32x1xf32>
    %161 = vector.extract_strided_slice %15 {offsets = [0, 8, 0], sizes = [32, 1, 32], strides = [1, 1, 1]} : vector<32x16x32xf32> to vector<32x1x32xf32>
    %162 = vector.shape_cast %161 : vector<32x1x32xf32> to vector<32x32xf32>
    %163 = vector.broadcast %160 : vector<32x1xf32> to vector<32x32xf32>
    %164 = arith.mulf %163, %162 : vector<32x32xf32>
    %165 = arith.addf %159, %164 : vector<32x32xf32>
    %166 = vector.extract_strided_slice %112 {offsets = [0, 9], sizes = [32, 1], strides = [1, 1]} : vector<32x16xf32> to vector<32x1xf32>
    %167 = vector.extract_strided_slice %15 {offsets = [0, 9, 0], sizes = [32, 1, 32], strides = [1, 1, 1]} : vector<32x16x32xf32> to vector<32x1x32xf32>
    %168 = vector.shape_cast %167 : vector<32x1x32xf32> to vector<32x32xf32>
    %169 = vector.broadcast %166 : vector<32x1xf32> to vector<32x32xf32>
    %170 = arith.mulf %169, %168 : vector<32x32xf32>
    %171 = arith.addf %165, %170 : vector<32x32xf32>
    %172 = vector.extract_strided_slice %112 {offsets = [0, 10], sizes = [32, 1], strides = [1, 1]} : vector<32x16xf32> to vector<32x1xf32>
    %173 = vector.extract_strided_slice %15 {offsets = [0, 10, 0], sizes = [32, 1, 32], strides = [1, 1, 1]} : vector<32x16x32xf32> to vector<32x1x32xf32>
    %174 = vector.shape_cast %173 : vector<32x1x32xf32> to vector<32x32xf32>
    %175 = vector.broadcast %172 : vector<32x1xf32> to vector<32x32xf32>
    %176 = arith.mulf %175, %174 : vector<32x32xf32>
    %177 = arith.addf %171, %176 : vector<32x32xf32>
    %178 = vector.extract_strided_slice %112 {offsets = [0, 11], sizes = [32, 1], strides = [1, 1]} : vector<32x16xf32> to vector<32x1xf32>
    %179 = vector.extract_strided_slice %15 {offsets = [0, 11, 0], sizes = [32, 1, 32], strides = [1, 1, 1]} : vector<32x16x32xf32> to vector<32x1x32xf32>
    %180 = vector.shape_cast %179 : vector<32x1x32xf32> to vector<32x32xf32>
    %181 = vector.broadcast %178 : vector<32x1xf32> to vector<32x32xf32>
    %182 = arith.mulf %181, %180 : vector<32x32xf32>
    %183 = arith.addf %177, %182 : vector<32x32xf32>
    %184 = vector.extract_strided_slice %112 {offsets = [0, 12], sizes = [32, 1], strides = [1, 1]} : vector<32x16xf32> to vector<32x1xf32>
    %185 = vector.extract_strided_slice %15 {offsets = [0, 12, 0], sizes = [32, 1, 32], strides = [1, 1, 1]} : vector<32x16x32xf32> to vector<32x1x32xf32>
    %186 = vector.shape_cast %185 : vector<32x1x32xf32> to vector<32x32xf32>
    %187 = vector.broadcast %184 : vector<32x1xf32> to vector<32x32xf32>
    %188 = arith.mulf %187, %186 : vector<32x32xf32>
    %189 = arith.addf %183, %188 : vector<32x32xf32>
    %190 = vector.extract_strided_slice %112 {offsets = [0, 13], sizes = [32, 1], strides = [1, 1]} : vector<32x16xf32> to vector<32x1xf32>
    %191 = vector.extract_strided_slice %15 {offsets = [0, 13, 0], sizes = [32, 1, 32], strides = [1, 1, 1]} : vector<32x16x32xf32> to vector<32x1x32xf32>
    %192 = vector.shape_cast %191 : vector<32x1x32xf32> to vector<32x32xf32>
    %193 = vector.broadcast %190 : vector<32x1xf32> to vector<32x32xf32>
    %194 = arith.mulf %193, %192 : vector<32x32xf32>
    %195 = arith.addf %189, %194 : vector<32x32xf32>
    %196 = vector.extract_strided_slice %112 {offsets = [0, 14], sizes = [32, 1], strides = [1, 1]} : vector<32x16xf32> to vector<32x1xf32>
    %197 = vector.extract_strided_slice %15 {offsets = [0, 14, 0], sizes = [32, 1, 32], strides = [1, 1, 1]} : vector<32x16x32xf32> to vector<32x1x32xf32>
    %198 = vector.shape_cast %197 : vector<32x1x32xf32> to vector<32x32xf32>
    %199 = vector.broadcast %196 : vector<32x1xf32> to vector<32x32xf32>
    %200 = arith.mulf %199, %198 : vector<32x32xf32>
    %201 = arith.addf %195, %200 : vector<32x32xf32>
    %202 = vector.extract_strided_slice %112 {offsets = [0, 15], sizes = [32, 1], strides = [1, 1]} : vector<32x16xf32> to vector<32x1xf32>
    %203 = vector.extract_strided_slice %15 {offsets = [0, 15, 0], sizes = [32, 1, 32], strides = [1, 1, 1]} : vector<32x16x32xf32> to vector<32x1x32xf32>
    %204 = vector.shape_cast %203 : vector<32x1x32xf32> to vector<32x32xf32>
    %205 = vector.broadcast %202 : vector<32x1xf32> to vector<32x32xf32>
    %206 = arith.mulf %205, %204 : vector<32x32xf32>
    %207 = arith.addf %201, %206 : vector<32x32xf32>
    %208 = vector.extract_strided_slice %14 {offsets = [64, 0], sizes = [32, 16], strides = [1, 1]} : vector<96x16xf32> to vector<32x16xf32>
    %209 = vector.extract_strided_slice %208 {offsets = [0, 0], sizes = [32, 1], strides = [1, 1]} : vector<32x16xf32> to vector<32x1xf32>
    %210 = vector.extract_strided_slice %15 {offsets = [0, 0, 0], sizes = [32, 1, 32], strides = [1, 1, 1]} : vector<32x16x32xf32> to vector<32x1x32xf32>
    %211 = vector.shape_cast %210 : vector<32x1x32xf32> to vector<32x32xf32>
    %212 = vector.broadcast %209 : vector<32x1xf32> to vector<32x32xf32>
    %213 = arith.mulf %212, %211 : vector<32x32xf32>
    %214 = vector.extract_strided_slice %208 {offsets = [0, 1], sizes = [32, 1], strides = [1, 1]} : vector<32x16xf32> to vector<32x1xf32>
    %215 = vector.extract_strided_slice %15 {offsets = [0, 1, 0], sizes = [32, 1, 32], strides = [1, 1, 1]} : vector<32x16x32xf32> to vector<32x1x32xf32>
    %216 = vector.shape_cast %215 : vector<32x1x32xf32> to vector<32x32xf32>
    %217 = vector.broadcast %214 : vector<32x1xf32> to vector<32x32xf32>
    %218 = arith.mulf %217, %216 : vector<32x32xf32>
    %219 = arith.addf %213, %218 : vector<32x32xf32>
    %220 = vector.extract_strided_slice %208 {offsets = [0, 2], sizes = [32, 1], strides = [1, 1]} : vector<32x16xf32> to vector<32x1xf32>
    %221 = vector.extract_strided_slice %15 {offsets = [0, 2, 0], sizes = [32, 1, 32], strides = [1, 1, 1]} : vector<32x16x32xf32> to vector<32x1x32xf32>
    %222 = vector.shape_cast %221 : vector<32x1x32xf32> to vector<32x32xf32>
    %223 = vector.broadcast %220 : vector<32x1xf32> to vector<32x32xf32>
    %224 = arith.mulf %223, %222 : vector<32x32xf32>
    %225 = arith.addf %219, %224 : vector<32x32xf32>
    %226 = vector.extract_strided_slice %208 {offsets = [0, 3], sizes = [32, 1], strides = [1, 1]} : vector<32x16xf32> to vector<32x1xf32>
    %227 = vector.extract_strided_slice %15 {offsets = [0, 3, 0], sizes = [32, 1, 32], strides = [1, 1, 1]} : vector<32x16x32xf32> to vector<32x1x32xf32>
    %228 = vector.shape_cast %227 : vector<32x1x32xf32> to vector<32x32xf32>
    %229 = vector.broadcast %226 : vector<32x1xf32> to vector<32x32xf32>
    %230 = arith.mulf %229, %228 : vector<32x32xf32>
    %231 = arith.addf %225, %230 : vector<32x32xf32>
    %232 = vector.extract_strided_slice %208 {offsets = [0, 4], sizes = [32, 1], strides = [1, 1]} : vector<32x16xf32> to vector<32x1xf32>
    %233 = vector.extract_strided_slice %15 {offsets = [0, 4, 0], sizes = [32, 1, 32], strides = [1, 1, 1]} : vector<32x16x32xf32> to vector<32x1x32xf32>
    %234 = vector.shape_cast %233 : vector<32x1x32xf32> to vector<32x32xf32>
    %235 = vector.broadcast %232 : vector<32x1xf32> to vector<32x32xf32>
    %236 = arith.mulf %235, %234 : vector<32x32xf32>
    %237 = arith.addf %231, %236 : vector<32x32xf32>
    %238 = vector.extract_strided_slice %208 {offsets = [0, 5], sizes = [32, 1], strides = [1, 1]} : vector<32x16xf32> to vector<32x1xf32>
    %239 = vector.extract_strided_slice %15 {offsets = [0, 5, 0], sizes = [32, 1, 32], strides = [1, 1, 1]} : vector<32x16x32xf32> to vector<32x1x32xf32>
    %240 = vector.shape_cast %239 : vector<32x1x32xf32> to vector<32x32xf32>
    %241 = vector.broadcast %238 : vector<32x1xf32> to vector<32x32xf32>
    %242 = arith.mulf %241, %240 : vector<32x32xf32>
    %243 = arith.addf %237, %242 : vector<32x32xf32>
    %244 = vector.extract_strided_slice %208 {offsets = [0, 6], sizes = [32, 1], strides = [1, 1]} : vector<32x16xf32> to vector<32x1xf32>
    %245 = vector.extract_strided_slice %15 {offsets = [0, 6, 0], sizes = [32, 1, 32], strides = [1, 1, 1]} : vector<32x16x32xf32> to vector<32x1x32xf32>
    %246 = vector.shape_cast %245 : vector<32x1x32xf32> to vector<32x32xf32>
    %247 = vector.broadcast %244 : vector<32x1xf32> to vector<32x32xf32>
    %248 = arith.mulf %247, %246 : vector<32x32xf32>
    %249 = arith.addf %243, %248 : vector<32x32xf32>
    %250 = vector.extract_strided_slice %208 {offsets = [0, 7], sizes = [32, 1], strides = [1, 1]} : vector<32x16xf32> to vector<32x1xf32>
    %251 = vector.extract_strided_slice %15 {offsets = [0, 7, 0], sizes = [32, 1, 32], strides = [1, 1, 1]} : vector<32x16x32xf32> to vector<32x1x32xf32>
    %252 = vector.shape_cast %251 : vector<32x1x32xf32> to vector<32x32xf32>
    %253 = vector.broadcast %250 : vector<32x1xf32> to vector<32x32xf32>
    %254 = arith.mulf %253, %252 : vector<32x32xf32>
    %255 = arith.addf %249, %254 : vector<32x32xf32>
    %256 = vector.extract_strided_slice %208 {offsets = [0, 8], sizes = [32, 1], strides = [1, 1]} : vector<32x16xf32> to vector<32x1xf32>
    %257 = vector.extract_strided_slice %15 {offsets = [0, 8, 0], sizes = [32, 1, 32], strides = [1, 1, 1]} : vector<32x16x32xf32> to vector<32x1x32xf32>
    %258 = vector.shape_cast %257 : vector<32x1x32xf32> to vector<32x32xf32>
    %259 = vector.broadcast %256 : vector<32x1xf32> to vector<32x32xf32>
    %260 = arith.mulf %259, %258 : vector<32x32xf32>
    %261 = arith.addf %255, %260 : vector<32x32xf32>
    %262 = vector.extract_strided_slice %208 {offsets = [0, 9], sizes = [32, 1], strides = [1, 1]} : vector<32x16xf32> to vector<32x1xf32>
    %263 = vector.extract_strided_slice %15 {offsets = [0, 9, 0], sizes = [32, 1, 32], strides = [1, 1, 1]} : vector<32x16x32xf32> to vector<32x1x32xf32>
    %264 = vector.shape_cast %263 : vector<32x1x32xf32> to vector<32x32xf32>
    %265 = vector.broadcast %262 : vector<32x1xf32> to vector<32x32xf32>
    %266 = arith.mulf %265, %264 : vector<32x32xf32>
    %267 = arith.addf %261, %266 : vector<32x32xf32>
    %268 = vector.extract_strided_slice %208 {offsets = [0, 10], sizes = [32, 1], strides = [1, 1]} : vector<32x16xf32> to vector<32x1xf32>
    %269 = vector.extract_strided_slice %15 {offsets = [0, 10, 0], sizes = [32, 1, 32], strides = [1, 1, 1]} : vector<32x16x32xf32> to vector<32x1x32xf32>
    %270 = vector.shape_cast %269 : vector<32x1x32xf32> to vector<32x32xf32>
    %271 = vector.broadcast %268 : vector<32x1xf32> to vector<32x32xf32>
    %272 = arith.mulf %271, %270 : vector<32x32xf32>
    %273 = arith.addf %267, %272 : vector<32x32xf32>
    %274 = vector.extract_strided_slice %208 {offsets = [0, 11], sizes = [32, 1], strides = [1, 1]} : vector<32x16xf32> to vector<32x1xf32>
    %275 = vector.extract_strided_slice %15 {offsets = [0, 11, 0], sizes = [32, 1, 32], strides = [1, 1, 1]} : vector<32x16x32xf32> to vector<32x1x32xf32>
    %276 = vector.shape_cast %275 : vector<32x1x32xf32> to vector<32x32xf32>
    %277 = vector.broadcast %274 : vector<32x1xf32> to vector<32x32xf32>
    %278 = arith.mulf %277, %276 : vector<32x32xf32>
    %279 = arith.addf %273, %278 : vector<32x32xf32>
    %280 = vector.extract_strided_slice %208 {offsets = [0, 12], sizes = [32, 1], strides = [1, 1]} : vector<32x16xf32> to vector<32x1xf32>
    %281 = vector.extract_strided_slice %15 {offsets = [0, 12, 0], sizes = [32, 1, 32], strides = [1, 1, 1]} : vector<32x16x32xf32> to vector<32x1x32xf32>
    %282 = vector.shape_cast %281 : vector<32x1x32xf32> to vector<32x32xf32>
    %283 = vector.broadcast %280 : vector<32x1xf32> to vector<32x32xf32>
    %284 = arith.mulf %283, %282 : vector<32x32xf32>
    %285 = arith.addf %279, %284 : vector<32x32xf32>
    %286 = vector.extract_strided_slice %208 {offsets = [0, 13], sizes = [32, 1], strides = [1, 1]} : vector<32x16xf32> to vector<32x1xf32>
    %287 = vector.extract_strided_slice %15 {offsets = [0, 13, 0], sizes = [32, 1, 32], strides = [1, 1, 1]} : vector<32x16x32xf32> to vector<32x1x32xf32>
    %288 = vector.shape_cast %287 : vector<32x1x32xf32> to vector<32x32xf32>
    %289 = vector.broadcast %286 : vector<32x1xf32> to vector<32x32xf32>
    %290 = arith.mulf %289, %288 : vector<32x32xf32>
    %291 = arith.addf %285, %290 : vector<32x32xf32>
    %292 = vector.extract_strided_slice %208 {offsets = [0, 14], sizes = [32, 1], strides = [1, 1]} : vector<32x16xf32> to vector<32x1xf32>
    %293 = vector.extract_strided_slice %15 {offsets = [0, 14, 0], sizes = [32, 1, 32], strides = [1, 1, 1]} : vector<32x16x32xf32> to vector<32x1x32xf32>
    %294 = vector.shape_cast %293 : vector<32x1x32xf32> to vector<32x32xf32>
    %295 = vector.broadcast %292 : vector<32x1xf32> to vector<32x32xf32>
    %296 = arith.mulf %295, %294 : vector<32x32xf32>
    %297 = arith.addf %291, %296 : vector<32x32xf32>
    %298 = vector.extract_strided_slice %208 {offsets = [0, 15], sizes = [32, 1], strides = [1, 1]} : vector<32x16xf32> to vector<32x1xf32>
    %299 = vector.extract_strided_slice %15 {offsets = [0, 15, 0], sizes = [32, 1, 32], strides = [1, 1, 1]} : vector<32x16x32xf32> to vector<32x1x32xf32>
    %300 = vector.shape_cast %299 : vector<32x1x32xf32> to vector<32x32xf32>
    %301 = vector.broadcast %298 : vector<32x1xf32> to vector<32x32xf32>
    %302 = arith.mulf %301, %300 : vector<32x32xf32>
    %303 = arith.addf %297, %302 : vector<32x32xf32>
    %304 = tpu.concatenate %111, %207, %303 in 0 : vector<32x32xf32>, vector<32x32xf32>, vector<32x32xf32> -> vector<96x32xf32>
    %305 = arith.addf %9, %304 : vector<96x32xf32>
    %306 = tpu.concatenate %305, %304 in 1 : vector<96x32xf32>, vector<96x32xf32> -> vector<96x64xf32>
    %c0_14 = arith.constant 0 : index
    %c0_15 = arith.constant 0 : index
    %307 = vector.load %arg7[%c0_14, %c0_15] : memref<96x64xf32, #tpu.memory_space<vmem>>, vector<96x64xf32>
    tpu.vector_store %arg7[%c0_14, %c0_15], %306 {strides = array<i32>} : memref<96x64xf32, #tpu.memory_space<vmem>>, vector<96x64xf32>,
    return
  }
  func.func @transform_0(%arg0: i32) -> (i32, i32) {
    %c0_i32 = arith.constant 0 : i32
    %c0_i32_0 = arith.constant 0 : i32
    return %arg0, %c0_i32 : i32, i32
  }
  func.func @transform_1(%arg0: i32) -> (i32, i32, i32) {
    %c0_i32 = arith.constant 0 : i32
    %c0_i32_0 = arith.constant 0 : i32
    %c0_i32_1 = arith.constant 0 : i32
    %c0_i32_2 = arith.constant 0 : i32
    return %c0_i32, %c0_i32_0, %c0_i32_1 : i32, i32, i32
  }
  func.func @transform_2(%arg0: i32) -> (i32, i32) {
    %c0_i32 = arith.constant 0 : i32
    %c0_i32_0 = arith.constant 0 : i32
    %c0_i32_1 = arith.constant 0 : i32
    return %c0_i32, %c0_i32_0 : i32, i32
  }
  func.func @transform_3(%arg0: i32) -> (i32, i32) {
    %c0_i32 = arith.constant 0 : i32
    %c0_i32_0 = arith.constant 0 : i32
    %c0_i32_1 = arith.constant 0 : i32
    return %c0_i32, %c0_i32_0 : i32, i32
  }
  func.func @transform_4(%arg0: i32) -> (i32, i32) {
    %c0_i32 = arith.constant 0 : i32
    %c0_i32_0 = arith.constant 0 : i32
    %c0_i32_1 = arith.constant 0 : i32
    return %c0_i32, %c0_i32_0 : i32, i32
  }
  func.func @transform_5(%arg0: i32) -> (i32, i32) {
    %c0_i32 = arith.constant 0 : i32
    %c0_i32_0 = arith.constant 0 : i32
    %c0_i32_1 = arith.constant 0 : i32
    return %c0_i32, %c0_i32_0 : i32, i32
  }
  func.func @transform_6(%arg0: i32) -> (i32, i32) {
    %c0_i32 = arith.constant 0 : i32
    %c0_i32_0 = arith.constant 0 : i32
    return %arg0, %c0_i32 : i32, i32
  }
}

</mosaic_0001>

<bundles_post_ra>
// kernel: point_to_anchor_forward.1
= control target key start
LH: loop header
LB: loop body
LE: loop exit
PB: predicated region body
PF: predicated region fallthrough
CT: control target
= control target key end

     0   :  { %vm46_vm0 = vcmask 261120   ;;  %v6012_v51 = vmov 1   ;;  %v5996_v52 = vmov 0   ;;  %v6004_v62 = vmov 3   ;;  %s3109_s30 = smov 32   ;;  %s5969_s2 = inlined_call_operand.vmem [shape: f32[32,64], index: 2, kind: input, shape index: {}]   ;;  %s5970_s0 = inlined_call_operand.vmem [shape: f32[96,32], index: 0, kind: input, shape index: {}]   ;;  %s5971_s4 = inlined_call_operand.vmem [shape: f32[32,16], index: 4, kind: input, shape index: {}]   ;;  %s5972_s3 = inlined_call_operand.vmem [shape: f32[1,64], index: 3, kind: input, shape index: {}]   ;;  %s5973_s5 = inlined_call_operand.vmem [shape: f32[1,16], index: 5, kind: input, shape index: {}]   ;;  %s5974_s1 = inlined_call_operand.vmem [shape: f32[32,16,32], index: 1, kind: input, shape index: {}]   ;;  %s5975_s6 = inlined_call_operand.vmem [shape: f32[96,64], index: 6, kind: output, shape index: {}]  }
   0x1   :  { %v38_v0 = vld [vmem:[%s5969_s2 + $0x18] sm:$0xff]  ;;  %v37_v1 = vld [vmem:[%s5969_s2 + $0x10] sm:$0xff]  ;;  %v23_v2 = vld [vmem:[%s5970_s0] sm:$0xff]  ;;  %2905 = vset.pattern.permute.xlu1 %v6012_v51  ;;  %2904 = vset.pattern.permute.xlu0 %v5996_v52  ;;  %v6000_v63 = vmov 2   ;;  %vm509_vm1 = vcmask 1041409   ;;  %vm512_vm2 = vcmask 1042434  }
   0x2   :  { %2834 = vmatprep.subr.mxu0 %v38_v0  ;;  %v36_v3 = vld [vmem:[%s5969_s2 + $0x8] sm:$0xff]  ;;  %2842 = vmatprep.mubr.msk.f32.mxu0 %vm46_vm0, %v23_v2  ;;  %v35_v4 = vld [vmem:[%s5969_s2] sm:$0xff]  ;;  %v25_v6 = vld [vmem:[%s5970_s0 + $0x10] sm:$0xff]  ;;  %v6017_v2 = vmov 7   ;;  %vm515_vm3 = vcmask 1043459   ;;  %vm518_vm4 = vcmask 1044484  }
   0x3   :  { %2835 = vmatpush3.msra.mxu0 %v38_v0  ;;  %v24_v5 = vld [vmem:[%s5970_s0 + $0x8] sm:$0xff]  ;;  %v26_v7 = vld [vmem:[%s5970_s0 + $0x18] sm:$0xff]  ;;  %v27_v8 = vld [vmem:[%s5970_s0 + $0x20] sm:$0xff]  ;;  %v6008_v0 = vmov 5   ;;  %vm521_vm5 = vcmask 1045509   ;;  %vm524_vm6 = vcmask 1046534  }
   0x4   :  { %2836 = vmatprep.subr.mxu0 %v37_v1  ;;  %v28_v9 = vld [vmem:[%s5970_s0 + $0x28] sm:$0xff]  ;;  %v29_v10 = vld [vmem:[%s5970_s0 + $0x30] sm:$0xff]  ;;  %v30_v11 = vld [vmem:[%s5970_s0 + $0x38] sm:$0xff]  ;;  %vm527_vm7 = vcmask 1047559   ;;  %vm2759_vm8 = vcmask 523264  }
   0x5   :  { %2837 = vmatpush3.msra.mxu0 %v37_v1  ;;  %v31_v12 = vld [vmem:[%s5970_s0 + $0x40] sm:$0xff]  ;;  %v32_v13 = vld [vmem:[%s5970_s0 + $0x48] sm:$0xff]  ;;  %v223_v14 = vld [vmem:[%s5971_s4 + $0x18] sm:$0xff]  ;;  %v6002_v1 = vmov 4  }
   0x6   :  { %2838 = vmatprep.subr.mxu0 %v36_v3  ;;  %2860 = vmatprep.subr.mxu1 %v223_v14  ;;  %v222_v15 = vld [vmem:[%s5971_s4 + $0x10] sm:$0xff]  ;;  %v221_v16 = vld [vmem:[%s5971_s4 + $0x8] sm:$0xff]  ;;  %v220_v17 = vld [vmem:[%s5971_s4] sm:$0xff] }
   0x7   :  { %2839 = vmatpush3.msra.mxu0 %v36_v3  ;;  %2861 = vmatpush3.msra.mxu1 %v223_v14  ;;  %v33_v18 = vld [vmem:[%s5970_s0 + $0x50] sm:$0xff]  ;;  %v34_v19 = vld [vmem:[%s5970_s0 + $0x58] sm:$0xff]  ;;  %v2776_v20 = vld [vmem:[%s5972_s3] ss:$0 sm:$0xff]  ;;  %v6006_v3 = vmov 6   ;;  %v5988_v14 = vmov 12  }
   0x8   :  { %2840 = vmatprep.subr.mxu0 %v35_v4  ;;  %2862 = vmatprep.subr.mxu1 %v222_v15  ;;  %v3298_v59 = vld [vmem:[%s5973_s5] ss:$0 sm:$0xff] }
   0x9   :  { %2841 = vmatpush3.msra.mxu0 %v35_v4  ;;  %2863 = vmatpush3.msra.mxu1 %v222_v15  ;;  %v6021_v4 = vmov 9   ;;  %v5994_v15 = vmov 14  }
   0xa   :  { %2843 = vmatmul.mubr.msk.f32.vlgmr.msra.gmra.mxu0 %vm46_vm0, %v24_v5  ;;  %2864 = vmatprep.subr.mxu1 %v221_v16  ;;  %v6010_v5 = vmov 8  }
   0xb   :  { %2845 = vmatprep.mubr.msk.f32.mxu0 %vm46_vm0, %v25_v6  ;;  %2865 = vmatpush3.msra.mxu1 %v221_v16  ;;  %v5992_v6 = vmov 11  }
   0xc   :  { %2866 = vmatprep.subr.mxu1 %v220_v17 }
   0xd   :  { %2867 = vmatpush3.msra.mxu1 %v220_v17 }
   0xe   :  { %2846 = vmatmul.mubr.msk.f32.gmra.mxu0 %vm46_vm0, %v26_v7  ;;  %v6015_v7 = vmov 10  }
   0xf   :  { %2848 = vmatprep.mubr.msk.f32.mxu0 %vm46_vm0, %v27_v8 }
  0x12   :  { %2849 = vmatmul.mubr.msk.f32.gmra.mxu0 %vm46_vm0, %v28_v9 }
  0x13   :  { %2851 = vmatprep.mubr.msk.f32.mxu0 %vm46_vm0, %v29_v10  ;;  %v5990_v10 = vmov 13  }
  0x16   :  { %2852 = vmatmul.mubr.msk.f32.gmra.mxu0 %vm46_vm0, %v30_v11  ;;  %v5998_v11 = vmov 15  }
  0x17   :  { %2854 = vmatprep.mubr.msk.f32.mxu0 %vm46_vm0, %v31_v12 }
  0x1a   :  { %2855 = vmatmul.mubr.msk.f32.gmra.mxu0 %vm46_vm0, %v32_v13 }
  0x1b   :  { %2857 = vmatprep.mubr.msk.f32.mxu0 %vm46_vm0, %v33_v18 }
  0x1e   :  { %2858 = vmatmul.mubr.msk.f32.gmra.mxu0 %vm46_vm0, %v34_v19 }
  0xca   :  { %v2844_v21 = vpop.f32.mrf.mxu0 }
  0xcb   :  { %v3221_v22 = vadd.f32 %v2844_v21, %v2776_v20 }
  0xcc   :  { %v149_v23 = vpop.f32.mrf.mxu0 }
  0xcd   :  { %6116 = vst [vmem:[#allocation2_spill] sm:$0xff] %v3221_v22  ;;  %v3223_v24 = vadd.f32 %v2776_v20, %v149_v23  ;;  %v5987_v28 = vmax.f32 %v3221_v22, 0.0  ;;  %v6178_v22 = vmov 15  }
  0xce   :  { %v2847_v25 = vpop.f32.mrf.mxu0 }
  0xcf   :  { %6117 = vst [vmem:[#allocation3_spill] sm:$0xff] %v3223_v24  ;;  %v5986_v26 = vmax.f32 %v3223_v24, 0.0  ;;  %v3226_v27 = vadd.f32 %v2847_v25, %v2776_v20 }
  0xd0   :  { %v159_v29 = vpop.f32.mrf.mxu0 }
  0xd1   :  { %6118 = vst [vmem:[#allocation4_spill] sm:$0xff] %v3226_v27  ;;  %2868 = vmatprep.mubr.msk.f32.mxu1 %vm46_vm0, %v5986_v26  ;;  %v3232_v30 = vadd.f32 %v2776_v20, %v159_v29  ;;  %v5985_v31 = vmax.f32 %v3226_v27, 0.0 }
  0xd2   :  { %2869 = vmatmul.mubr.msk.f32.vlgmr.msra.gmra.mxu1 %vm46_vm0, %v5987_v28  ;;  %v2850_v32 = vpop.f32.mrf.mxu0 }
  0xd3   :  { %6119 = vst [vmem:[#allocation5_spill] sm:$0xff] %v3232_v30  ;;  %v5984_v33 = vmax.f32 %v3232_v30, 0.0  ;;  %v3239_v34 = vadd.f32 %v2850_v32, %v2776_v20  ;;  %v3609_v30 = vld [vmem:[%s5974_s1 + $0x90] sm:$0xff] }
  0xd4   :  { %v169_v35 = vpop.f32.mrf.mxu0 }
  0xd5   :  { %6120 = vst [vmem:[#allocation6_spill] sm:$0xff] %v3239_v34  ;;  %2871 = vmatprep.mubr.msk.f32.mxu1 %vm46_vm0, %v5984_v33  ;;  %v3244_v36 = vadd.f32 %v2776_v20, %v169_v35  ;;  %v5983_v37 = vmax.f32 %v3239_v34, 0.0 }
  0xd6   :  { %2872 = vmatmul.mubr.msk.f32.gmra.mxu1 %vm46_vm0, %v5985_v31  ;;  %v2853_v38 = vpop.f32.mrf.mxu0 }
  0xd7   :  { %6121 = vst [vmem:[#allocation7_spill] sm:$0xff] %v3244_v36  ;;  %v5982_v39 = vmax.f32 %v3244_v36, 0.0  ;;  %v3251_v40 = vadd.f32 %v2853_v38, %v2776_v20  ;;  %v3603_v36 = vld [vmem:[%s5974_s1 + $0xa0] sm:$0xff] }
  0xd8   :  { %v179_v41 = vpop.f32.mrf.mxu0 }
  0xd9   :  { %6122 = vst [vmem:[#allocation8_spill] sm:$0xff] %v3251_v40  ;;  %2874 = vmatprep.mubr.msk.f32.mxu1 %vm46_vm0, %v5982_v39  ;;  %v3256_v42 = vadd.f32 %v2776_v20, %v179_v41  ;;  %v5981_v43 = vmax.f32 %v3251_v40, 0.0  ;;  %v6175_v40 = vmov 5  }
  0xda   :  { %2875 = vmatmul.mubr.msk.f32.gmra.mxu1 %vm46_vm0, %v5983_v37  ;;  %v2856_v44 = vpop.f32.mrf.mxu0 }
  0xdb   :  { %6123 = vst [vmem:[#allocation9_spill] sm:$0xff] %v3256_v42  ;;  %v5980_v45 = vmax.f32 %v3256_v42, 0.0  ;;  %v3263_v46 = vadd.f32 %v2856_v44, %v2776_v20  ;;  %v6174_v42 = vmov 13  }
  0xdc   :  { %v189_v47 = vpop.f32.mrf.mxu0 }
  0xdd   :  { %6124 = vst [vmem:[#allocation10_spill] sm:$0xff] %v3263_v46  ;;  %2877 = vmatprep.mubr.msk.f32.mxu1 %vm46_vm0, %v5980_v45  ;;  %v3268_v48 = vadd.f32 %v2776_v20, %v189_v47  ;;  %v5978_v49 = vmax.f32 %v3263_v46, 0.0 }
  0xde   :  { %2878 = vmatmul.mubr.msk.f32.gmra.mxu1 %vm46_vm0, %v5981_v43  ;;  %v2859_v53 = vpop.f32.mrf.mxu0 }
  0xdf   :  { %6125 = vst [vmem:[#allocation11_spill] sm:$0xff] %v3268_v48  ;;  %v5979_v50 = vmax.f32 %v3268_v48, 0.0  ;;  %v3283_v54 = vadd.f32 %v2859_v53, %v2776_v20  ;;  %v3594_v48 = vld [vmem:[%s5974_s1 + $0x80] sm:$0xff] }
  0xe0   :  { %v199_v55 = vpop.f32.mrf.mxu0  ;;  %v609_v34 = vrot.slane %v3594_v48, 1 }
  0xe1   :  { %2880 = vmatprep.mubr.msk.f32.mxu1 %vm46_vm0, %v5979_v50  ;;  %6126 = vst [vmem:[#allocation12_spill] sm:$0xff] %v3283_v54  ;;  %v3285_v56 = vadd.f32 %v2776_v20, %v199_v55  ;;  %v5976_v57 = vmax.f32 %v3283_v54, 0.0  ;;  %v6167_v54 = vmov 1  }
  0xe2   :  { %2881 = vmatmul.mubr.msk.f32.gmra.mxu1 %vm46_vm0, %v5978_v49 }
  0xe3   :  { %6127 = vst [vmem:[#allocation13_spill] sm:$0xff] %v3285_v56  ;;  %v5977_v58 = vmax.f32 %v3285_v56, 0.0  ;;  %v6170_v56 = vmov 11  }
  0xe5   :  { %2883 = vmatprep.mubr.msk.f32.mxu1 %vm46_vm0, %v5977_v58 }
  0xe6   :  { %2884 = vmatmul.mubr.msk.f32.gmra.mxu1 %vm46_vm0, %v5976_v57 }
 0x192   :  { %v2870_v60 = vpop.f32.mrf.mxu1 }
 0x193   :  { %v3301_v61 = vadd.f32 %v2870_v60, %v3298_v59 }
 0x194   :  { %v333_v8 = vpop.f32.mrf.mxu1 }
 0x195   :  { %584 = vperm.xlu1 %2905, %v3301_v61   ;;  %463 = vperm.xlu0 %2904, %v3301_v61   ;;  %v3326_v9 = vadd.f32 %v3298_v59, %v333_v8 }
 0x196   :  { %v2873_v12 = vpop.f32.mrf.mxu1 }
 0x197   :  { %v3357_v13 = vadd.f32 %v2873_v12, %v3298_v59 }
 0x198   :  { %v343_v16 = vpop.f32.mrf.mxu1 }
 0x199   :  { %2907 = vset.pattern.permute.xlu1 %v6004_v62  ;;  %2906 = vset.pattern.permute.xlu0 %v6000_v63  ;;  %v3403_v19 = vadd.f32 %v3298_v59, %v343_v16 }
 0x19a   :  { %752 = vperm.xlu1 %2907, %v3301_v61   ;;  %668 = vperm.xlu0 %2906, %v3301_v61   ;;  %v2876_v17 = vpop.f32.mrf.mxu1 }
 0x19b   :  { %v3384_v18 = vadd.f32 %v2876_v17, %v3298_v59 }
 0x19c   :  { %v353_v20 = vpop.f32.mrf.mxu1 }
 0x19d   :  { %v3414_v21 = vadd.f32 %v3298_v59, %v353_v20 }
 0x19e   :  { %2909 = vset.pattern.permute.xlu1 %v6008_v0  ;;  %2908 = vset.pattern.permute.xlu0 %v6002_v1  ;;  %v2879_v55 = vpop.f32.mrf.mxu1 }
 0x19f   :  { %920 = vperm.xlu1 %2909, %v3301_v61   ;;  %836 = vperm.xlu0 %2908, %v3301_v61   ;;  %v3465_v12 = vadd.f32 %v2879_v55, %v3298_v59 }
 0x1a0   :  { %v3499_v45 = vpop.f32.mrf.mxu1 }
 0x1a2   :  { %v2882_v37 = vpop.f32.mrf.mxu1 }
 0x1a3   :  { %2911 = vset.pattern.permute.xlu1 %v6017_v2  ;;  %2910 = vset.pattern.permute.xlu0 %v6006_v3  ;;  %v3518_v26 = vadd.f32 %v2882_v37, %v3298_v59 }
 0x1a4   :  { %1088 = vperm.xlu1 %2911, %v3301_v61   ;;  %1004 = vperm.xlu0 %2910, %v3301_v61  }
 0x1a5   :  { %6151 = vst [vmem:[#allocation37_spill] sm:$0xff] %v3518_v26 }
 0x1a8   :  { %2913 = vset.pattern.permute.xlu1 %v6021_v4  ;;  %2912 = vset.pattern.permute.xlu0 %v6010_v5 }
 0x1a9   :  { %1288 = vperm.xlu1 %2913, %v3301_v61   ;;  %1172 = vperm.xlu0 %2912, %v3301_v61  }
 0x1ad   :  { %2915 = vset.pattern.permute.xlu1 %v5992_v6  ;;  %2914 = vset.pattern.permute.xlu0 %v6015_v7 }
 0x1ae   :  { %1456 = vperm.xlu1 %2915, %v3301_v61   ;;  %1372 = vperm.xlu0 %2914, %v3301_v61  }
 0x1b2   :  { %2916 = vset.pattern.permute.xlu1 %v5990_v10  ;;  %2918 = vset.pattern.permute.xlu0 %v5996_v52 }
 0x1b3   :  { %1624 = vperm.xlu1 %2916, %v3301_v61   ;;  %458 = vperm.xlu0 %2918, %v3326_v9  }
 0x1b7   :  { %2917 = vset.pattern.permute.xlu1 %v5998_v11  ;;  %2919 = vset.pattern.permute.xlu0 %v6012_v51 }
 0x1b8   :  { %1792 = vperm.xlu1 %2917, %v3301_v61   ;;  %580 = vperm.xlu0 %2919, %v3326_v9  }
 0x1bc   :  { %2920 = vset.pattern.permute.xlu1 %v6000_v63  ;;  %2921 = vset.pattern.permute.xlu0 %v6004_v62 }
 0x1bd   :  { %664 = vperm.xlu1 %2920, %v3326_v9   ;;  %748 = vperm.xlu0 %2921, %v3326_v9  }
 0x1c1   :  { %2922 = vset.pattern.permute.xlu1 %v6002_v1  ;;  %2923 = vset.pattern.permute.xlu0 %v6008_v0 }
 0x1c2   :  { %832 = vperm.xlu1 %2922, %v3326_v9   ;;  %916 = vperm.xlu0 %2923, %v3326_v9  }
 0x1c6   :  { %2924 = vset.pattern.permute.xlu1 %v6006_v3  ;;  %2925 = vset.pattern.permute.xlu0 %v6017_v2 }
 0x1c7   :  { %1000 = vperm.xlu1 %2924, %v3326_v9   ;;  %1084 = vperm.xlu0 %2925, %v3326_v9  }
 0x1cb   :  { %2926 = vset.pattern.permute.xlu1 %v6010_v5  ;;  %2927 = vset.pattern.permute.xlu0 %v6021_v4 }
 0x1cc   :  { %1168 = vperm.xlu1 %2926, %v3326_v9   ;;  %1284 = vperm.xlu0 %2927, %v3326_v9  }
 0x1d0   :  { %2928 = vset.pattern.permute.xlu1 %v6015_v7  ;;  %2929 = vset.pattern.permute.xlu0 %v5992_v6 }
 0x1d1   :  { %1368 = vperm.xlu1 %2928, %v3326_v9   ;;  %1452 = vperm.xlu0 %2929, %v3326_v9  }
 0x1d5   :  { %2930 = vset.pattern.permute.xlu1 %v5988_v14  ;;  %2933 = vset.pattern.permute.xlu0 %v6012_v51 }
 0x1d6   :  { %1536 = vperm.xlu1 %2930, %v3326_v9   ;;  %592 = vperm.xlu0 %2933, %v3357_v13  }
 0x1da   :  { %2931 = vset.pattern.permute.xlu1 %v5994_v15  ;;  %2935 = vset.pattern.permute.xlu0 %v6004_v62 }
 0x1db   :  { %1704 = vperm.xlu1 %2931, %v3326_v9   ;;  %760 = vperm.xlu0 %2935, %v3357_v13  }
 0x1df   :  { %2932 = vset.pattern.permute.xlu1 %v5996_v52  ;;  %2937 = vset.pattern.permute.xlu0 %v6008_v0 }
 0x1e0   :  { %473 = vperm.xlu1 %2932, %v3357_v13   ;;  %928 = vperm.xlu0 %2937, %v3357_v13  }
 0x1e4   :  { %2934 = vset.pattern.permute.xlu1 %v6000_v63  ;;  %2939 = vset.pattern.permute.xlu0 %v6017_v2 }
 0x1e5   :  { %676 = vperm.xlu1 %2934, %v3357_v13   ;;  %1096 = vperm.xlu0 %2939, %v3357_v13  }
 0x1e9   :  { %2936 = vset.pattern.permute.xlu1 %v6002_v1  ;;  %2941 = vset.pattern.permute.xlu0 %v6021_v4 }
 0x1ea   :  { %844 = vperm.xlu1 %2936, %v3357_v13   ;;  %1296 = vperm.xlu0 %2941, %v3357_v13  }
 0x1ee   :  { %2938 = vset.pattern.permute.xlu1 %v6006_v3  ;;  %2943 = vset.pattern.permute.xlu0 %v5992_v6 }
 0x1ef   :  { %1012 = vperm.xlu1 %2938, %v3357_v13   ;;  %1464 = vperm.xlu0 %2943, %v3357_v13  }
 0x1f3   :  { %2940 = vset.pattern.permute.xlu1 %v6010_v5  ;;  %2962 = vset.pattern.permute.xlu0 %v5996_v52 }
 0x1f4   :  { %1180 = vperm.xlu1 %2940, %v3357_v13   ;;  %1878 = vperm.xlu0 %2962, %v3384_v18  }
 0x1f8   :  { %2942 = vset.pattern.permute.xlu1 %v6015_v7  ;;  %2964 = vset.pattern.permute.xlu0 %v6000_v63 }
 0x1f9   :  { %1380 = vperm.xlu1 %2942, %v3357_v13   ;;  %1924 = vperm.xlu0 %2964, %v3384_v18  }
 0x1fd   :  { %2944 = vset.pattern.permute.xlu1 %v5988_v14  ;;  %2966 = vset.pattern.permute.xlu0 %v6002_v1 }
 0x1fe   :  { %1548 = vperm.xlu1 %2944, %v3357_v13   ;;  %1972 = vperm.xlu0 %2966, %v3384_v18  }
 0x202   :  { %2945 = vset.pattern.permute.xlu1 %v5994_v15  ;;  %2968 = vset.pattern.permute.xlu0 %v6006_v3 }
 0x203   :  { %1716 = vperm.xlu1 %2945, %v3357_v13   ;;  %2020 = vperm.xlu0 %2968, %v3384_v18  }
 0x207   :  { %2946 = vset.pattern.permute.xlu1 %v5996_v52  ;;  %2970 = vset.pattern.permute.xlu0 %v6010_v5 }
 0x208   :  { %468 = vperm.xlu1 %2946, %v3403_v19   ;;  %2068 = vperm.xlu0 %2970, %v3384_v18  }
 0x20c   :  { %2947 = vset.pattern.permute.xlu1 %v6012_v51  ;;  %2972 = vset.pattern.permute.xlu0 %v6015_v7 }
 0x20d   :  { %588 = vperm.xlu1 %2947, %v3403_v19   ;;  %2116 = vperm.xlu0 %2972, %v3384_v18  }
 0x210   :  { %v3416_v23 = vpop.permute.xlu1 %584  ;;  %v3418_v25 = vpop.permute.xlu0 %463 }
 0x211   :  { %6128 = vst [vmem:[#allocation14_spill] sm:$0xff] %v3418_v25  ;;  %2948 = vset.pattern.permute.xlu1 %v6000_v63  ;;  %2977 = vset.pattern.permute.xlu0 %v6012_v51 }
 0x212   :  { %672 = vperm.xlu1 %2948, %v3403_v19   ;;  %1896 = vperm.xlu0 %2977, %v3414_v21  }
 0x215   :  { %v3424_v29 = vpop.permute.xlu1 %752  ;;  %v3426_v32 = vpop.permute.xlu0 %668 }
 0x216   :  { %6129 = vst [vmem:[#allocation15_spill] sm:$0xff] %v3424_v29  ;;  %6130 = vst [vmem:[#allocation16_spill] sm:$0xff] %v3426_v32  ;;  %2949 = vset.pattern.permute.xlu1 %v6004_v62  ;;  %2979 = vset.pattern.permute.xlu0 %v6004_v62 }
 0x217   :  { %756 = vperm.xlu1 %2949, %v3403_v19   ;;  %1944 = vperm.xlu0 %2979, %v3414_v21  }
 0x21a   :  { %v3432_v35 = vpop.permute.xlu1 %920  ;;  %v3434_v38 = vpop.permute.xlu0 %836 }
 0x21b   :  { %6131 = vst [vmem:[#allocation17_spill] sm:$0xff] %v3432_v35  ;;  %6132 = vst [vmem:[#allocation18_spill] sm:$0xff] %v3434_v38  ;;  %2950 = vset.pattern.permute.xlu1 %v6002_v1  ;;  %2981 = vset.pattern.permute.xlu0 %v6008_v0  ;;  %v6201_v38 = vmov 10  }
 0x21c   :  { %840 = vperm.xlu1 %2950, %v3403_v19   ;;  %1992 = vperm.xlu0 %2981, %v3414_v21  }
 0x21f   :  { %v3440_v41 = vpop.permute.xlu1 %1088  ;;  %v3442_v44 = vpop.permute.xlu0 %1004 }
 0x220   :  { %6133 = vst [vmem:[#allocation19_spill] sm:$0xff] %v3440_v41  ;;  %6134 = vst [vmem:[#allocation20_spill] sm:$0xff] %v3442_v44  ;;  %2951 = vset.pattern.permute.xlu1 %v6008_v0  ;;  %2983 = vset.pattern.permute.xlu0 %v6017_v2  ;;  %v1029_v41 = vrot.slane %v3594_v48, 6 }
 0x221   :  { %924 = vperm.xlu1 %2951, %v3403_v19   ;;  %2040 = vperm.xlu0 %2983, %v3414_v21  }
 0x224   :  { %v3448_v47 = vpop.permute.xlu1 %1288  ;;  %v3450_v53 = vpop.permute.xlu0 %1172 }
 0x225   :  { %6135 = vst [vmem:[#allocation21_spill] sm:$0xff] %v3448_v47  ;;  %6136 = vst [vmem:[#allocation22_spill] sm:$0xff] %v3450_v53  ;;  %2952 = vset.pattern.permute.xlu1 %v6006_v3  ;;  %2985 = vset.pattern.permute.xlu0 %v6021_v4 }
 0x226   :  { %1008 = vperm.xlu1 %2952, %v3403_v19   ;;  %2088 = vperm.xlu0 %2985, %v3414_v21  }
 0x229   :  { %v3456_v60 = vpop.permute.xlu1 %1456  ;;  %v3458_v8 = vpop.permute.xlu0 %1372 }
 0x22a   :  { %6137 = vst [vmem:[#allocation23_spill] sm:$0xff] %v3456_v60  ;;  %6138 = vst [vmem:[#allocation24_spill] sm:$0xff] %v3458_v8  ;;  %2953 = vset.pattern.permute.xlu1 %v6017_v2  ;;  %2987 = vset.pattern.permute.xlu0 %v5992_v6  ;;  %v3680_v60 = vld [vmem:[%s5974_s1 + $0xf0] sm:$0xff] }
 0x22b   :  { %1092 = vperm.xlu1 %2953, %v3403_v19   ;;  %2136 = vperm.xlu0 %2987, %v3414_v21   ;;  %v621_v47 = vrot.slane %v3680_v60, 2 }
 0x22e   :  { %v3467_v16 = vpop.permute.xlu1 %1624  ;;  %v3469_v17 = vpop.permute.xlu0 %458 }
 0x22f   :  { %6139 = vst [vmem:[#allocation25_spill] sm:$0xff] %v3467_v16  ;;  %6140 = vst [vmem:[#allocation26_spill] sm:$0xff] %v3469_v17  ;;  %2954 = vset.pattern.permute.xlu1 %v6010_v5  ;;  %2991 = vset.pattern.permute.xlu0 %v6012_v51 }
 0x230   :  { %1176 = vperm.xlu1 %2954, %v3403_v19   ;;  %1908 = vperm.xlu0 %2991, %v3465_v12  }
 0x233   :  { %v3475_v20 = vpop.permute.xlu1 %1792  ;;  %v3477_v57 = vpop.permute.xlu0 %580 }
 0x234   :  { %6141 = vst [vmem:[#allocation27_spill] sm:$0xff] %v3475_v20  ;;  %6142 = vst [vmem:[#allocation28_spill] sm:$0xff] %v3477_v57  ;;  %2955 = vset.pattern.permute.xlu1 %v6021_v4  ;;  %2993 = vset.pattern.permute.xlu0 %v6004_v62 }
 0x235   :  { %1292 = vperm.xlu1 %2955, %v3403_v19   ;;  %1956 = vperm.xlu0 %2993, %v3465_v12  }
 0x238   :  { %v3483_v55 = vpop.permute.xlu1 %664  ;;  %v3485_v58 = vpop.permute.xlu0 %748 }
 0x239   :  { %6143 = vst [vmem:[#allocation29_spill] sm:$0xff] %v3483_v55  ;;  %6144 = vst [vmem:[#allocation30_spill] sm:$0xff] %v3485_v58  ;;  %2956 = vset.pattern.permute.xlu1 %v6015_v7  ;;  %2995 = vset.pattern.permute.xlu0 %v6008_v0 }
 0x23a   :  { %1376 = vperm.xlu1 %2956, %v3403_v19   ;;  %2004 = vperm.xlu0 %2995, %v3465_v12  }
 0x23d   :  { %v3491_v49 = vpop.permute.xlu1 %832  ;;  %v3493_v50 = vpop.permute.xlu0 %916 }
 0x23e   :  { %6145 = vst [vmem:[#allocation31_spill] sm:$0xff] %v3491_v49  ;;  %6146 = vst [vmem:[#allocation32_spill] sm:$0xff] %v3493_v50  ;;  %2957 = vset.pattern.permute.xlu1 %v5992_v6  ;;  %2997 = vset.pattern.permute.xlu0 %v6017_v2  ;;  %v948_v50 = vrot.slane %v3603_v36, 3  ;;  %v864_v49 = vrot.slane %v3603_v36, 2 }
 0x23f   :  { %1460 = vperm.xlu1 %2957, %v3403_v19   ;;  %2052 = vperm.xlu0 %2997, %v3465_v12  }
 0x242   :  { %v3501_v43 = vpop.permute.xlu1 %1000  ;;  %v3503_v39 = vpop.permute.xlu0 %1084 }
 0x243   :  { %6147 = vst [vmem:[#allocation33_spill] sm:$0xff] %v3501_v43  ;;  %6148 = vst [vmem:[#allocation34_spill] sm:$0xff] %v3503_v39  ;;  %2958 = vset.pattern.permute.xlu1 %v5988_v14  ;;  %2999 = vset.pattern.permute.xlu0 %v6021_v4 }
 0x244   :  { %1544 = vperm.xlu1 %2958, %v3403_v19   ;;  %2100 = vperm.xlu0 %2999, %v3465_v12  }
 0x247   :  { %v3509_v33 = vpop.permute.xlu1 %1168  ;;  %v3511_v31 = vpop.permute.xlu0 %1284 }
 0x248   :  { %6149 = vst [vmem:[#allocation35_spill] sm:$0xff] %v3509_v33  ;;  %6150 = vst [vmem:[#allocation36_spill] sm:$0xff] %v3511_v31  ;;  %2959 = vset.pattern.permute.xlu1 %v5990_v10  ;;  %3001 = vset.pattern.permute.xlu0 %v5992_v6 }
 0x249   :  { %1628 = vperm.xlu1 %2959, %v3403_v19   ;;  %2148 = vperm.xlu0 %3001, %v3465_v12  }
 0x24c   :  { %v3520_v28 = vpop.permute.xlu1 %1368  ;;  %v3522_v14 = vpop.permute.xlu0 %1452 }
 0x24d   :  { %6152 = vst [vmem:[#allocation38_spill] sm:$0xff] %v3520_v28  ;;  %6153 = vst [vmem:[#allocation39_spill] sm:$0xff] %v3522_v14  ;;  %2960 = vset.pattern.permute.xlu1 %v5994_v15  ;;  %3020 = vset.pattern.permute.xlu0 %v5996_v52 }
 0x24e   :  { %1712 = vperm.xlu1 %2960, %v3403_v19   ;;  %2262 = vperm.xlu0 %3020, %v3518_v26  }
 0x251   :  { %v3528_v10 = vpop.permute.xlu1 %1536  ;;  %v3530_v6 = vpop.permute.xlu0 %592 }
 0x252   :  { %6154 = vst [vmem:[#allocation40_spill] sm:$0xff] %v3528_v10  ;;  %6155 = vst [vmem:[#allocation41_spill] sm:$0xff] %v3530_v6  ;;  %2961 = vset.pattern.permute.xlu1 %v5998_v11  ;;  %3022 = vset.pattern.permute.xlu0 %v6000_v63  ;;  %v611_v10 = vrot.slane %v3603_v36, 7 }
 0x253   :  { %1796 = vperm.xlu1 %2961, %v3403_v19   ;;  %2308 = vperm.xlu0 %3022, %v3518_v26  }
 0x256   :  { %v3536_v37 = vpop.permute.xlu1 %1704  ;;  %v3538_v15 = vpop.permute.xlu0 %760 }
 0x257   :  { %6156 = vst [vmem:[#allocation42_spill] sm:$0xff] %v3536_v37  ;;  %6157 = vst [vmem:[#allocation43_spill] sm:$0xff] %v3538_v15  ;;  %2963 = vset.pattern.permute.xlu1 %v6012_v51  ;;  %3024 = vset.pattern.permute.xlu0 %v6002_v1  ;;  %v373_v1 = vpop.f32.mrf.mxu1  ;;  %v6179_v37 = vmov 7  }
 0x258   :  { %1900 = vperm.xlu1 %2963, %v3384_v18   ;;  %2356 = vperm.xlu0 %3024, %v3518_v26  }
 0x259   :  { %v2885_v31 = vpop.f32.mrf.mxu1 }
 0x25b   :  { %v3544_v52 = vpop.permute.xlu1 %473  ;;  %v3546_v11 = vpop.permute.xlu0 %928 }
 0x25c   :  { %6158 = vst [vmem:[#allocation44_spill] sm:$0xff] %v3544_v52  ;;  %6159 = vst [vmem:[#allocation45_spill] sm:$0xff] %v3546_v11  ;;  %2965 = vset.pattern.permute.xlu1 %v6004_v62  ;;  %3026 = vset.pattern.permute.xlu0 %v6006_v3  ;;  %v6186_v11 = vmov 2  }
 0x25d   :  { %1948 = vperm.xlu1 %2965, %v3384_v18   ;;  %2404 = vperm.xlu0 %3026, %v3518_v26  }
 0x260   :  { %v3552_v19 = vpop.permute.xlu1 %676  ;;  %v3554_v63 = vpop.permute.xlu0 %1096 }
 0x261   :  { %6160 = vst [vmem:[#allocation46_spill] sm:$0xff] %v3552_v19  ;;  %6161 = vst [vmem:[#allocation47_spill] sm:$0xff] %v3554_v63  ;;  %2967 = vset.pattern.permute.xlu1 %v6008_v0  ;;  %3028 = vset.pattern.permute.xlu0 %v6010_v5  ;;  %v3569_v0 = vadd.f32 %v3298_v59, %v373_v1  ;;  %v6171_v1 = vmov 3   ;;  %v531_v63 = vrot.slane %v3603_v36, 6  ;;  %v1030_v19 = vrot.slane %v3609_v30, 5 }
 0x262   :  { %1996 = vperm.xlu1 %2967, %v3384_v18   ;;  %2452 = vperm.xlu0 %3028, %v3518_v26  }
 0x263   :  { %6164 = vst [vmem:[#allocation50_spill] sm:$0xff] %v3569_v0 }
 0x265   :  { %v3560_v62 = vpop.permute.xlu1 %844  ;;  %v3562_v3 = vpop.permute.xlu0 %1296 }
 0x266   :  { %6162 = vst [vmem:[#allocation48_spill] sm:$0xff] %v3560_v62  ;;  %6163 = vst [vmem:[#allocation49_spill] sm:$0xff] %v3562_v3  ;;  %2969 = vset.pattern.permute.xlu1 %v6017_v2  ;;  %3030 = vset.pattern.permute.xlu0 %v6015_v7  ;;  %v3631_v3 = vld [vmem:[%s5974_s1 + $0xc0] sm:$0xff] }
 0x267   :  { %2044 = vperm.xlu1 %2969, %v3384_v18   ;;  %2500 = vperm.xlu0 %3030, %v3518_v26  }
 0x26a   :  { %v3571_v5 = vpop.permute.xlu1 %1012  ;;  %v3573_v51 = vpop.permute.xlu0 %1464 }
 0x26b   :  { %6165 = vst [vmem:[#allocation51_spill] sm:$0xff] %v3571_v5  ;;  %6166 = vst [vmem:[#allocation52_spill] sm:$0xff] %v3573_v51  ;;  %2971 = vset.pattern.permute.xlu1 %v6021_v4  ;;  %3032 = vset.pattern.permute.xlu0 %v6167_v54  ;;  %v3620_v51 = vld [vmem:[%s5974_s1 + $0xb0] sm:$0xff]  ;;  %v3662_v5 = vld [vmem:[%s5974_s1 + $0xe0] sm:$0xff] }
 0x26c   :  { %2092 = vperm.xlu1 %2971, %v3384_v18   ;;  %2280 = vperm.xlu0 %3032, %v3569_v0   ;;  %v613_v14 = vrot.slane %v3620_v51, 6  ;;  %v697_v58 = vrot.slane %v3620_v51, 7 }
 0x26f   :  { %v3579_v7 = vpop.permute.xlu1 %1180  ;;  %v3581_v2 = vpop.permute.xlu0 %1878 }
 0x270   :  { %6168 = vst [vmem:[#allocation53_spill] sm:$0xff] %v3579_v7  ;;  %6169 = vst [vmem:[#allocation54_spill] sm:$0xff] %v3581_v2  ;;  %2973 = vset.pattern.permute.xlu1 %v6170_v56  ;;  %3034 = vset.pattern.permute.xlu0 %v6171_v1 }
 0x271   :  { %2140 = vperm.xlu1 %2973, %v3384_v18   ;;  %2328 = vperm.xlu0 %3034, %v3569_v0  }
 0x274   :  { %v3587_v46 = vpop.permute.xlu1 %1380  ;;  %v3589_v4 = vpop.permute.xlu0 %1924 }
 0x275   :  { %6172 = vst [vmem:[#allocation55_spill] sm:$0xff] %v3587_v46  ;;  %6173 = vst [vmem:[#allocation56_spill] sm:$0xff] %v3589_v4  ;;  %2974 = vset.pattern.permute.xlu1 %v6174_v42  ;;  %3036 = vset.pattern.permute.xlu0 %v6175_v40  ;;  %v529_v46 = vrot.slane %v3609_v30, 7  ;;  %v6182_v4 = vmov 0  }
 0x276   :  { %2188 = vperm.xlu1 %2974, %v3384_v18   ;;  %2376 = vperm.xlu0 %3036, %v3569_v0  }
 0x277   :  { %v530_v2 = vsel %vm509_vm1, %v529_v46, %v3594_v48 }
 0x278   :  { %v532_v20 = vsel %vm512_vm2, %v531_v63, %v530_v2  ;;  %v535_v63 = vrot.slane %v3631_v3, 4 }
 0x279   :  { %v3611_v27 = vpop.permute.xlu1 %1548  ;;  %v3613_v24 = vpop.permute.xlu0 %1972 }
 0x27a   :  { %6176 = vst [vmem:[#allocation57_spill] sm:$0xff] %v3611_v27  ;;  %6177 = vst [vmem:[#allocation58_spill] sm:$0xff] %v3613_v24  ;;  %2975 = vset.pattern.permute.xlu1 %v6178_v22  ;;  %3038 = vset.pattern.permute.xlu0 %v6179_v37  ;;  %v610_v27 = vsel %vm509_vm1, %v3609_v30, %v609_v34  ;;  %v6183_v34 = vmov 9  }
 0x27b   :  { %2236 = vperm.xlu1 %2975, %v3384_v18   ;;  %2424 = vperm.xlu0 %3038, %v3569_v0   ;;  %v612_v28 = vsel %vm512_vm2, %v611_v10, %v610_v27  ;;  %v615_v27 = vrot.slane %v3631_v3, 5 }
 0x27c   :  { %v614_v10 = vsel %vm515_vm3, %v613_v14, %v612_v28  ;;  %v777_v14 = vrot.slane %v3594_v48, 3 }
 0x27d   :  { %v616_v28 = vsel %vm518_vm4, %v615_v27, %v614_v10  ;;  %v619_v27 = vrot.slane %v3662_v5, 3 }
 0x27e   :  { %v3634_v24 = vpop.permute.xlu1 %1716  ;;  %v3636_v7 = vpop.permute.xlu0 %2020 }
 0x27f   :  { %6180 = vst [vmem:[#allocation59_spill] sm:$0xff] %v3634_v24  ;;  %6181 = vst [vmem:[#allocation60_spill] sm:$0xff] %v3636_v7  ;;  %2976 = vset.pattern.permute.xlu1 %v6182_v4  ;;  %3040 = vset.pattern.permute.xlu0 %v6183_v34  ;;  %v3649_v24 = vld [vmem:[%s5974_s1 + $0xd0] sm:$0xff]  ;;  %v533_v7 = vrot.slane %v3620_v51, 5 }
 0x280   :  { %1873 = vperm.xlu1 %2976, %v3414_v21   ;;  %2472 = vperm.xlu0 %3040, %v3569_v0   ;;  %v617_v33 = vrot.slane %v3649_v24, 4  ;;  %v537_v8 = vrot.slane %v3649_v24, 3 }
 0x281   :  { %v534_v2 = vsel %vm515_vm3, %v533_v7, %v532_v20 }
 0x282   :  { %v618_v10 = vsel %vm521_vm5, %v617_v33, %v616_v28  ;;  %v536_v39 = vsel %vm518_vm4, %v535_v63, %v534_v2  ;;  %v539_v28 = vrot.slane %v3662_v5, 2  ;;  %v693_v2 = vrot.slane %v3594_v48, 2 }
 0x283   :  { %v3655_v46 = vpop.permute.xlu1 %468  ;;  %v3657_v16 = vpop.permute.xlu0 %2068  ;;  %v620_v33 = vsel %vm524_vm6, %v619_v27, %v618_v10  ;;  %v538_v63 = vsel %vm521_vm5, %v537_v8, %v536_v39  ;;  %v783_v27 = vrot.slane %v3631_v3, 7  ;;  %v945_v10 = vrot.slane %v3594_v48, 5 }
 0x284   :  { %6184 = vst [vmem:[#allocation61_spill] sm:$0xff] %v3655_v46  ;;  %6185 = vst [vmem:[#allocation62_spill] sm:$0xff] %v3657_v16  ;;  %2978 = vset.pattern.permute.xlu1 %v6186_v11  ;;  %3042 = vset.pattern.permute.xlu0 %v6170_v56  ;;  %v778_v46 = vrot.slane %v3609_v30, 2  ;;  %v3675_v16 = vadd.f32 %v2885_v31, %v3298_v59  ;;  %v780_v31 = vrot.slane %v3603_v36, 1  ;;  %v6190_v59 = vmov 4  }
 0x285   :  { %1920 = vperm.xlu1 %2978, %v3414_v21   ;;  %2520 = vperm.xlu0 %3042, %v3569_v0   ;;  %v3709_v43 = vsel %vm527_vm7, %v621_v47, %v620_v33  ;;  %v946_v39 = vrot.slane %v3609_v30, 4  ;;  %v6194_v8 = vmov 6   ;;  %v540_v53 = vsel %vm524_vm6, %v539_v28, %v538_v63 }
 0x286   :  { %6187 = vst [vmem:[#allocation63_spill] sm:$0xff] %v3675_v16  ;;  %v779_v62 = vsel %vm509_vm1, %v778_v46, %v777_v14  ;;  %6193 = vst [vmem:[#allocation68_spill] sm:$0xff] %v3709_v43  ;;  %v787_v33 = vrot.slane %v3662_v5, 5  ;;  %v1113_v28 = vrot.slane %v3594_v48, 7  ;;  %v1114_v63 = vrot.slane %v3609_v30, 6 }
 0x287   :  { %v781_v15 = vsel %vm512_vm2, %v780_v31, %v779_v62  ;;  %v785_v62 = vrot.slane %v3649_v24, 6  ;;  %v861_v31 = vrot.slane %v3594_v48, 4  ;;  %v699_v48 = vrot.slane %v3631_v3, 6 }
 0x288   :  { %v3685_v7 = vpop.permute.xlu1 %588  ;;  %v3687_v20 = vpop.permute.xlu0 %2116  ;;  %v782_v47 = vsel %vm515_vm3, %v3620_v51, %v781_v15  ;;  %v947_v15 = vsel %vm509_vm1, %v946_v39, %v945_v10  ;;  %v1116_v39 = vrot.slane %v3603_v36, 5  ;;  %v1115_v52 = vsel %vm509_vm1, %v1114_v63, %v1113_v28 }
 0x289   :  { %6188 = vst [vmem:[#allocation64_spill] sm:$0xff] %v3685_v7  ;;  %6189 = vst [vmem:[#allocation65_spill] sm:$0xff] %v3687_v20  ;;  %2980 = vset.pattern.permute.xlu1 %v6190_v59  ;;  %3044 = vset.pattern.permute.xlu0 %v6167_v54  ;;  %v694_v7 = vrot.slane %v3609_v30, 1  ;;  %v541_v20 = vrot.slane %v3680_v60, 1  ;;  %v784_v44 = vsel %vm518_vm4, %v783_v27, %v782_v47  ;;  %v950_v27 = vrot.slane %v3620_v51, 2 }
 0x28a   :  { %1968 = vperm.xlu1 %2980, %v3414_v21   ;;  %2292 = vperm.xlu0 %3044, %v3675_v16   ;;  %v1032_v47 = vrot.slane %v3603_v36, 4  ;;  %v1117_v55 = vsel %vm512_vm2, %v1116_v39, %v1115_v52  ;;  %v1036_v39 = vrot.slane %v3631_v3, 2 }
 0x28b   :  { %v3732_v6 = vsel %vm527_vm7, %v541_v20, %v540_v53  ;;  %v3748_v53 = vld [vmem:[%s5974_s1 + $0x88] sm:$0xff]  ;;  %v6198_v20 = vmov 8  }
 0x28c   :  { %6195 = vst [vmem:[#allocation69_spill] sm:$0xff] %v3732_v6  ;;  %v1313_v28 = vrot.slane %v3748_v53, 1 }
 0x28d   :  { %v3704_v46 = vpop.permute.xlu1 %672  ;;  %v3706_v14 = vpop.permute.xlu0 %1896 }
 0x28e   :  { %6191 = vst [vmem:[#allocation66_spill] sm:$0xff] %v3704_v46  ;;  %6192 = vst [vmem:[#allocation67_spill] sm:$0xff] %v3706_v14  ;;  %2982 = vset.pattern.permute.xlu1 %v6194_v8  ;;  %3046 = vset.pattern.permute.xlu0 %v6171_v1  ;;  %v862_v46 = vrot.slane %v3609_v30, 3  ;;  %v695_v14 = vsel %vm509_vm1, %v694_v7, %v693_v2 }
 0x28f   :  { %2016 = vperm.xlu1 %2982, %v3414_v21   ;;  %2340 = vperm.xlu0 %3046, %v3675_v16   ;;  %v696_v10 = vsel %vm512_vm2, %v3603_v36, %v695_v14  ;;  %v786_v14 = vsel %vm521_vm5, %v785_v62, %v784_v44  ;;  %v3769_v36 = vld [vmem:[%s5974_s1 + $0x98] sm:$0xff]  ;;  %v952_v44 = vrot.slane %v3631_v3, 1 }
 0x290   :  { %v863_v30 = vsel %vm509_vm1, %v862_v46, %v861_v31  ;;  %v949_v46 = vsel %vm512_vm2, %v948_v50, %v947_v15  ;;  %v866_v31 = vrot.slane %v3620_v51, 1  ;;  %v3774_v50 = vld [vmem:[%s5974_s1 + $0xa8] sm:$0xff]  ;;  %v703_v15 = vrot.slane %v3662_v5, 4 }
 0x291   :  { %v865_v35 = vsel %vm512_vm2, %v864_v49, %v863_v30  ;;  %v1034_v49 = vrot.slane %v3620_v51, 3  ;;  %v951_v30 = vsel %vm515_vm3, %v950_v27, %v949_v46  ;;  %v1229_v27 = vrot.slane %v3769_v36, 7 }
 0x292   :  { %v3737_v7 = vpop.permute.xlu1 %756  ;;  %v3739_v2 = vpop.permute.xlu0 %1944  ;;  %v788_v52 = vsel %vm524_vm6, %v787_v33, %v786_v14  ;;  %v953_v46 = vsel %vm518_vm4, %v952_v44, %v951_v30  ;;  %v869_v33 = vrot.slane %v3649_v24, 7  ;;  %v3817_v14 = vld [vmem:[%s5974_s1 + $0xc8] sm:$0xff] }
 0x293   :  { %6196 = vst [vmem:[#allocation70_spill] sm:$0xff] %v3737_v7  ;;  %6197 = vst [vmem:[#allocation71_spill] sm:$0xff] %v3739_v2  ;;  %2984 = vset.pattern.permute.xlu1 %v6198_v20  ;;  %3048 = vset.pattern.permute.xlu0 %v6175_v40  ;;  %v1031_v7 = vsel %vm509_vm1, %v1030_v19, %v1029_v41  ;;  %v701_v2 = vrot.slane %v3649_v24, 5  ;;  %v698_v41 = vsel %vm515_vm3, %v697_v58, %v696_v10  ;;  %v3796_v10 = vld [vmem:[%s5974_s1 + $0xb8] sm:$0xff] }
 0x294   :  { %2064 = vperm.xlu1 %2984, %v3414_v21   ;;  %2388 = vperm.xlu0 %3048, %v3675_v16   ;;  %v1118_v19 = vrot.slane %v3620_v51, 4  ;;  %v1033_v17 = vsel %vm512_vm2, %v1032_v47, %v1031_v7  ;;  %v867_v51 = vsel %vm515_vm3, %v866_v31, %v865_v35  ;;  %v1120_v7 = vrot.slane %v3631_v3, 3 }
 0x295   :  { %v1314_v35 = vsel %vm509_vm1, %v3769_v36, %v1313_v28  ;;  %v700_v47 = vsel %vm518_vm4, %v699_v48, %v698_v41  ;;  %v1035_v58 = vsel %vm515_vm3, %v1034_v49, %v1033_v17  ;;  %v1317_v28 = vrot.slane %v3796_v10, 6 }
 0x296   :  { %v1119_v31 = vsel %vm515_vm3, %v1118_v19, %v1117_v55  ;;  %v1231_v48 = vrot.slane %v3774_v50, 6  ;;  %v1122_v17 = vrot.slane %v3649_v24, 2  ;;  %v1038_v55 = vrot.slane %v3649_v24, 1 }
 0x297   :  { %v3781_v62 = vpop.permute.xlu1 %840  ;;  %v3783_v63 = vpop.permute.xlu0 %1992  ;;  %v1230_v19 = vsel %vm509_vm1, %v1229_v27, %v3748_v53  ;;  %v6204_v49 = vmov 12   ;;  %v702_v30 = vsel %vm521_vm5, %v701_v2, %v700_v47  ;;  %v871_v27 = vrot.slane %v3662_v5, 6 }
 0x298   :  { %6199 = vst [vmem:[#allocation72_spill] sm:$0xff] %v3781_v62  ;;  %6200 = vst [vmem:[#allocation73_spill] sm:$0xff] %v3783_v63  ;;  %2986 = vset.pattern.permute.xlu1 %v6201_v38  ;;  %3050 = vset.pattern.permute.xlu0 %v6179_v37  ;;  %v1315_v62 = vrot.slane %v3774_v50, 7  ;;  %v868_v63 = vsel %vm518_vm4, %v3631_v3, %v867_v51  ;;  %v955_v51 = vrot.slane %v3662_v5, 7  ;;  %v1319_v2 = vrot.slane %v3817_v14, 5 }
 0x299   :  { %2112 = vperm.xlu1 %2986, %v3414_v21   ;;  %2436 = vperm.xlu0 %3050, %v3675_v16  }
 0x29a   :  { %v1316_v3 = vsel %vm512_vm2, %v1315_v62, %v1314_v35  ;;  %v954_v62 = vsel %vm521_vm5, %v3649_v24, %v953_v46  ;;  %v3844_v35 = vld [vmem:[%s5974_s1 + $0xd8] sm:$0xff]  ;;  %v704_v24 = vsel %vm524_vm6, %v703_v15, %v702_v30  ;;  %v957_v46 = vrot.slane %v3680_v60, 6 }
 0x29b   :  { %v1318_v47 = vsel %vm515_vm3, %v1317_v28, %v1316_v3  ;;  %v3865_v28 = vld [vmem:[%s5974_s1 + $0xe8] sm:$0xff]  ;;  %v1321_v15 = vrot.slane %v3844_v35, 4 }
 0x29c   :  { %v3821_v41 = vpop.permute.xlu1 %924  ;;  %v3823_v44 = vpop.permute.xlu0 %2040 }
 0x29d   :  { %6202 = vst [vmem:[#allocation74_spill] sm:$0xff] %v3821_v41  ;;  %6203 = vst [vmem:[#allocation75_spill] sm:$0xff] %v3823_v44  ;;  %2988 = vset.pattern.permute.xlu1 %v6204_v49  ;;  %3052 = vset.pattern.permute.xlu0 %v6183_v34  ;;  %v1121_v41 = vsel %vm518_vm4, %v1120_v7, %v1119_v31  ;;  %v1037_v44 = vsel %vm518_vm4, %v1036_v39, %v1035_v58  ;;  %v1233_v7 = vrot.slane %v3796_v10, 5 }
 0x29e   :  { %2160 = vperm.xlu1 %2988, %v3414_v21   ;;  %2484 = vperm.xlu0 %3052, %v3675_v16   ;;  %v870_v58 = vsel %vm521_vm5, %v869_v33, %v868_v63  ;;  %v1124_v39 = vrot.slane %v3662_v5, 1  ;;  %v1232_v31 = vsel %vm512_vm2, %v1231_v48, %v1230_v19  ;;  %v1123_v57 = vsel %vm521_vm5, %v1122_v17, %v1121_v41 }
 0x29f   :  { %v1039_v29 = vsel %vm521_vm5, %v1038_v55, %v1037_v44  ;;  %v956_v63 = vsel %vm524_vm6, %v955_v51, %v954_v62  ;;  %v873_v33 = vrot.slane %v3680_v60, 5  ;;  %v1235_v48 = vrot.slane %v3817_v14, 4  ;;  %v3883_v51 = vld [vmem:[%s5974_s1 + $0xf8] sm:$0xff] }
 0x2a0   :  { %v6207_v41 = vmov 14   ;;  %v872_v44 = vsel %vm524_vm6, %v871_v27, %v870_v58  ;;  %v1041_v17 = vrot.slane %v3680_v60, 7  ;;  %v1320_v55 = vsel %vm518_vm4, %v1319_v2, %v1318_v47 }
 0x2a1   :  { %v3856_v32 = vpop.permute.xlu1 %1008  ;;  %v3858_v6 = vpop.permute.xlu0 %2088  ;;  %v1234_v3 = vsel %vm515_vm3, %v1233_v7, %v1232_v31  ;;  %v1125_v19 = vsel %vm524_vm6, %v1124_v39, %v1123_v57  ;;  %v1040_v30 = vsel %vm524_vm6, %v3662_v5, %v1039_v29  ;;  %v1481_v62 = vrot.slane %v3748_v53, 3 }
 0x2a2   :  { %6205 = vst [vmem:[#allocation76_spill] sm:$0xff] %v3856_v32  ;;  %6206 = vst [vmem:[#allocation77_spill] sm:$0xff] %v3858_v6  ;;  %2989 = vset.pattern.permute.xlu1 %v6207_v41  ;;  %3066 = vset.pattern.permute.xlu0 %v6170_v56  ;;  %v1482_v27 = vrot.slane %v3769_v36, 2  ;;  %v6208_v2 = vrot.slane %v3680_v60, 4  ;;  %v6210_v58 = vrot.slane %v3680_v60, 3  ;;  %v1323_v5 = vrot.slane %v3865_v28, 3 }
 0x2a3   :  { %2208 = vperm.xlu1 %2989, %v3414_v21   ;;  %2532 = vperm.xlu0 %3066, %v3675_v16   ;;  %v1237_v29 = vrot.slane %v3844_v35, 3  ;;  %v3900_v39 = vsel %vm527_vm7, %v957_v46, %v956_v63  ;;  %v3903_v47 = vsel %vm527_vm7, %v873_v33, %v872_v44  ;;  %v1322_v31 = vsel %vm521_vm5, %v1321_v15, %v1320_v55  ;;  %v3923_v33 = vld [vmem:[%s5974_s1 + $0x10] sm:$0xff]  ;;  %v3945_v46 = vld [vmem:[%s5974_s1] sm:$0xff] }
 0x2a4   :  { %v3890_v7 = vsel %vm527_vm7, %v6208_v2, %v788_v52  ;;  %v3895_v57 = vsel %vm527_vm7, %v6210_v58, %v704_v24  ;;  %6212 = vst [vmem:[#allocation80_spill] sm:$0xff] %v3900_v39  ;;  %6213 = vst [vmem:[#allocation81_spill] sm:$0xff] %v3903_v47  ;;  %v1236_v52 = vsel %vm518_vm4, %v1235_v48, %v1234_v3  ;;  %v1484_v63 = vrot.slane %v3774_v50, 1 }
 0x2a5   :  { %6209 = vst [vmem:[#allocation78_spill] sm:$0xff] %v3890_v7  ;;  %6211 = vst [vmem:[#allocation79_spill] sm:$0xff] %v3895_v57  ;;  %v3913_v24 = vsel %vm527_vm7, %v3680_v60, %v1125_v19  ;;  %v3916_v58 = vsel %vm527_vm7, %v1041_v17, %v1040_v30  ;;  %v1239_v15 = vrot.slane %v3865_v28, 2  ;;  %v1483_v60 = vsel %vm509_vm1, %v1482_v27, %v1481_v62 }
 0x2a6   :  { %v3907_v2 = vpop.permute.xlu1 %1092  ;;  %v3909_v32 = vpop.permute.xlu0 %2136  ;;  %6216 = vst [vmem:[#allocation84_spill] sm:$0xff] %v3913_v24  ;;  %6217 = vst [vmem:[#allocation85_spill] sm:$0xff] %v3916_v58  ;;  %v1397_v48 = vrot.slane %v3748_v53, 2  ;;  %v1398_v44 = vrot.slane %v3769_v36, 1  ;;  %v3934_v17 = vsel %vm524_vm6, %v1323_v5, %v1322_v31  ;;  %v1238_v55 = vsel %vm521_vm5, %v1237_v29, %v1236_v52  ;;  %v3950_v5 = vld [vmem:[%s5974_s1 + $0x20] sm:$0xff] }
 0x2a7   :  { %6214 = vst [vmem:[#allocation82_spill] sm:$0xff] %v3907_v2  ;;  %6215 = vst [vmem:[#allocation83_spill] sm:$0xff] %v3909_v32  ;;  %2990 = vset.pattern.permute.xlu1 %v6182_v4  ;;  %3067 = vset.pattern.permute.xlu0 %v6204_v49  ;;  %v1649_v3 = vrot.slane %v3748_v53, 5  ;;  %v1650_v19 = vrot.slane %v3769_v36, 4  ;;  %v1487_v62 = vrot.slane %v3817_v14, 7  ;;  %v508_v29 = vrot.slane %v3923_v33, 7 }
 0x2a8   :  { %1888 = vperm.xlu1 %2990, %v3465_v12   ;;  %1540 = vperm.xlu0 %3067, %v3301_v61   ;;  %v1485_v31 = vsel %vm512_vm2, %v1484_v63, %v1483_v60  ;;  %v1817_v52 = vrot.slane %v3748_v53, 7  ;;  %v1818_v30 = vrot.slane %v3769_v36, 6  ;;  %v595_v27 = vrot.slane %v3945_v46, 1 }
 0x2a9   :  { %v3962_v6 = vsel %vm524_vm6, %v1239_v15, %v1238_v55  ;;  %v1399_v58 = vsel %vm509_vm1, %v1398_v44, %v1397_v48  ;;  %v1652_v39 = vrot.slane %v3774_v50, 3  ;;  %v1401_v36 = vrot.slane %v3796_v10, 7  ;;  %v3975_v15 = vld [vmem:[%s5974_s1 + $0x30] sm:$0xff] }
 0x2aa   :  { %v1651_v63 = vsel %vm509_vm1, %v1650_v19, %v1649_v3  ;;  %v511_v60 = vrot.slane %v3950_v5, 6  ;;  %v1486_v48 = vsel %vm515_vm3, %v3796_v10, %v1485_v31  ;;  %v510_v44 = vsel %vm509_vm1, %v508_v29, %v3945_v46  ;;  %v3995_v29 = vld [vmem:[%s5974_s1 + $0x40] sm:$0xff] }
 0x2ab   :  { %v3957_v2 = vpop.permute.xlu1 %1176  ;;  %v3959_v32 = vpop.permute.xlu0 %1908  ;;  %v1820_v55 = vrot.slane %v3774_v50, 5  ;;  %v597_v53 = vrot.slane %v3950_v5, 7  ;;  %v1400_v3 = vsel %vm512_vm2, %v3774_v50, %v1399_v58  ;;  %v1654_v19 = vrot.slane %v3796_v10, 2 }
 0x2ac   :  { %6218 = vst [vmem:[#allocation86_spill] sm:$0xff] %v3957_v2  ;;  %6219 = vst [vmem:[#allocation87_spill] sm:$0xff] %v3959_v32  ;;  %2992 = vset.pattern.permute.xlu1 %v6186_v11  ;;  %2164 = vperm.xlu0 %3067, %v3384_v18   ;;  %v1819_v24 = vsel %vm509_vm1, %v1818_v30, %v1817_v52  ;;  %v596_v2 = vsel %vm509_vm1, %v3923_v33, %v595_v27  ;;  %v514_v31 = vrot.slane %v3975_v15, 5 }
 0x2ad   :  { %1932 = vperm.xlu1 %2992, %v3465_v12   ;;  %v1653_v32 = vsel %vm512_vm2, %v1652_v39, %v1651_v63  ;;  %v679_v47 = vrot.slane %v3945_v46, 2  ;;  %v680_v50 = vrot.slane %v3923_v33, 1  ;;  %v1403_v27 = vrot.slane %v3817_v14, 6 }
 0x2ae   :  { %v513_v39 = vsel %vm512_vm2, %v511_v60, %v510_v44  ;;  %v1822_v52 = vrot.slane %v3796_v10, 4  ;;  %v599_v63 = vrot.slane %v3975_v15, 6  ;;  %v1402_v7 = vsel %vm515_vm3, %v1401_v36, %v1400_v3  ;;  %v4021_v44 = vld [vmem:[%s5974_s1 + $0x50] sm:$0xff] }
 0x2af   :  { %v1656_v56 = vrot.slane %v3817_v14, 1  ;;  %v598_v57 = vsel %vm512_vm2, %v597_v53, %v596_v2  ;;  %v1407_v60 = vrot.slane %v3865_v28, 4  ;;  %v1655_v10 = vsel %vm515_vm3, %v1654_v19, %v1653_v32 }
 0x2b0   :  { %v4000_v58 = vpop.permute.xlu1 %1292  ;;  %2548 = vperm.xlu0 %3067, %v3518_v26   ;;  %v4003_v30 = vpop.permute.xlu0 %1956  ;;  %v517_v36 = vrot.slane %v3995_v29, 4  ;;  %v516_v3 = vsel %vm515_vm3, %v514_v31, %v513_v39  ;;  %v601_v2 = vrot.slane %v3995_v29, 5  ;;  %v681_v53 = vsel %vm509_vm1, %v680_v50, %v679_v47 }
 0x2b1   :  { %6220 = vst [vmem:[#allocation88_spill] sm:$0xff] %v4000_v58  ;;  %6221 = vst [vmem:[#allocation89_spill] sm:$0xff] %v4003_v30  ;;  %2994 = vset.pattern.permute.xlu1 %v6190_v59  ;;  %v1821_v58 = vsel %vm512_vm2, %v1820_v55, %v1819_v24  ;;  %v1405_v30 = vrot.slane %v3844_v35, 5  ;;  %v1824_v24 = vrot.slane %v3817_v14, 3  ;;  %v1488_v55 = vsel %vm518_vm4, %v1487_v62, %v1486_v48  ;;  %v4043_v62 = vld [vmem:[%s5974_s1 + $0x60] sm:$0xff] }
 0x2b2   :  { %1980 = vperm.xlu1 %2994, %v3465_v12   ;;  %v1404_v32 = vsel %vm518_vm4, %v1403_v27, %v1402_v7  ;;  %v1823_v19 = vsel %vm515_vm3, %v1822_v52, %v1821_v58  ;;  %v600_v25 = vsel %vm515_vm3, %v599_v63, %v598_v57  ;;  %v1409_v14 = vrot.slane %v3883_v51, 3 }
 0x2b3   :  { %v1657_v47 = vsel %vm518_vm4, %v1656_v56, %v1655_v10  ;;  %v520_v7 = vrot.slane %v4021_v44, 3  ;;  %v683_v48 = vrot.slane %v3975_v15, 7  ;;  %v519_v57 = vsel %vm518_vm4, %v517_v36, %v516_v3 }
 0x2b4   :  { %3069 = vset.pattern.permute.xlu0 %v6174_v42  ;;  %v1826_v50 = vrot.slane %v3844_v35, 2  ;;  %v603_v58 = vrot.slane %v4021_v44, 4  ;;  %v682_v56 = vsel %vm512_vm2, %v3950_v5, %v681_v53  ;;  %v6224_v27 = vrot.slane %v3844_v35, 6 }
 0x2b5   :  { %v4033_v43 = vpop.permute.xlu1 %1376  ;;  %1620 = vperm.xlu0 %3069, %v3326_v9   ;;  %v4036_v31 = vpop.permute.xlu0 %2004  ;;  %v1406_v52 = vsel %vm521_vm5, %v1405_v30, %v1404_v32  ;;  %v1825_v63 = vsel %vm518_vm4, %v1824_v24, %v1823_v19  ;;  %v602_v10 = vsel %vm518_vm4, %v601_v2, %v600_v25  ;;  %v1658_v36 = vsel %vm521_vm5, %v3844_v35, %v1657_v47 }
 0x2b6   :  { %6222 = vst [vmem:[#allocation90_spill] sm:$0xff] %v4033_v43  ;;  %6223 = vst [vmem:[#allocation91_spill] sm:$0xff] %v4036_v31  ;;  %2996 = vset.pattern.permute.xlu1 %v6194_v8  ;;  %v1490_v39 = vsel %vm521_vm5, %v6224_v27, %v1488_v55  ;;  %v1659_v3 = vrot.slane %v3865_v28, 7  ;;  %v523_v43 = vrot.slane %v4043_v62, 2  ;;  %v685_v53 = vrot.slane %v3995_v29, 6  ;;  %v4069_v55 = vld [vmem:[%s5974_s1 + $0x70] sm:$0xff] }
 0x2b7   :  { %2028 = vperm.xlu1 %2996, %v3465_v12   ;;  %v522_v30 = vsel %vm521_vm5, %v520_v7, %v519_v57  ;;  %v1828_v25 = vrot.slane %v3865_v28, 1  ;;  %v605_v24 = vrot.slane %v4043_v62, 3  ;;  %v684_v35 = vsel %vm515_vm3, %v683_v48, %v682_v56 }
 0x2b8   :  { %v1827_v19 = vsel %vm521_vm5, %v1826_v50, %v1825_v63  ;;  %v604_v47 = vsel %vm521_vm5, %v603_v58, %v602_v10  ;;  %v763_v27 = vrot.slane %v3945_v46, 3  ;;  %v764_v31 = vrot.slane %v3923_v33, 2 }
 0x2b9   :  { %1632 = vperm.xlu0 %3069, %v3357_v13   ;;  %v6227_v7 = vrot.slane %v3865_v28, 5  ;;  %v1408_v48 = vsel %vm524_vm6, %v1407_v60, %v1406_v52  ;;  %v1661_v56 = vrot.slane %v3883_v51, 6  ;;  %v1660_v50 = vsel %vm524_vm6, %v1659_v3, %v1658_v36 }
 0x2ba   :  { %v4075_v2 = vpop.permute.xlu1 %1460  ;;  %v4077_v32 = vpop.permute.xlu0 %2052  ;;  %v526_v58 = vrot.slane %v4069_v55, 1  ;;  %v607_v63 = vrot.slane %v4069_v55, 2  ;;  %v686_v10 = vsel %vm518_vm4, %v685_v53, %v684_v35  ;;  %v525_v28 = vsel %vm524_vm6, %v523_v43, %v522_v30 }
 0x2bb   :  { %6225 = vst [vmem:[#allocation92_spill] sm:$0xff] %v4075_v2  ;;  %6226 = vst [vmem:[#allocation93_spill] sm:$0xff] %v4077_v32  ;;  %2998 = vset.pattern.permute.xlu1 %v6198_v20  ;;  %v1492_v57 = vsel %vm524_vm6, %v6227_v7, %v1490_v39  ;;  %v687_v2 = vrot.slane %v4021_v44, 5  ;;  %v1829_v60 = vsel %vm524_vm6, %v1828_v25, %v1827_v19  ;;  %v766_v52 = vrot.slane %v3950_v5, 1 }
 0x2bc   :  { %2076 = vperm.xlu1 %2998, %v3465_v12   ;;  %v606_v39 = vsel %vm524_vm6, %v605_v24, %v604_v47  ;;  %v6228_v7 = vrot.slane %v3883_v51, 2  ;;  %v6230_v3 = vrot.slane %v3883_v51, 1  ;;  %v689_v43 = vrot.slane %v4043_v62, 4 }
 0x2bd   :  { %2184 = vperm.xlu0 %3069, %v3414_v21   ;;  %v765_v30 = vsel %vm509_vm1, %v764_v31, %v763_v27  ;;  %v6234_v35 = vrot.slane %v3883_v51, 4  ;;  %v4127_v47 = vsel %vm527_vm7, %v1661_v56, %v1660_v50  ;;  %v4132_v31 = vsel %vm527_vm7, %v526_v58, %v525_v28 }
 0x2be   :  { %v4104_v36 = vsel %vm527_vm7, %v6228_v7, %v3934_v17  ;;  %v4110_v53 = vsel %vm527_vm7, %v6230_v3, %v3962_v6  ;;  %v4124_v17 = vsel %vm527_vm7, %v1409_v14, %v1408_v48  ;;  %6237 = vst [vmem:[#allocation100_spill] sm:$0xff] %v4127_v47  ;;  %v688_v6 = vsel %vm521_vm5, %v687_v2, %v686_v10 }
 0x2bf   :  { %6229 = vst [vmem:[#allocation94_spill] sm:$0xff] %v4104_v36  ;;  %6231 = vst [vmem:[#allocation95_spill] sm:$0xff] %v4110_v53  ;;  %v4114_v25 = vpop.permute.xlu1 %1544  ;;  %v4116_v24 = vpop.permute.xlu0 %2100  ;;  %v4121_v19 = vsel %vm527_vm7, %v6234_v35, %v1492_v57  ;;  %v4136_v27 = vsel %vm527_vm7, %v3883_v51, %v1829_v60  ;;  %v4139_v57 = vsel %vm527_vm7, %v607_v63, %v606_v39  ;;  %v691_v14 = vrot.slane %v4069_v55, 3  ;;  %v4151_v51 = vld [vmem:[%s5974_s1 + $0x18] sm:$0xff] }
 0x2c0   :  { %6232 = vst [vmem:[#allocation96_spill] sm:$0xff] %v4114_v25  ;;  %6233 = vst [vmem:[#allocation97_spill] sm:$0xff] %v4116_v24  ;;  %3000 = vset.pattern.permute.xlu1 %v6201_v38  ;;  %v767_v2 = vsel %vm512_vm2, %v766_v52, %v765_v30  ;;  %v769_v48 = vrot.slane %v3995_v29, 7  ;;  %v847_v56 = vrot.slane %v3945_v46, 4  ;;  %v848_v50 = vrot.slane %v3923_v33, 3  ;;  %v4172_v25 = vld [vmem:[%s5974_s1 + $0x28] sm:$0xff] }
 0x2c1   :  { %6235 = vst [vmem:[#allocation98_spill] sm:$0xff] %v4121_v19  ;;  %6236 = vst [vmem:[#allocation99_spill] sm:$0xff] %v4124_v17  ;;  %2124 = vperm.xlu1 %3000, %v3465_v12   ;;  %2196 = vperm.xlu0 %3069, %v3465_v12   ;;  %v690_v58 = vsel %vm524_vm6, %v689_v43, %v688_v6  ;;  %v771_v63 = vrot.slane %v4021_v44, 6  ;;  %v931_v10 = vrot.slane %v3945_v46, 5  ;;  %v932_v28 = vrot.slane %v3923_v33, 4  ;;  %v4184_v24 = vld [vmem:[%s5974_s1 + $0x8] sm:$0xff] }
 0x2c2   :  { %6238 = vst [vmem:[#allocation101_spill] sm:$0xff] %v4132_v31  ;;  %6239 = vst [vmem:[#allocation102_spill] sm:$0xff] %v4136_v27  ;;  %v1015_v60 = vrot.slane %v3945_v46, 6  ;;  %v1016_v39 = vrot.slane %v3923_v33, 5  ;;  %v1099_v52 = vrot.slane %v3945_v46, 7  ;;  %v1100_v7 = vrot.slane %v3923_v33, 6 }
 0x2c3   :  { %6240 = vst [vmem:[#allocation103_spill] sm:$0xff] %v4139_v57  ;;  %v768_v43 = vsel %vm515_vm3, %v3975_v15, %v767_v2  ;;  %v773_v35 = vrot.slane %v4043_v62, 5  ;;  %v850_v6 = vrot.slane %v3950_v5, 2  ;;  %v1215_v46 = vrot.slane %v4151_v51, 7  ;;  %6243 = vst [vmem:[#allocation106_spill] sm:$0xff] %v4184_v24  ;;  %v4199_v17 = vld [vmem:[%s5974_s1 + $0x38] sm:$0xff] }
 0x2c4   :  { %v4161_v3 = vpop.permute.xlu1 %1628  ;;  %v4163_v30 = vpop.permute.xlu0 %2148  ;;  %v852_v2 = vrot.slane %v3975_v15, 1  ;;  %v4188_v32 = vsel %vm527_vm7, %v691_v14, %v690_v58  ;;  %v933_v27 = vsel %vm509_vm1, %v932_v28, %v931_v10  ;;  %v1018_v33 = vrot.slane %v3950_v5, 4 }
 0x2c5   :  { %6241 = vst [vmem:[#allocation104_spill] sm:$0xff] %v4161_v3  ;;  %6242 = vst [vmem:[#allocation105_spill] sm:$0xff] %v4163_v30  ;;  %3002 = vset.pattern.permute.xlu1 %v6204_v49  ;;  %2568 = vperm.xlu0 %3069, %v3569_v0   ;;  %v849_v3 = vsel %vm509_vm1, %v848_v50, %v847_v56  ;;  %v934_v30 = vrot.slane %v3950_v5, 3  ;;  %v1102_v56 = vrot.slane %v3950_v5, 5  ;;  %v1217_v14 = vrot.slane %v4172_v25, 6 }
 0x2c6   :  { %2172 = vperm.xlu1 %3002, %v3465_v12   ;;  %6244 = vst [vmem:[#allocation107_spill] sm:$0xff] %v4188_v32  ;;  %v770_v50 = vsel %vm518_vm4, %v769_v48, %v768_v43  ;;  %v1017_v47 = vsel %vm509_vm1, %v1016_v39, %v1015_v60  ;;  %v1101_v19 = vsel %vm509_vm1, %v1100_v7, %v1099_v52  ;;  %v936_v10 = vrot.slane %v3975_v15, 2 }
 0x2c7   :  { %v851_v58 = vsel %vm512_vm2, %v850_v6, %v849_v3  ;;  %v1216_v5 = vsel %vm509_vm1, %v1215_v46, %v4184_v24  ;;  %v1299_v48 = vrot.slane %v4184_v24, 1  ;;  %v855_v39 = vrot.slane %v4021_v44, 7 }
 0x2c8   :  { %v935_v52 = vsel %vm512_vm2, %v934_v30, %v933_v27  ;;  %v1020_v7 = vrot.slane %v3975_v15, 3  ;;  %v1104_v3 = vrot.slane %v3975_v15, 4  ;;  %v772_v43 = vsel %vm521_vm5, %v771_v63, %v770_v50 }
 0x2c9   :  { %v4207_v28 = vpop.permute.xlu1 %1712  ;;  %2580 = vperm.xlu0 %3069, %v3675_v16   ;;  %v4210_v60 = vpop.permute.xlu0 %2262  ;;  %v1019_v6 = vsel %vm512_vm2, %v1018_v33, %v1017_v47  ;;  %v1103_v46 = vsel %vm512_vm2, %v1102_v56, %v1101_v19  ;;  %v853_v27 = vsel %vm515_vm3, %v852_v2, %v851_v58  ;;  %v938_v15 = vrot.slane %v3995_v29, 1 }
 0x2ca   :  { %6245 = vst [vmem:[#allocation108_spill] sm:$0xff] %v4207_v28  ;;  %6246 = vst [vmem:[#allocation109_spill] sm:$0xff] %v4210_v60  ;;  %3003 = vset.pattern.permute.xlu1 %v6207_v41  ;;  %v4223_v28 = vld [vmem:[%s5974_s1 + $0x48] sm:$0xff]  ;;  %v1219_v60 = vrot.slane %v4199_v17, 5  ;;  %v1218_v30 = vsel %vm512_vm2, %v1217_v14, %v1216_v5  ;;  %v1301_v63 = vrot.slane %v4172_v25, 7  ;;  %v937_v47 = vsel %vm515_vm3, %v936_v10, %v935_v52  ;;  %v4242_v14 = vld [vmem:[%s5974_s1 + $0x58] sm:$0xff] }
 0x2cb   :  { %2220 = vperm.xlu1 %3003, %v3465_v12   ;;  %v1022_v19 = vrot.slane %v3995_v29, 2  ;;  %v1106_v33 = vrot.slane %v3995_v29, 3  ;;  %v1300_v56 = vsel %vm509_vm1, %v4151_v51, %v1299_v48  ;;  %v1021_v50 = vsel %vm515_vm3, %v1020_v7, %v1019_v6  ;;  %v3075_v10 = vld [vmem:[%s5973_s5] ss:$0 sm:$0xff] }
 0x2cc   :  { %v1105_v2 = vsel %vm515_vm3, %v1104_v3, %v1103_v46  ;;  %v1221_v58 = vrot.slane %v4223_v28, 4  ;;  %v4249_v5 = vadd.f32 %v3075_v10, %v3499_v45  ;;  %v774_v7 = vsel %vm524_vm6, %v773_v35, %v772_v43 }
 0x2cd   :  { %3071 = vset.pattern.permute.xlu0 %v6207_v41  ;;  %v857_v3 = vrot.slane %v4043_v62, 6  ;;  %v1220_v6 = vsel %vm515_vm3, %v1219_v60, %v1218_v30  ;;  %v1303_v46 = vrot.slane %v4199_v17, 6  ;;  %v854_v45 = vsel %vm518_vm4, %v3995_v29, %v853_v27  ;;  %v4273_v30 = vld [vmem:[%s5974_s1 + $0x68] sm:$0xff] }
 0x2ce   :  { %v4251_v48 = vpop.permute.xlu1 %1796  ;;  %1708 = vperm.xlu0 %3071, %v3301_v61   ;;  %v4254_v52 = vpop.permute.xlu0 %2308  ;;  %v939_v10 = vsel %vm518_vm4, %v938_v15, %v937_v47  ;;  %v1302_v61 = vsel %vm512_vm2, %v1301_v63, %v1300_v56  ;;  %v1023_v35 = vsel %vm518_vm4, %v1022_v19, %v1021_v50  ;;  %v1107_v43 = vsel %vm518_vm4, %v1106_v33, %v1105_v2 }
 0x2cf   :  { %6247 = vst [vmem:[#allocation110_spill] sm:$0xff] %v4251_v48  ;;  %6248 = vst [vmem:[#allocation111_spill] sm:$0xff] %v4254_v52  ;;  %3004 = vset.pattern.permute.xlu1 %v6182_v4  ;;  %v1024_v48 = vrot.slane %v4021_v44, 1  ;;  %v1108_v60 = vrot.slane %v4021_v44, 2  ;;  %v1223_v29 = vrot.slane %v4242_v14, 3  ;;  %v1222_v27 = vsel %vm518_vm4, %v1221_v58, %v1220_v6 }
 0x2d0   :  { %1883 = vperm.xlu1 %3004, %v4249_v5   ;;  %6249 = vst [vmem:[#allocation112_spill] sm:$0xff] %v4273_v30  ;;  %v1305_v15 = vrot.slane %v4223_v28, 5  ;;  %v1383_v63 = vrot.slane %v4184_v24, 2  ;;  %v1384_v47 = vrot.slane %v4151_v51, 1  ;;  %v856_v19 = vsel %vm521_vm5, %v855_v39, %v854_v45 }
 0x2d1   :  { %v859_v33 = vrot.slane %v4069_v55, 5  ;;  %v941_v56 = vrot.slane %v4043_v62, 7  ;;  %v1304_v50 = vsel %vm515_vm3, %v1303_v46, %v1302_v61  ;;  %v940_v58 = vsel %vm521_vm5, %v4021_v44, %v939_v10 }
 0x2d2   :  { %2212 = vperm.xlu0 %3071, %v3384_v18   ;;  %v1025_v6 = vsel %vm521_vm5, %v1024_v48, %v1023_v35  ;;  %v1110_v4 = vrot.slane %v4043_v62, 1  ;;  %v4296_v18 = vld [vmem:[%s5974_s1 + $0x78] sm:$0xff]  ;;  %v1225_v39 = vrot.slane %v4273_v30, 2  ;;  %v6252_v46 = vrot.slane %v4069_v55, 4 }
 0x2d3   :  { %v4285_v2 = vpop.permute.xlu1 %1900  ;;  %v4287_v52 = vpop.permute.xlu0 %2356  ;;  %v1109_v44 = vsel %vm521_vm5, %v1108_v60, %v1107_v43  ;;  %v1224_v48 = vsel %vm521_vm5, %v1223_v29, %v1222_v27  ;;  %v1307_v10 = vrot.slane %v4242_v14, 4  ;;  %v943_v61 = vrot.slane %v4069_v55, 6 }
 0x2d4   :  { %6250 = vst [vmem:[#allocation113_spill] sm:$0xff] %v4285_v2  ;;  %6251 = vst [vmem:[#allocation114_spill] sm:$0xff] %v4287_v52  ;;  %3005 = vset.pattern.permute.xlu1 %v6167_v54  ;;  %v4303_v45 = vsel %vm527_vm7, %v6252_v46, %v774_v7  ;;  %v1027_v35 = vrot.slane %v4069_v55, 7  ;;  %v1306_v52 = vsel %vm518_vm4, %v1305_v15, %v1304_v50  ;;  %v1227_v29 = vrot.slane %v4296_v18, 1 }
 0x2d5   :  { %6253 = vst [vmem:[#allocation115_spill] sm:$0xff] %v4303_v45  ;;  %1904 = vperm.xlu1 %3005, %v4249_v5   ;;  %v1385_v2 = vsel %vm509_vm1, %v1384_v47, %v1383_v63  ;;  %v858_v7 = vsel %vm524_vm6, %v857_v3, %v856_v19  ;;  %v942_v43 = vsel %vm524_vm6, %v941_v56, %v940_v58  ;;  %v1309_v36 = vrot.slane %v4273_v30, 3 }
 0x2d6   :  { %2596 = vperm.xlu0 %3071, %v3518_v26   ;;  %v1026_v60 = vsel %vm524_vm6, %v4043_v62, %v1025_v6  ;;  %v1111_v27 = vsel %vm524_vm6, %v1110_v4, %v1109_v44  ;;  %v1226_v46 = vsel %vm524_vm6, %v1225_v39, %v1224_v48  ;;  %v1387_v15 = vrot.slane %v4199_v17, 7 }
 0x2d7   :  { %v1308_v3 = vsel %vm521_vm5, %v1307_v10, %v1306_v52  ;;  %v1386_v19 = vsel %vm512_vm2, %v4172_v25, %v1385_v2  ;;  %v1467_v62 = vrot.slane %v4184_v24, 3  ;;  %v1468_v56 = vrot.slane %v4151_v51, 2  ;;  %v4345_v52 = vld [vmem:[%s5974_s1 + $0x180] sm:$0xff] }
 0x2d8   :  { %v4323_v63 = vpop.permute.xlu1 %1948  ;;  %v4325_v47 = vpop.permute.xlu0 %2404  ;;  %v4334_v4 = vsel %vm527_vm7, %v859_v33, %v858_v7  ;;  %v4337_v50 = vsel %vm527_vm7, %v943_v61, %v942_v43  ;;  %v4340_v58 = vsel %vm527_vm7, %v1027_v35, %v1026_v60  ;;  %v4351_v2 = vsel %vm527_vm7, %v4069_v55, %v1111_v27  ;;  %v4366_v55 = vld [vmem:[%s5974_s1 + $0x190] sm:$0xff] }
 0x2d9   :  { %6254 = vst [vmem:[#allocation116_spill] sm:$0xff] %v4323_v63  ;;  %6255 = vst [vmem:[#allocation117_spill] sm:$0xff] %v4325_v47  ;;  %3006 = vset.pattern.permute.xlu1 %v6186_v11  ;;  %v4354_v33 = vsel %vm527_vm7, %v1227_v29, %v1226_v46  ;;  %v1311_v6 = vrot.slane %v4296_v18, 2  ;;  %v1389_v39 = vrot.slane %v4223_v28, 6  ;;  %v1310_v44 = vsel %vm524_vm6, %v1309_v36, %v1308_v3 }
 0x2da   :  { %6256 = vst [vmem:[#allocation118_spill] sm:$0xff] %v4334_v4  ;;  %6257 = vst [vmem:[#allocation119_spill] sm:$0xff] %v4337_v50  ;;  %1928 = vperm.xlu1 %3006, %v4249_v5   ;;  %3073 = vset.pattern.permute.xlu0 %v6178_v22  ;;  %v1388_v48 = vsel %vm515_vm3, %v1387_v15, %v1386_v19  ;;  %v1391_v10 = vrot.slane %v4242_v14, 5  ;;  %v1470_v61 = vrot.slane %v4172_v25, 1  ;;  %v1551_v7 = vrot.slane %v4184_v24, 4 }
 0x2db   :  { %6258 = vst [vmem:[#allocation120_spill] sm:$0xff] %v4340_v58  ;;  %6259 = vst [vmem:[#allocation121_spill] sm:$0xff] %v4351_v2  ;;  %1788 = vperm.xlu0 %3073, %v3326_v9   ;;  %v1469_v35 = vsel %vm509_vm1, %v1468_v56, %v1467_v62  ;;  %v1552_v43 = vrot.slane %v4151_v51, 3  ;;  %v4374_v9 = vld [vmem:[%s5974_s1 + $0x1a0] sm:$0xff]  ;;  %v637_v36 = vrot.slane %v4345_v52, 1  ;;  %v1393_v27 = vrot.slane %v4273_v30, 4 }
 0x2dc   :  { %6260 = vst [vmem:[#allocation122_spill] sm:$0xff] %v4354_v33  ;;  %v1719_v15 = vrot.slane %v4184_v24, 6  ;;  %v1720_v3 = vrot.slane %v4151_v51, 5  ;;  %v4387_v19 = vsel %vm527_vm7, %v1311_v6, %v1310_v44  ;;  %v1390_v62 = vsel %vm518_vm4, %v1389_v39, %v1388_v48  ;;  %v4400_v6 = vld [vmem:[%s5974_s1 + $0x1b0] sm:$0xff] }
 0x2dd   :  { %v4377_v60 = vpop.permute.xlu1 %1996  ;;  %v4379_v29 = vpop.permute.xlu0 %2452  ;;  %6263 = vst [vmem:[#allocation125_spill] sm:$0xff] %v4387_v19  ;;  %v805_v56 = vrot.slane %v4345_v52, 3  ;;  %v806_v47 = vrot.slane %v4366_v55, 2  ;;  %v1471_v46 = vsel %vm512_vm2, %v1470_v61, %v1469_v35  ;;  %v1554_v51 = vrot.slane %v4172_v25, 2 }
 0x2de   :  { %6261 = vst [vmem:[#allocation123_spill] sm:$0xff] %v4377_v60  ;;  %6262 = vst [vmem:[#allocation124_spill] sm:$0xff] %v4379_v29  ;;  %3007 = vset.pattern.permute.xlu1 %v6171_v1  ;;  %v1473_v29 = vrot.slane %v4223_v28, 7  ;;  %v639_v39 = vrot.slane %v4374_v9, 7  ;;  %v1475_v44 = vrot.slane %v4242_v14, 6  ;;  %v1553_v48 = vsel %vm509_vm1, %v1552_v43, %v1551_v7 }
 0x2df   :  { %1952 = vperm.xlu1 %3007, %v4249_v5   ;;  %1800 = vperm.xlu0 %3073, %v3357_v13   ;;  %v638_v13 = vsel %vm509_vm1, %v4366_v55, %v637_v36  ;;  %v1722_v61 = vrot.slane %v4172_v25, 4  ;;  %v1392_v35 = vsel %vm521_vm5, %v1391_v10, %v1390_v62  ;;  %v1721_v11 = vsel %vm509_vm1, %v1720_v3, %v1719_v15  ;;  %v4422_v25 = vld [vmem:[%s5974_s1 + $0x1c0] sm:$0xff] }
 0x2e0   :  { %v808_v60 = vrot.slane %v4374_v9, 1  ;;  %v557_v63 = vrot.slane %v4366_v55, 7  ;;  %v1472_v7 = vsel %vm515_vm3, %v4199_v17, %v1471_v46  ;;  %v1556_v43 = vrot.slane %v4199_v17, 1  ;;  %v4433_v46 = vld [vmem:[%s5974_s1 + $0x1d0] sm:$0xff] }
 0x2e1   :  { %v641_v10 = vrot.slane %v4400_v6, 6  ;;  %v807_v36 = vsel %vm509_vm1, %v806_v47, %v805_v56  ;;  %v1477_v15 = vrot.slane %v4273_v30, 5  ;;  %v1555_v3 = vsel %vm512_vm2, %v1554_v51, %v1553_v48 }
 0x2e2   :  { %v4412_v19 = vpop.permute.xlu1 %2044  ;;  %v4414_v24 = vpop.permute.xlu0 %2500  ;;  %v640_v62 = vsel %vm512_vm2, %v639_v39, %v638_v13  ;;  %v4439_v47 = vsel %vm524_vm6, %v1393_v27, %v1392_v35  ;;  %v1723_v56 = vsel %vm512_vm2, %v1722_v61, %v1721_v11  ;;  %v559_v51 = vrot.slane %v4374_v9, 6 }
 0x2e3   :  { %6264 = vst [vmem:[#allocation126_spill] sm:$0xff] %v4412_v19  ;;  %6265 = vst [vmem:[#allocation127_spill] sm:$0xff] %v4414_v24  ;;  %3008 = vset.pattern.permute.xlu1 %v6190_v59  ;;  %2232 = vperm.xlu0 %3073, %v3414_v21   ;;  %v1724_v24 = vrot.slane %v4199_v17, 3  ;;  %v1474_v48 = vsel %vm518_vm4, %v1473_v29, %v1472_v7  ;;  %v643_v59 = vrot.slane %v4422_v25, 5  ;;  %v1559_v27 = vrot.slane %v4242_v14, 7 }
 0x2e4   :  { %1976 = vperm.xlu1 %3008, %v4249_v5   ;;  %v809_v19 = vsel %vm512_vm2, %v808_v60, %v807_v36  ;;  %v558_v17 = vsel %vm509_vm1, %v557_v63, %v4345_v52  ;;  %v1557_v39 = vsel %vm515_vm3, %v1556_v43, %v1555_v3  ;;  %v642_v13 = vsel %vm515_vm3, %v641_v10, %v640_v62  ;;  %v4461_v60 = vld [vmem:[%s5974_s1 + $0x1e0] sm:$0xff] }
 0x2e5   :  { %v645_v35 = vrot.slane %v4433_v46, 4  ;;  %v1725_v63 = vsel %vm515_vm3, %v1724_v24, %v1723_v56  ;;  %v1726_v61 = vrot.slane %v4223_v28, 2  ;;  %v811_v7 = vrot.slane %v4422_v25, 7 }
 0x2e6   :  { %v561_v43 = vrot.slane %v4400_v6, 5  ;;  %v560_v10 = vsel %vm512_vm2, %v559_v51, %v558_v17  ;;  %v973_v36 = vrot.slane %v4345_v52, 5  ;;  %v974_v3 = vrot.slane %v4366_v55, 4 }
 0x2e7   :  { %v4453_v11 = vpop.permute.xlu1 %2092  ;;  %2244 = vperm.xlu0 %3073, %v3465_v12   ;;  %v4456_v29 = vpop.permute.xlu0 %2280  ;;  %v810_v12 = vsel %vm515_vm3, %v4400_v6, %v809_v19  ;;  %v1476_v24 = vsel %vm521_vm5, %v1475_v44, %v1474_v48  ;;  %v1558_v62 = vsel %vm518_vm4, %v4223_v28, %v1557_v39  ;;  %v1561_v56 = vrot.slane %v4273_v30, 6  ;;  %v4482_v19 = vld [vmem:[%s5974_s1 + $0x1f0] sm:$0xff] }
 0x2e8   :  { %6266 = vst [vmem:[#allocation128_spill] sm:$0xff] %v4453_v11  ;;  %6267 = vst [vmem:[#allocation129_spill] sm:$0xff] %v4456_v29  ;;  %3009 = vset.pattern.permute.xlu1 %v6175_v40  ;;  %v644_v21 = vsel %vm518_vm4, %v643_v59, %v642_v13  ;;  %v647_v51 = vrot.slane %v4461_v60, 3  ;;  %v1728_v17 = vrot.slane %v4242_v14, 1  ;;  %v813_v29 = vrot.slane %v4433_v46, 6 }
 0x2e9   :  { %2000 = vperm.xlu1 %3009, %v4249_v5   ;;  %v563_v44 = vrot.slane %v4422_v25, 4  ;;  %v1727_v28 = vsel %vm518_vm4, %v1726_v61, %v1725_v63  ;;  %v812_v48 = vsel %vm518_vm4, %v811_v7, %v810_v12  ;;  %v562_v59 = vsel %vm515_vm3, %v561_v43, %v560_v10 }
 0x2ea   :  { %v976_v39 = vrot.slane %v4374_v9, 3  ;;  %v1478_v14 = vsel %vm524_vm6, %v1477_v15, %v1476_v24  ;;  %v1560_v40 = vsel %vm521_vm5, %v1559_v27, %v1558_v62  ;;  %v646_v33 = vsel %vm521_vm5, %v645_v35, %v644_v21 }
 0x2eb   :  { %2616 = vperm.xlu0 %3073, %v3569_v0   ;;  %v975_v0 = vsel %vm509_vm1, %v974_v3, %v973_v36  ;;  %v1563_v63 = vrot.slane %v4296_v18, 5  ;;  %v649_v61 = vrot.slane %v4482_v19, 2  ;;  %v815_v7 = vrot.slane %v4461_v60, 5 }
 0x2ec   :  { %v4493_v13 = vpop.permute.xlu1 %2140  ;;  %v4495_v11 = vpop.permute.xlu0 %2328  ;;  %v565_v43 = vrot.slane %v4433_v46, 3  ;;  %v1729_v15 = vsel %vm521_vm5, %v1728_v17, %v1727_v28  ;;  %v814_v27 = vsel %vm521_vm5, %v813_v29, %v812_v48  ;;  %v564_v21 = vsel %vm518_vm4, %v563_v44, %v562_v59 }
 0x2ed   :  { %6268 = vst [vmem:[#allocation130_spill] sm:$0xff] %v4493_v13  ;;  %6269 = vst [vmem:[#allocation131_spill] sm:$0xff] %v4495_v11  ;;  %3010 = vset.pattern.permute.xlu1 %v6194_v8  ;;  %v978_v35 = vrot.slane %v4400_v6, 2  ;;  %v1562_v12 = vsel %vm524_vm6, %v1561_v56, %v1560_v40  ;;  %v648_v10 = vsel %vm524_vm6, %v647_v51, %v646_v33  ;;  %v1731_v36 = vrot.slane %v4296_v18, 7 }
 0x2ee   :  { %2024 = vperm.xlu1 %3010, %v4249_v5   ;;  %v977_v3 = vsel %vm512_vm2, %v976_v39, %v975_v0  ;;  %v817_v24 = vrot.slane %v4482_v19, 4  ;;  %v567_v62 = vrot.slane %v4461_v60, 2  ;;  %v721_v29 = vrot.slane %v4345_v52, 2 }
 0x2ef   :  { %2628 = vperm.xlu0 %3073, %v3675_v16   ;;  %v722_v17 = vrot.slane %v4366_v55, 1  ;;  %v1730_v40 = vsel %vm524_vm6, %v4273_v30, %v1729_v15  ;;  %v816_v33 = vsel %vm524_vm6, %v815_v7, %v814_v27  ;;  %v566_v56 = vsel %vm521_vm5, %v565_v43, %v564_v21  ;;  %v4645_v30 = vld [vmem:[%s5974_s1 + $0x1d8] sm:$0xff] }
 0x2f0   :  { %v980_v0 = vrot.slane %v4422_v25, 1  ;;  %v6272_v51 = vrot.slane %v4296_v18, 3  ;;  %v6274_v59 = vrot.slane %v4296_v18, 4  ;;  %v4542_v15 = vsel %vm527_vm7, %v1563_v63, %v1562_v12  ;;  %v4555_v18 = vld [vmem:[%s5974_s1 + $0x188] sm:$0xff] }
 0x2f1   :  { %v4520_v44 = vpop.permute.xlu1 %2188  ;;  %v4522_v28 = vpop.permute.xlu0 %2376  ;;  %6276 = vst [vmem:[#allocation136_spill] sm:$0xff] %v4542_v15  ;;  %v979_v7 = vsel %vm515_vm3, %v978_v35, %v977_v3  ;;  %v4547_v43 = vsel %vm527_vm7, %v649_v61, %v648_v10  ;;  %v569_v27 = vrot.slane %v4482_v19, 1  ;;  %v1142_v21 = vrot.slane %v4366_v55, 6 }
 0x2f2   :  { %6270 = vst [vmem:[#allocation132_spill] sm:$0xff] %v4520_v44  ;;  %6271 = vst [vmem:[#allocation133_spill] sm:$0xff] %v4522_v28  ;;  %3011 = vset.pattern.permute.xlu1 %v6179_v37  ;;  %v4534_v48 = vsel %vm527_vm7, %v6272_v51, %v4439_v47  ;;  %v4539_v39 = vsel %vm527_vm7, %v6274_v59, %v1478_v14  ;;  %v1141_v47 = vrot.slane %v4345_v52, 7  ;;  %v983_v10 = vrot.slane %v4461_v60, 7 }
 0x2f3   :  { %6273 = vst [vmem:[#allocation134_spill] sm:$0xff] %v4534_v48  ;;  %6275 = vst [vmem:[#allocation135_spill] sm:$0xff] %v4539_v39  ;;  %2048 = vperm.xlu1 %3011, %v4249_v5   ;;  %v4558_v14 = vsel %vm527_vm7, %v1731_v36, %v1730_v40  ;;  %v4561_v63 = vsel %vm527_vm7, %v817_v24, %v816_v33  ;;  %v568_v61 = vsel %vm524_vm6, %v567_v62, %v566_v56 }
 0x2f4   :  { %6277 = vst [vmem:[#allocation137_spill] sm:$0xff] %v4547_v43  ;;  %6278 = vst [vmem:[#allocation138_spill] sm:$0xff] %v4558_v14  ;;  %v723_v35 = vsel %vm509_vm1, %v722_v17, %v721_v29  ;;  %v981_v12 = vsel %vm518_vm4, %v980_v0, %v979_v7  ;;  %v985_v3 = vrot.slane %v4482_v19, 6  ;;  %v725_v51 = vrot.slane %v4400_v6, 7  ;;  %v4579_v29 = vld [vmem:[%s5974_s1 + $0x1a8] sm:$0xff]  ;;  %v4593_v7 = vld [vmem:[%s5974_s1 + $0x198] sm:$0xff] }
 0x2f5   :  { %6279 = vst [vmem:[#allocation139_spill] sm:$0xff] %v4561_v63  ;;  %v1144_v36 = vrot.slane %v4374_v9, 5  ;;  %v889_v24 = vrot.slane %v4345_v52, 4  ;;  %v890_v62 = vrot.slane %v4366_v55, 3  ;;  %v1341_v17 = vrot.slane %v4555_v18, 1 }
 0x2f6   :  { %v4569_v59 = vpop.permute.xlu1 %2236  ;;  %v4571_v28 = vpop.permute.xlu0 %2424  ;;  %v4584_v40 = vsel %vm527_vm7, %v569_v27, %v568_v61  ;;  %v724_v33 = vsel %vm512_vm2, %v4374_v9, %v723_v35  ;;  %v727_v56 = vrot.slane %v4422_v25, 6  ;;  %v1143_v0 = vsel %vm509_vm1, %v1142_v21, %v1141_v47 }
 0x2f7   :  { %6280 = vst [vmem:[#allocation140_spill] sm:$0xff] %v4569_v59  ;;  %6281 = vst [vmem:[#allocation141_spill] sm:$0xff] %v4571_v28  ;;  %3012 = vset.pattern.permute.xlu1 %v6198_v20  ;;  %v982_v28 = vsel %vm521_vm5, %v4433_v46, %v981_v12  ;;  %v729_v27 = vrot.slane %v4433_v46, 5  ;;  %v1057_v61 = vrot.slane %v4345_v52, 6  ;;  %v1058_v35 = vrot.slane %v4366_v55, 5  ;;  %v4607_v59 = vld [vmem:[%s5974_s1 + $0x1b8] sm:$0xff] }
 0x2f8   :  { %6282 = vst [vmem:[#allocation142_spill] sm:$0xff] %v4584_v40  ;;  %2072 = vperm.xlu1 %3012, %v4249_v5   ;;  %v731_v11 = vrot.slane %v4461_v60, 4  ;;  %v1146_v47 = vrot.slane %v4400_v6, 4  ;;  %v892_v21 = vrot.slane %v4374_v9, 2  ;;  %v1343_v44 = vrot.slane %v4579_v29, 7 }
 0x2f9   :  { %v726_v12 = vsel %vm515_vm3, %v725_v51, %v724_v33  ;;  %v1145_v16 = vsel %vm512_vm2, %v1144_v36, %v1143_v0  ;;  %v891_v52 = vsel %vm509_vm1, %v890_v62, %v889_v24  ;;  %v1342_v55 = vsel %vm509_vm1, %v4593_v7, %v1341_v17  ;;  %v4629_v24 = vld [vmem:[%s5974_s1 + $0x1c8] sm:$0xff] }
 0x2fa   :  { %v984_v20 = vsel %vm524_vm6, %v983_v10, %v982_v28  ;;  %v1060_v15 = vrot.slane %v4374_v9, 4  ;;  %v1509_v8 = vrot.slane %v4555_v18, 3  ;;  %v1510_v39 = vrot.slane %v4593_v7, 2 }
 0x2fb   :  { %v4615_v14 = vpop.permute.xlu1 %1873  ;;  %v4617_v13 = vpop.permute.xlu0 %2472  ;;  %v1148_v51 = vrot.slane %v4422_v25, 3  ;;  %v894_v36 = vrot.slane %v4400_v6, 1  ;;  %v1345_v62 = vrot.slane %v4607_v59, 6  ;;  %v1059_v28 = vsel %vm509_vm1, %v1058_v35, %v1057_v61 }
 0x2fc   :  { %6283 = vst [vmem:[#allocation143_spill] sm:$0xff] %v4617_v13  ;;  %3013 = vset.pattern.permute.xlu1 %v6183_v34  ;;  %v728_v9 = vsel %vm518_vm4, %v727_v56, %v726_v12  ;;  %v1147_v10 = vsel %vm515_vm3, %v1146_v47, %v1145_v16  ;;  %v893_v17 = vsel %vm512_vm2, %v892_v21, %v891_v52  ;;  %v733_v13 = vrot.slane %v4482_v19, 3  ;;  %v6290_v34 = vld [vmem:[#allocation16_spill] sm:$0xff] }
 0x2fd   :  { %2096 = vperm.xlu1 %3013, %v4249_v5   ;;  %v1344_v33 = vsel %vm512_vm2, %v1343_v44, %v1342_v55  ;;  %v4639_v0 = vsel %vm527_vm7, %v985_v3, %v984_v20  ;;  %v1062_v61 = vrot.slane %v4400_v6, 3  ;;  %v1512_v56 = vrot.slane %v4579_v29, 1 }
 0x2fe   :  { %6284 = vst [vmem:[#allocation144_spill] sm:$0xff] %v4639_v0  ;;  %v1150_v16 = vrot.slane %v4433_v46, 2  ;;  %v1347_v35 = vrot.slane %v4629_v24, 5  ;;  %v1061_v44 = vsel %vm512_vm2, %v1060_v15, %v1059_v28  ;;  %v1511_v20 = vsel %vm509_vm1, %v1510_v39, %v1509_v8 }
 0x2ff   :  { %v730_v21 = vsel %vm521_vm5, %v729_v27, %v728_v9  ;;  %v1149_v12 = vsel %vm518_vm4, %v1148_v51, %v1147_v10  ;;  %v895_v6 = vsel %vm515_vm3, %v894_v36, %v893_v17  ;;  %v1346_v52 = vsel %vm515_vm3, %v1345_v62, %v1344_v33  ;;  %v6287_v27 = vld [vmem:[#allocation68_spill] sm:$0xff]  ;;  %v6288_v51 = vld [vmem:[#allocation14_spill] sm:$0xff]  ;;  %v6289_v9 = vld [vmem:[#allocation69_spill] sm:$0xff] }
 0x300   :  { %v4653_v3 = vpop.permute.xlu1 %1920  ;;  %v4655_v47 = vpop.permute.xlu0 %2520  ;;  %v1152_v55 = vrot.slane %v4461_v60, 1  ;;  %v897_v15 = vrot.slane %v4433_v46, 7  ;;  %v1349_v8 = vrot.slane %v4645_v30, 4  ;;  %v1064_v39 = vrot.slane %v4422_v25, 2  ;;  %v4674_v62 = vld [vmem:[%s5974_s1 + $0x1e8] sm:$0xff] }
 0x301   :  { %6285 = vst [vmem:[#allocation145_spill] sm:$0xff] %v4653_v3  ;;  %6286 = vst [vmem:[#allocation146_spill] sm:$0xff] %v4655_v47  ;;  %3014 = vset.pattern.permute.xlu1 %v6201_v38  ;;  %v656_v28 = vmul.f32 %v6287_v27, %v3416_v23  ;;  %v576_v36 = vmul.f32 %v6289_v9, %v6288_v51  ;;  %v1063_v10 = vsel %vm515_vm3, %v1062_v61, %v1061_v44  ;;  %v6291_v51 = vld [vmem:[#allocation79_spill] sm:$0xff] }
 0x302   :  { %2120 = vperm.xlu1 %3014, %v4249_v5   ;;  %v1513_v17 = vsel %vm512_vm2, %v1512_v56, %v1511_v20  ;;  %v732_v33 = vsel %vm524_vm6, %v731_v11, %v730_v21  ;;  %v1151_v47 = vsel %vm521_vm5, %v1150_v16, %v1149_v12  ;;  %v896_v38 = vsel %vm518_vm4, %v4422_v25, %v895_v6  ;;  %v4703_v12 = vld [vmem:[%s5974_s1 + $0x1f8] sm:$0xff] }
 0x303   :  { %v1348_v23 = vsel %vm518_vm4, %v1347_v35, %v1346_v52  ;;  %v740_v48 = vmul.f32 %v6291_v51, %v6290_v34  ;;  %v1066_v37 = vrot.slane %v4433_v46, 1  ;;  %v1515_v3 = vrot.slane %v4629_v24, 7 }
 0x304   :  { %v1257_v61 = vrot.slane %v4593_v7, 7  ;;  %v899_v11 = vrot.slane %v4461_v60, 6  ;;  %v1351_v16 = vrot.slane %v4674_v62, 3  ;;  %v1065_v25 = vsel %vm518_vm4, %v1064_v39, %v1063_v10 }
 0x305   :  { %v4688_v44 = vpop.permute.xlu1 %1968  ;;  %v4690_v56 = vpop.permute.xlu0 %2292  ;;  %v1514_v35 = vsel %vm515_vm3, %v4607_v59, %v1513_v17  ;;  %v6294_v34 = vmov 11   ;;  %v660_v46 = vadd.f32 %v656_v28, %v576_v36  ;;  %v1153_v20 = vsel %vm524_vm6, %v1152_v55, %v1151_v47 }
 0x306   :  { %6292 = vst [vmem:[#allocation14_spill] sm:$0xff] %v4688_v44  ;;  %6293 = vst [vmem:[#allocation16_spill] sm:$0xff] %v4690_v56  ;;  %3015 = vset.pattern.permute.xlu1 %v6294_v34  ;;  %v898_v21 = vsel %vm521_vm5, %v897_v15, %v896_v38  ;;  %v1350_v6 = vsel %vm521_vm5, %v1349_v8, %v1348_v23  ;;  %v4708_v52 = vsel %vm527_vm7, %v733_v13, %v732_v33  ;;  %v6300_v23 = vld [vmem:[#allocation78_spill] sm:$0xff] }
 0x307   :  { %2144 = vperm.xlu1 %3015, %v4249_v5   ;;  %6295 = vst [vmem:[#allocation147_spill] sm:$0xff] %v4708_v52  ;;  %v901_v39 = vrot.slane %v4482_v19, 5  ;;  %v1517_v28 = vrot.slane %v4645_v30, 6  ;;  %v1259_v47 = vrot.slane %v4579_v29, 6  ;;  %v744_v55 = vadd.f32 %v740_v48, %v660_v46  ;;  %v6304_v34 = vld [vmem:[#allocation26_spill] sm:$0xff] }
 0x308   :  { %v1067_v38 = vsel %vm521_vm5, %v1066_v37, %v1065_v25  ;;  %v1516_v15 = vsel %vm518_vm4, %v1515_v3, %v1514_v35  ;;  %v1258_v36 = vsel %vm509_vm1, %v1257_v61, %v4555_v18  ;;  %v4719_v8 = vsel %vm527_vm7, %v4482_v19, %v1153_v20  ;;  %v6299_v37 = vld [vmem:[#allocation15_spill] sm:$0xff] }
 0x309   :  { %6296 = vst [vmem:[#allocation148_spill] sm:$0xff] %v4719_v8  ;;  %v900_v13 = vsel %vm524_vm6, %v899_v11, %v898_v21  ;;  %v1352_v10 = vsel %vm524_vm6, %v1351_v16, %v1350_v6  ;;  %v1353_v17 = vrot.slane %v4703_v12, 2  ;;  %v824_v3 = vmul.f32 %v6300_v23, %v6299_v37  ;;  %v6301_v11 = vld [vmem:[#allocation28_spill] sm:$0xff]  ;;  %v6303_v37 = vld [vmem:[#allocation81_spill] sm:$0xff] }
 0x30a   :  { %v4724_v33 = vpop.permute.xlu1 %2016  ;;  %v4726_v48 = vpop.permute.xlu0 %2340  ;;  %v1069_v25 = vrot.slane %v4482_v19, 7  ;;  %v1519_v61 = vrot.slane %v4674_v62, 5  ;;  %v1261_v35 = vrot.slane %v4607_v59, 5  ;;  %v655_v16 = vmul.f32 %v4139_v57, %v6301_v11  ;;  %v6302_v19 = vld [vmem:[#allocation18_spill] sm:$0xff] }
 0x30b   :  { %6297 = vst [vmem:[#allocation149_spill] sm:$0xff] %v4724_v33  ;;  %6298 = vst [vmem:[#allocation150_spill] sm:$0xff] %v4726_v48  ;;  %3016 = vset.pattern.permute.xlu1 %v6204_v49  ;;  %v1068_v46 = vsel %vm524_vm6, %v4461_v60, %v1067_v38  ;;  %v1518_v20 = vsel %vm521_vm5, %v1517_v28, %v1516_v15  ;;  %v1260_v21 = vsel %vm512_vm2, %v1259_v47, %v1258_v36  ;;  %v6305_v33 = vld [vmem:[#allocation29_spill] sm:$0xff] }
 0x30c   :  { %2168 = vperm.xlu1 %3016, %v4249_v5   ;;  %v828_v6 = vadd.f32 %v824_v3, %v744_v55  ;;  %v908_v48 = vmul.f32 %v6303_v37, %v6302_v19  ;;  %v1425_v56 = vrot.slane %v4555_v18, 2  ;;  %v1426_v49 = vrot.slane %v4593_v7, 1 }
 0x30d   :  { %v575_v11 = vmul.f32 %v4132_v31, %v6304_v34  ;;  %v739_v60 = vmul.f32 %v4188_v32, %v6305_v33  ;;  %v4750_v28 = vsel %vm527_vm7, %v901_v39, %v900_v13  ;;  %v1263_v47 = vrot.slane %v4629_v24, 4 }
 0x30e   :  { %6306 = vst [vmem:[#allocation15_spill] sm:$0xff] %v4750_v28  ;;  %v1521_v55 = vrot.slane %v4703_v12, 4  ;;  %v1262_v38 = vsel %vm515_vm3, %v1261_v35, %v1260_v21  ;;  %v1593_v15 = vrot.slane %v4555_v18, 4  ;;  %v1594_v36 = vrot.slane %v4593_v7, 3 }
 0x30f   :  { %v4757_v3 = vpop.permute.xlu1 %2064  ;;  %v4759_v19 = vpop.permute.xlu0 %2388  ;;  %v659_v34 = vadd.f32 %v655_v16, %v575_v11  ;;  %v4762_v33 = vsel %vm527_vm7, %v1353_v17, %v1352_v10  ;;  %v4765_v39 = vsel %vm527_vm7, %v1069_v25, %v1068_v46  ;;  %v1520_v13 = vsel %vm524_vm6, %v1519_v61, %v1518_v20  ;;  %v6311_v46 = vld [vmem:[#allocation17_spill] sm:$0xff]  ;;  %v6312_v61 = vld [vmem:[#allocation80_spill] sm:$0xff] }
 0x310   :  { %6307 = vst [vmem:[#allocation28_spill] sm:$0xff] %v4757_v3  ;;  %6308 = vst [vmem:[#allocation18_spill] sm:$0xff] %v4759_v19  ;;  %3017 = vset.pattern.permute.xlu1 %v6174_v42  ;;  %v912_v35 = vadd.f32 %v908_v48, %v828_v6  ;;  %v1265_v21 = vrot.slane %v4645_v30, 3  ;;  %v1267_v37 = vrot.slane %v4674_v62, 2  ;;  %v1427_v3 = vsel %vm509_vm1, %v1426_v49, %v1425_v56  ;;  %v6314_v49 = vld [vmem:[#allocation30_spill] sm:$0xff]  ;;  %v6318_v17 = vld [vmem:[#allocation85_spill] sm:$0xff] }
 0x311   :  { %6309 = vst [vmem:[#allocation26_spill] sm:$0xff] %v4762_v33  ;;  %6310 = vst [vmem:[#allocation29_spill] sm:$0xff] %v4765_v39  ;;  %2192 = vperm.xlu1 %3017, %v4249_v5   ;;  %v743_v16 = vadd.f32 %v739_v60, %v659_v34  ;;  %v1264_v10 = vsel %vm518_vm4, %v1263_v47, %v1262_v38  ;;  %v1596_v25 = vrot.slane %v4579_v29, 2  ;;  %v1429_v6 = vrot.slane %v4607_v59, 7 }
 0x312   :  { %v992_v20 = vmul.f32 %v6312_v61, %v6311_v46  ;;  %v4779_v48 = vsel %vm527_vm7, %v1521_v55, %v1520_v13  ;;  %v1595_v11 = vsel %vm509_vm1, %v1594_v36, %v1593_v15  ;;  %v823_v56 = vmul.f32 %v4303_v45, %v6314_v49  ;;  %v6317_v13 = vld [vmem:[#allocation20_spill] sm:$0xff]  ;;  %v4799_v15 = vld [vmem:[%s5974_s1 + $0x88] sm:$0xff]  ;;  %v6321_v61 = vld [vmem:[#allocation41_spill] sm:$0xff] }
 0x313   :  { %6313 = vst [vmem:[#allocation17_spill] sm:$0xff] %v4779_v48  ;;  %v1428_v60 = vsel %vm512_vm2, %v4579_v29, %v1427_v3  ;;  %v1431_v47 = vrot.slane %v4629_v24, 6  ;;  %v1598_v38 = vrot.slane %v4607_v59, 1  ;;  %v1076_v19 = vmul.f32 %v6318_v17, %v6317_v13  ;;  %v4805_v3 = vld [vmem:[%s5974_s1 + $0x98] sm:$0xff] }
 0x314   :  { %v4789_v34 = vpop.permute.xlu1 %2112  ;;  %v4791_v46 = vpop.permute.xlu0 %2436  ;;  %v996_v55 = vadd.f32 %v992_v20, %v912_v35  ;;  %v1565_v36 = vrot.slane %v4799_v15, 4  ;;  %v1566_v49 = vrot.slane %v4805_v3, 3  ;;  %v827_v35 = vadd.f32 %v823_v56, %v743_v16  ;;  %v6319_v20 = vld [vmem:[#allocation31_spill] sm:$0xff]  ;;  %v6322_v56 = vld [vmem:[#allocation46_spill] sm:$0xff] }
 0x315   :  { %6315 = vst [vmem:[#allocation30_spill] sm:$0xff] %v4789_v34  ;;  %6316 = vst [vmem:[#allocation151_spill] sm:$0xff] %v4791_v46  ;;  %3018 = vset.pattern.permute.xlu1 %v6207_v41  ;;  %v907_v13 = vmul.f32 %v4334_v4, %v6319_v20  ;;  %v6320_v46 = vld [vmem:[#allocation44_spill] sm:$0xff]  ;;  %v1597_v42 = vsel %vm512_vm2, %v1596_v25, %v1595_v11  ;;  %v1266_v34 = vsel %vm521_vm5, %v1265_v21, %v1264_v10  ;;  %v4826_v25 = vld [vmem:[%s5974_s1 + $0xa8] sm:$0xff] }
 0x316   :  { %v578_v41 = vmul.f32 %v4584_v40, %v6320_v46  ;;  %2216 = vperm.xlu1 %3018, %v4249_v5   ;;  %v1430_v48 = vsel %vm515_vm3, %v1429_v6, %v1428_v60  ;;  %v1433_v17 = vrot.slane %v4645_v30, 5  ;;  %v1435_v33 = vrot.slane %v4674_v62, 4  ;;  %6323 = vst [vmem:[#allocation20_spill] sm:$0xff] %v4826_v25 }
 0x317   :  { %v658_v16 = vmul.f32 %v4547_v43, %v6321_v61  ;;  %v742_v20 = vmul.f32 %v4708_v52, %v6322_v56  ;;  %v1761_v46 = vrot.slane %v4555_v18, 6  ;;  %v1568_v21 = vrot.slane %v4826_v25, 2  ;;  %v6326_v25 = vld [vmem:[#allocation19_spill] sm:$0xff] }
 0x318   :  { %v1080_v10 = vadd.f32 %v1076_v19, %v996_v55  ;;  %v1599_v6 = vsel %vm515_vm3, %v1598_v38, %v1597_v42  ;;  %v1762_v11 = vrot.slane %v4593_v7, 5  ;;  %v1567_v56 = vsel %vm509_vm1, %v1566_v49, %v1565_v36  ;;  %v6327_v19 = vld [vmem:[#allocation84_spill] sm:$0xff]  ;;  %v4847_v36 = vld [vmem:[%s5974_s1 + $0xb8] sm:$0xff] }
 0x319   :  { %v4831_v60 = vpop.permute.xlu1 %2160  ;;  %v4833_v61 = vpop.permute.xlu0 %2484  ;;  %v911_v44 = vadd.f32 %v907_v13, %v827_v35  ;;  %v662_v4 = vadd.f32 %v658_v16, %v578_v41  ;;  %v1268_v45 = vsel %vm524_vm6, %v1267_v37, %v1266_v34  ;;  %v1432_v23 = vsel %vm518_vm4, %v1431_v47, %v1430_v48  ;;  %v6328_v37 = vld [vmem:[#allocation32_spill] sm:$0xff]  ;;  %v6329_v13 = vld [vmem:[#allocation22_spill] sm:$0xff] }
 0x31a   :  { %6324 = vst [vmem:[#allocation31_spill] sm:$0xff] %v4831_v60  ;;  %6325 = vst [vmem:[#allocation44_spill] sm:$0xff] %v4833_v61  ;;  %3019 = vset.pattern.permute.xlu1 %v6178_v22  ;;  %v1160_v55 = vmul.f32 %v6327_v19, %v6326_v25  ;;  %v1601_v42 = vrot.slane %v4645_v30, 7  ;;  %v1764_v38 = vrot.slane %v4579_v29, 4  ;;  %v1570_v41 = vrot.slane %v4847_v36, 1  ;;  %v6330_v22 = vld [vmem:[#allocation33_spill] sm:$0xff] }
 0x31b   :  { %2240 = vperm.xlu1 %3019, %v4249_v5   ;;  %v991_v48 = vmul.f32 %v4337_v50, %v6328_v37  ;;  %v746_v47 = vadd.f32 %v742_v20, %v662_v4  ;;  %v1600_v34 = vsel %vm518_vm4, %v4629_v24, %v1599_v6  ;;  %v1569_v49 = vsel %vm512_vm2, %v1568_v21, %v1567_v56  ;;  %v6331_v19 = vld [vmem:[#allocation43_spill] sm:$0xff] }
 0x31c   :  { %v1164_v35 = vadd.f32 %v1160_v55, %v1080_v10  ;;  %v1276_v5 = vmul.f32 %v4110_v53, %v6329_v13  ;;  %v1434_v16 = vsel %vm521_vm5, %v1433_v17, %v1432_v23  ;;  %v1763_v25 = vsel %vm509_vm1, %v1762_v11, %v1761_v46  ;;  %v6334_v17 = vld [vmem:[#allocation48_spill] sm:$0xff]  ;;  %v6338_v13 = vld [vmem:[#allocation94_spill] sm:$0xff]  ;;  %v6359_v53 = vld [vmem:[#allocation27_spill] sm:$0xff] }
 0x31d   :  { %v995_v61 = vadd.f32 %v991_v48, %v911_v44  ;;  %v1075_v60 = vmul.f32 %v4340_v58, %v6330_v22  ;;  %v826_v4 = vmul.f32 %v4561_v63, %v6331_v19  ;;  %v1603_v20 = vrot.slane %v4674_v62, 6 }
 0x31e   :  { %v4864_v6 = vpop.permute.xlu1 %2208  ;;  %v4866_v21 = vpop.permute.xlu0 %2532  ;;  %v1437_v10 = vrot.slane %v4703_v12, 3  ;;  %v1602_v56 = vsel %vm521_vm5, %v1601_v42, %v1600_v34  ;;  %v1766_v23 = vrot.slane %v4607_v59, 3  ;;  %v1571_v44 = vsel %vm515_vm3, %v1570_v41, %v1569_v49  ;;  %v4887_v41 = vld [vmem:[%s5974_s1 + $0xd8] sm:$0xff]  ;;  %v4895_v49 = vld [vmem:[%s5974_s1 + $0xc8] sm:$0xff] }
 0x31f   :  { %6332 = vst [vmem:[#allocation41_spill] sm:$0xff] %v4864_v6  ;;  %6333 = vst [vmem:[#allocation46_spill] sm:$0xff] %v4866_v21  ;;  %3021 = vset.pattern.permute.xlu1 %v6167_v54  ;;  %v830_v22 = vadd.f32 %v826_v4, %v746_v47  ;;  %v910_v46 = vmul.f32 %v4750_v28, %v6334_v17  ;;  %v1436_v11 = vsel %vm524_vm6, %v1435_v33, %v1434_v16  ;;  %v6347_v54 = vld [vmem:[#allocation45_spill] sm:$0xff] }
 0x320   :  { %v1765_v19 = vsel %vm512_vm2, %v1764_v38, %v1763_v25  ;;  %2284 = vperm.xlu1 %3021, %v3518_v26   ;;  %v1280_v55 = vadd.f32 %v1276_v5, %v1164_v35  ;;  %v6335_v37 = vrot.slane %v4703_v12, 1  ;;  %v1605_v48 = vrot.slane %v4703_v12, 5  ;;  %v6337_v35 = vld [vmem:[#allocation21_spill] sm:$0xff] }
 0x321   :  { %v1573_v47 = vrot.slane %v4887_v41, 7  ;;  %v1079_v33 = vadd.f32 %v1075_v60, %v995_v61  ;;  %v1604_v38 = vsel %vm524_vm6, %v1603_v20, %v1602_v56  ;;  %v1768_v34 = vrot.slane %v4629_v24, 2  ;;  %v6340_v20 = vld [vmem:[#allocation34_spill] sm:$0xff] }
 0x322   :  { %v4881_v42 = vsel %vm527_vm7, %v6335_v37, %v1268_v45  ;;  %v1572_v45 = vsel %vm518_vm4, %v4895_v49, %v1571_v44  ;;  %v1360_v5 = vmul.f32 %v6338_v13, %v6337_v35  ;;  %v4902_v16 = vsel %vm527_vm7, %v1437_v10, %v1436_v11  ;;  %v4914_v44 = vld [vmem:[%s5974_s1 + $0xe8] sm:$0xff]  ;;  %v6342_v11 = vld [vmem:[#allocation24_spill] sm:$0xff] }
 0x323   :  { %6336 = vst [vmem:[#allocation19_spill] sm:$0xff] %v4881_v42  ;;  %6339 = vst [vmem:[#allocation32_spill] sm:$0xff] %v4902_v16  ;;  %v1767_v60 = vsel %vm515_vm3, %v1766_v23, %v1765_v19  ;;  %v1889_v25 = vpop.permute.xlu1 %1888  ;;  %v4906_v4 = vpop.permute.xlu0 %1540  ;;  %v1159_v56 = vmul.f32 %v4351_v2, %v6340_v20  ;;  %v914_v17 = vadd.f32 %v910_v46, %v830_v22  ;;  %v1575_v10 = vrot.slane %v4914_v44, 6  ;;  %v6343_v19 = vld [vmem:[#allocation99_spill] sm:$0xff]  ;;  %v6346_v20 = vld [vmem:[#allocation98_spill] sm:$0xff] }
 0x324   :  { %6341 = vst [vmem:[#allocation22_spill] sm:$0xff] %v4914_v44  ;;  %3023 = vset.pattern.permute.xlu1 %v6171_v1  ;;  %v1364_v23 = vadd.f32 %v1360_v5, %v1280_v55  ;;  %v1444_v35 = vmul.f32 %v6343_v19, %v6342_v11  ;;  %v4921_v61 = vsel %vm527_vm7, %v1605_v48, %v1604_v38  ;;  %v6345_v46 = vld [vmem:[#allocation23_spill] sm:$0xff]  ;;  %v6350_v11 = vld [vmem:[#allocation122_spill] sm:$0xff]  ;;  %v4939_v48 = vld [vmem:[%s5974_s1 + $0xf8] sm:$0xff] }
 0x325   :  { %6344 = vst [vmem:[#allocation33_spill] sm:$0xff] %v4921_v61  ;;  %v1574_v22 = vsel %vm521_vm5, %v1573_v47, %v1572_v45  ;;  %2332 = vperm.xlu1 %3023, %v3518_v26   ;;  %v4927_v37 = vmul.f32 %v6346_v20, %v6345_v46  ;;  %v1163_v21 = vadd.f32 %v1159_v56, %v1079_v33  ;;  %v6349_v5 = vld [vmem:[#allocation35_spill] sm:$0xff]  ;;  %6351 = vst [vmem:[#allocation48_spill] sm:$0xff] %v4939_v48  ;;  %v6353_v45 = vld [vmem:[#allocation106_spill] sm:$0xff] }
 0x326   :  { %v994_v6 = vmul.f32 %v4639_v0, %v6347_v54  ;;  %v4932_v55 = vsel %vm518_vm4, %v1768_v34, %v1767_v60  ;;  %v1275_v1 = vmul.f32 %v6350_v11, %v6349_v5  ;;  %v1577_v47 = vrot.slane %v4939_v48, 5  ;;  %v4948_v54 = vld [vmem:[%s5974_s1 + $0x18] sm:$0xff]  ;;  %v6354_v56 = vld [vmem:[#allocation51_spill] sm:$0xff]  ;;  %v6357_v19 = vld [vmem:[#allocation100_spill] sm:$0xff] }
 0x327   :  { %6348 = vst [vmem:[#allocation43_spill] sm:$0xff] %v4932_v55  ;;  %v4942_v38 = vpop.permute.xlu0 %2164  ;;  %v1635_v33 = vrot.slane %v6353_v45, 5  ;;  %v1636_v34 = vrot.slane %v4948_v54, 4  ;;  %v1078_v46 = vmul.f32 %v4765_v39, %v6354_v56  ;;  %v6355_v5 = vld [vmem:[#allocation113_spill] sm:$0xff]  ;;  %v1576_v61 = vsel %vm524_vm6, %v1575_v10, %v1574_v22  ;;  %v6360_v11 = vld [vmem:[#allocation102_spill] sm:$0xff]  ;;  %v4975_v10 = vld [vmem:[%s5974_s1 + $0x28] sm:$0xff] }
 0x328   :  { %6352 = vst [vmem:[#allocation21_spill] sm:$0xff] %v4942_v38  ;;  %v998_v60 = vadd.f32 %v994_v6, %v914_v17  ;;  %v1912_v20 = vmul.f32 %v6355_v5, %v6287_v27  ;;  %v1933_v55 = vpop.permute.xlu1 %1932  ;;  %v4956_v38 = vadd.f32 %v1444_v35, %v1364_v23  ;;  %v6356_v45 = vld [vmem:[#allocation25_spill] sm:$0xff]  ;;  %v4964_v44 = vmul.f32 %v6360_v11, %v6359_v53  ;;  %v6362_v6 = vld [vmem:[#allocation36_spill] sm:$0xff]  ;;  %v6365_v5 = vld [vmem:[#allocation54_spill] sm:$0xff] }
 0x329   :  { %v4960_v13 = vmul.f32 %v6357_v19, %v6356_v45  ;;  %v6363_v17 = vld [vmem:[#allocation125_spill] sm:$0xff]  ;;  %v6364_v56 = vmov 5   ;;  %v1892_v27 = vmul.f32 %v6365_v5, %v6289_v9  ;;  %v1638_v23 = vrot.slane %v4975_v10, 3  ;;  %v6366_v11 = vld [vmem:[#allocation56_spill] sm:$0xff] }
 0x32a   :  { %6361 = vst [vmem:[#allocation24_spill] sm:$0xff] %v4964_v44  ;;  %v1359_v48 = vmul.f32 %v6363_v17, %v6362_v6  ;;  %3025 = vset.pattern.permute.xlu1 %v6364_v56  ;;  %v1677_v53 = vrot.slane %v4555_v18, 5  ;;  %v1678_v35 = vrot.slane %v4593_v7, 4  ;;  %v1279_v22 = vadd.f32 %v1275_v1, %v1163_v21  ;;  %v6369_v21 = vld [vmem:[#allocation145_spill] sm:$0xff] }
 0x32b   :  { %6358 = vst [vmem:[#allocation34_spill] sm:$0xff] %v4960_v13  ;;  %2380 = vperm.xlu1 %3025, %v3518_v26   ;;  %v1891_v45 = vmul.f32 %v4615_v14, %v4132_v31  ;;  %v4983_v6 = vsel %vm527_vm7, %v1577_v47, %v1576_v61  ;;  %v2549_v5 = vpop.permute.xlu0 %2548  ;;  %v1637_v9 = vsel %vm509_vm1, %v1636_v34, %v1635_v33  ;;  %v6368_v13 = vld [vmem:[#allocation67_spill] sm:$0xff]  ;;  %v4999_v33 = vld [vmem:[%s5974_s1 + $0x38] sm:$0xff]  ;;  %v6371_v34 = vmov 7   ;;  %v6374_v31 = vld [vmem:[#allocation116_spill] sm:$0xff] }
 0x32c   :  { %v1082_v56 = vadd.f32 %v1078_v46, %v998_v60  ;;  %v1936_v19 = vmul.f32 %v6366_v11, %v6291_v51  ;;  %v1916_v44 = vadd.f32 %v1912_v20, %v1892_v27  ;;  %v4989_v17 = vmul.f32 %v2549_v5, %v4983_v6  ;;  %v6370_v27 = vld [vmem:[#allocation87_spill] sm:$0xff] }
 0x32d   :  { %v1911_v1 = vmul.f32 %v6368_v13, %v4139_v57  ;;  %v1935_v14 = vmul.f32 %v6369_v21, %v4188_v32  ;;  %v1894_v61 = vmul.f32 %v1889_v25, %v4584_v40  ;;  %v1981_v47 = vpop.permute.xlu1 %1980  ;;  %v1640_v11 = vrot.slane %v4999_v33, 2  ;;  %v6372_v40 = vld [vmem:[#allocation47_spill] sm:$0xff]  ;;  %v6373_v32 = vld [vmem:[#allocation78_spill] sm:$0xff]  ;;  %v6379_v57 = vld [vmem:[#allocation20_spill] sm:$0xff] }
 0x32e   :  { %6367 = vst [vmem:[#allocation23_spill] sm:$0xff] %v4989_v17  ;;  %v1914_v20 = vmul.f32 %v6370_v27, %v4547_v43  ;;  %v1639_v13 = vsel %vm512_vm2, %v1638_v23, %v1637_v9  ;;  %v1679_v60 = vsel %vm509_vm1, %v1678_v35, %v1677_v53  ;;  %v1680_v46 = vrot.slane %v4579_v29, 3  ;;  %v5019_v23 = vld [vmem:[%s5974_s1 + $0x48] sm:$0xff] }
 0x32f   :  { %3027 = vset.pattern.permute.xlu1 %v6371_v34  ;;  %v1915_v25 = vadd.f32 %v1911_v1, %v1891_v45  ;;  %v1938_v5 = vmul.f32 %v1933_v55, %v4708_v52  ;;  %v1733_v21 = vrot.slane %v4799_v15, 6  ;;  %v1734_v17 = vrot.slane %v4805_v3, 5  ;;  %6375 = vst [vmem:[#allocation45_spill] sm:$0xff] %v5019_v23  ;;  %v6380_v34 = vld [vmem:[#allocation115_spill] sm:$0xff] }
 0x330   :  { %2428 = vperm.xlu1 %3027, %v3518_v26   ;;  %v1162_v27 = vmul.f32 %v4719_v8, %v6372_v40  ;;  %v1940_v43 = vadd.f32 %v1936_v19, %v1916_v44  ;;  %v1960_v9 = vmul.f32 %v6374_v31, %v6373_v32  ;;  %v1642_v55 = vrot.slane %v5019_v23, 1  ;;  %v5022_v53 = vpop.permute.xlu0 %1620  ;;  %v6377_v44 = vld [vmem:[#allocation38_spill] sm:$0xff]  ;;  %v6381_v23 = vld [vmem:[#allocation71_spill] sm:$0xff] }
 0x331   :  { %6376 = vst [vmem:[#allocation35_spill] sm:$0xff] %v5022_v53  ;;  %v1939_v35 = vadd.f32 %v1935_v14, %v1915_v25  ;;  %v1918_v15 = vadd.f32 %v1914_v20, %v1894_v61  ;;  %v1641_v3 = vsel %vm515_vm3, %v1640_v11, %v1639_v13  ;;  %v1682_v45 = vrot.slane %v4607_v59, 2  ;;  %v6378_v19 = vld [vmem:[#allocation134_spill] sm:$0xff] }
 0x332   :  { %v1363_v40 = vadd.f32 %v1359_v48, %v1279_v22  ;;  %v1443_v1 = vmul.f32 %v6378_v19, %v6377_v44  ;;  %v5028_v31 = vpop.permute.xlu1 %2028  ;;  %v1681_v52 = vsel %vm512_vm2, %v1680_v46, %v1679_v60  ;;  %v1736_v32 = vrot.slane %v6379_v57, 4  ;;  %v6383_v48 = vld [vmem:[#allocation89_spill] sm:$0xff]  ;;  %v6384_v46 = vld [vmem:[#allocation118_spill] sm:$0xff] }
 0x333   :  { %v1166_v51 = vadd.f32 %v1162_v27, %v1082_v56  ;;  %v1959_v53 = vmul.f32 %v6381_v23, %v6380_v34  ;;  %v1942_v14 = vadd.f32 %v1938_v5, %v1918_v15  ;;  %v6382_v61 = vmov 9   ;;  %v6385_v25 = vld [vmem:[#allocation14_spill] sm:$0xff]  ;;  %v6389_v15 = vld [vmem:[#allocation112_spill] sm:$0xff] }
 0x334   :  { %3029 = vset.pattern.permute.xlu1 %v6382_v61  ;;  %v1735_v11 = vsel %vm509_vm1, %v1734_v17, %v1733_v21  ;;  %v1962_v22 = vmul.f32 %v6383_v48, %v4561_v63  ;;  %v1964_v20 = vadd.f32 %v1960_v9, %v1940_v43  ;;  %v1643_v13 = vsel %vm518_vm4, %v1642_v55, %v1641_v3  ;;  %v5041_v57 = vpop.permute.xlu0 %1632  ;;  %v6386_v21 = vld [vmem:[#allocation53_spill] sm:$0xff]  ;;  %v6388_v9 = vld [vmem:[#allocation58_spill] sm:$0xff]  ;;  %v6390_v48 = vld [vmem:[#allocation39_spill] sm:$0xff] }
 0x335   :  { %2476 = vperm.xlu1 %3029, %v3518_v26   ;;  %v1684_v60 = vrot.slane %v4629_v24, 1  ;;  %v1963_v56 = vadd.f32 %v1959_v53, %v1939_v35  ;;  %v1983_v5 = vmul.f32 %v6385_v25, %v6384_v46  ;;  %v1683_v27 = vsel %vm515_vm3, %v1682_v45, %v1681_v52  ;;  %v6387_v43 = vld [vmem:[#allocation81_spill] sm:$0xff]  ;;  %v6391_v63 = vld [vmem:[#allocation135_spill] sm:$0xff]  ;;  %v6396_v46 = vld [vmem:[#allocation26_spill] sm:$0xff] }
 0x336   :  { %v1738_v17 = vrot.slane %v4847_v36, 3  ;;  %v1278_v23 = vmul.f32 %v4881_v42, %v6386_v21  ;;  %v1984_v55 = vmul.f32 %v6388_v9, %v6387_v43  ;;  %v1645_v3 = vrot.slane %v6389_v15, 7  ;;  %v5061_v52 = vld [vmem:[%s5974_s1 + $0x58] sm:$0xff]  ;;  %v6392_v9 = vld [vmem:[#allocation80_spill] sm:$0xff]  ;;  %v6397_v26 = vld [vmem:[#allocation50_spill] sm:$0xff] }
 0x337   :  { %v1737_v44 = vsel %vm512_vm2, %v1736_v32, %v1735_v11  ;;  %v5055_v53 = vmul.f32 %v6391_v63, %v6390_v48  ;;  %v1966_v35 = vadd.f32 %v1962_v22, %v1942_v14  ;;  %v1986_v25 = vmul.f32 %v1981_v47, %v4750_v28  ;;  %v5065_v45 = vpop.permute.xlu1 %2076  ;;  %v6393_v32 = vld [vmem:[#allocation123_spill] sm:$0xff]  ;;  %v6395_v28 = vld [vmem:[#allocation49_spill] sm:$0xff] }
 0x338   :  { %v1644_v36 = vsel %vm521_vm5, %v5061_v52, %v1643_v13  ;;  %v1988_v21 = vadd.f32 %v1984_v55, %v1964_v20  ;;  %v2008_v11 = vmul.f32 %v6393_v32, %v6392_v9  ;;  %v1685_v15 = vsel %vm518_vm4, %v1684_v60, %v1683_v27  ;;  %v5071_v14 = vpop.permute.xlu0 %2184  ;;  %v6398_v32 = vld [vmem:[#allocation73_spill] sm:$0xff]  ;;  %v6403_v9 = vld [vmem:[#allocation60_spill] sm:$0xff] }
 0x339   :  { %v6394_v48 = vmov 0   ;;  %v1740_v47 = vrot.slane %v4895_v49, 2  ;;  %v5074_v22 = vadd.f32 %v1443_v1, %v1363_v40  ;;  %v1362_v34 = vmul.f32 %v6396_v46, %v6395_v28  ;;  %v5086_v49 = vld [vmem:[%s5974_s1 + $0x78] sm:$0xff] }
 0x33a   :  { %3031 = vset.pattern.permute.xlu1 %v6394_v48  ;;  %v1987_v13 = vadd.f32 %v1983_v5, %v1963_v56  ;;  %v1739_v20 = vsel %vm515_vm3, %v1738_v17, %v1737_v44  ;;  %v1282_v55 = vadd.f32 %v1278_v23, %v1166_v51  ;;  %v2007_v60 = vmul.f32 %v6398_v32, %v4337_v50  ;;  %v3090_v44 = vld [vmem:[%s5974_s1 + $0x8] sm:$0xff] }
 0x33b   :  { %2257 = vperm.xlu1 %3031, %v6397_v26   ;;  %v1646_v27 = vsel %vm524_vm6, %v1645_v3, %v1644_v36  ;;  %v1647_v40 = vrot.slane %v5086_v49, 6  ;;  %v1990_v1 = vadd.f32 %v1986_v25, %v1966_v35  ;;  %v1686_v28 = vsel %vm521_vm5, %v4645_v30, %v1685_v15  ;;  %v6399_v25 = vld [vmem:[#allocation91_spill] sm:$0xff] }
 0x33c   :  { %v1687_v56 = vrot.slane %v4674_v62, 7  ;;  %v1742_v51 = vrot.slane %v4887_v41, 1  ;;  %v2012_v5 = vadd.f32 %v2008_v11, %v1988_v21  ;;  %v5093_v17 = vpop.permute.xlu1 %2124  ;;  %v5095_v23 = vpop.permute.xlu0 %2196  ;;  %v1741_v3 = vsel %vm518_vm4, %v1740_v47, %v1739_v20  ;;  %v6400_v41 = vld [vmem:[#allocation149_spill] sm:$0xff] }
 0x33d   :  { %v1803_v36 = vrot.slane %v3090_v44, 7  ;;  %v1804_v35 = vrot.slane %v4948_v54, 6  ;;  %v2010_v15 = vmul.f32 %v6399_v25, %v4639_v0  ;;  %v2011_v32 = vadd.f32 %v2007_v60, %v1987_v13  ;;  %v6402_v20 = vld [vmem:[#allocation85_spill] sm:$0xff] }
 0x33e   :  { %v2031_v21 = vmul.f32 %v6400_v41, %v4340_v58  ;;  %v1532_v11 = vadd.f32 %v4927_v37, %v4956_v38  ;;  %v6401_v50 = vmov 2   ;;  %v1366_v47 = vadd.f32 %v1362_v34, %v1282_v55  ;;  %v6404_v34 = vld [vmem:[#allocation84_spill] sm:$0xff]  ;;  %v6405_v55 = vld [vmem:[#allocation126_spill] sm:$0xff] }
 0x33f   :  { %3033 = vset.pattern.permute.xlu1 %v6401_v50  ;;  %v2032_v43 = vmul.f32 %v6403_v9, %v6402_v20  ;;  %v5112_v44 = vsel %vm527_vm7, %v1647_v40, %v1646_v27  ;;  %v1689_v54 = vrot.slane %v4703_v12, 6  ;;  %v2014_v13 = vadd.f32 %v2010_v15, %v1990_v1  ;;  %v6411_v15 = vld [vmem:[#allocation93_spill] sm:$0xff] }
 0x340   :  { %2304 = vperm.xlu1 %3033, %v6397_v26   ;;  %v2034_v60 = vmul.f32 %v5028_v31, %v4765_v39  ;;  %v1688_v25 = vsel %vm524_vm6, %v1687_v56, %v1686_v28  ;;  %v1743_v37 = vsel %vm521_vm5, %v1742_v51, %v1741_v3  ;;  %v2056_v41 = vmul.f32 %v6405_v55, %v6404_v34  ;;  %v2569_v9 = vpop.permute.xlu0 %2568  ;;  %v6407_v56 = vld [vmem:[#allocation55_spill] sm:$0xff]  ;;  %v6413_v39 = vld [vmem:[#allocation122_spill] sm:$0xff] }
 0x341   :  { %v2036_v38 = vadd.f32 %v2032_v43, %v2012_v5  ;;  %v1805_v27 = vsel %vm509_vm1, %v1804_v35, %v1803_v36  ;;  %v1806_v40 = vrot.slane %v4975_v10, 5  ;;  %v2035_v0 = vadd.f32 %v2031_v21, %v2011_v32  ;;  %v5124_v58 = vpop.permute.xlu1 %2172  ;;  %v6408_v51 = vld [vmem:[#allocation75_spill] sm:$0xff]  ;;  %v6410_v36 = vld [vmem:[#allocation48_spill] sm:$0xff] }
 0x342   :  { %v5127_v1 = vmul.f32 %v2569_v9, %v5112_v44  ;;  %v1845_v31 = vrot.slane %v4555_v18, 7  ;;  %v1846_v28 = vrot.slane %v4593_v7, 6  ;;  %v1446_v43 = vmul.f32 %v4902_v16, %v6407_v56  ;;  %v6412_v7 = vld [vmem:[#allocation22_spill] sm:$0xff] }
 0x343   :  { %v2055_v5 = vmul.f32 %v6408_v51, %v4351_v2  ;;  %v1612_v3 = vmul.f32 %v4983_v6, %v4906_v4  ;;  %v6409_v10 = vmov 4   ;;  %v1745_v35 = vrot.slane %v6410_v36, 7 }
 0x344   :  { %6406 = vst [vmem:[#allocation106_spill] sm:$0xff] %v5127_v1  ;;  %3035 = vset.pattern.permute.xlu1 %v6409_v10  ;;  %v2058_v32 = vmul.f32 %v6411_v15, %v4719_v8  ;;  %v2038_v21 = vadd.f32 %v2034_v60, %v2014_v13  ;;  %v5142_v18 = vsel %vm527_vm7, %v1689_v54, %v1688_v25  ;;  %v2581_v56 = vpop.permute.xlu0 %2580  ;;  %v1808_v51 = vrot.slane %v4999_v33, 4  ;;  %v6414_v15 = vld [vmem:[#allocation28_spill] sm:$0xff] }
 0x345   :  { %2352 = vperm.xlu1 %3035, %v6397_v26   ;;  %v1744_v55 = vsel %vm524_vm6, %v6412_v7, %v1743_v37  ;;  %v2060_v9 = vadd.f32 %v2056_v41, %v2036_v38  ;;  %v1807_v4 = vsel %vm512_vm2, %v1806_v40, %v1805_v27  ;;  %v1848_v36 = vrot.slane %v4579_v29, 5  ;;  %v6416_v37 = vld [vmem:[#allocation95_spill] sm:$0xff]  ;;  %v6417_v38 = vld [vmem:[#allocation62_spill] sm:$0xff]  ;;  %v6419_v7 = vld [vmem:[#allocation45_spill] sm:$0xff] }
 0x346   :  { %v2059_v1 = vadd.f32 %v2055_v5, %v2035_v0  ;;  %v2079_v13 = vmul.f32 %v6414_v15, %v6413_v39  ;;  %v5153_v54 = vmul.f32 %v2581_v56, %v5142_v18  ;;  %v1847_v60 = vsel %vm509_vm1, %v1846_v28, %v1845_v31  ;;  %v5160_v40 = vpop.permute.xlu1 %2220  ;;  %v6421_v56 = vld [vmem:[#allocation128_spill] sm:$0xff] }
 0x347   :  { %v1531_v25 = vadd.f32 %v5055_v53, %v5074_v22  ;;  %v2080_v41 = vmul.f32 %v6417_v38, %v6416_v37  ;;  %v1616_v27 = vadd.f32 %v1612_v3, %v1532_v11  ;;  %v5163_v29 = vsel %vm527_vm7, %v1745_v35, %v1744_v55  ;;  %v6420_v22 = vld [vmem:[#allocation94_spill] sm:$0xff]  ;;  %v6422_v35 = vld [vmem:[#allocation40_spill] sm:$0xff]  ;;  %v6425_v55 = vld [vmem:[#allocation17_spill] sm:$0xff] }
 0x348   :  { %6415 = vst [vmem:[#allocation51_spill] sm:$0xff] %v5153_v54  ;;  %v2062_v0 = vadd.f32 %v2058_v32, %v2038_v21  ;;  %v2082_v33 = vmul.f32 %v5065_v45, %v4881_v42  ;;  %v6418_v5 = vmov 6   ;;  %v1810_v31 = vrot.slane %v6419_v7, 3  ;;  %v6423_v32 = vld [vmem:[#allocation136_spill] sm:$0xff] }
 0x349   :  { %3037 = vset.pattern.permute.xlu1 %v6418_v5  ;;  %v1850_v28 = vrot.slane %v4607_v59, 4  ;;  %v2084_v53 = vadd.f32 %v2080_v41, %v2060_v9  ;;  %v2104_v15 = vmul.f32 %v6421_v56, %v6420_v22  ;;  %v1809_v11 = vsel %vm515_vm3, %v1808_v51, %v1807_v4  ;;  %v6424_v45 = vld [vmem:[#allocation52_spill] sm:$0xff]  ;;  %v1709_v42 = vpop.permute.xlu0 %1708  ;;  %v6426_v59 = vld [vmem:[#allocation34_spill] sm:$0xff]  ;;  %v6427_v4 = vld [vmem:[#allocation125_spill] sm:$0xff] }
 0x34a   :  { %2400 = vperm.xlu1 %3037, %v6397_v26   ;;  %v1849_v3 = vsel %vm512_vm2, %v1848_v36, %v1847_v60  ;;  %v1611_v21 = vmul.f32 %v6423_v32, %v6422_v35  ;;  %v1530_v38 = vmul.f32 %v6425_v55, %v6424_v45  ;;  %v1450_v54 = vadd.f32 %v1446_v43, %v1366_v47  ;;  %v6428_v51 = vld [vmem:[#allocation77_spill] sm:$0xff] }
 0x34b   :  { %v2083_v7 = vadd.f32 %v2079_v13, %v2059_v1  ;;  %v1700_v9 = vadd.f32 %v6426_v59, %v1616_v27  ;;  %v1780_v41 = vmul.f32 %v5163_v29, %v1709_v42  ;;  %v1812_v56 = vrot.slane %v5061_v52, 2  ;;  %v5185_v39 = vpop.permute.xlu1 %1883  ;;  %v6430_v1 = vld [vmem:[#allocation99_spill] sm:$0xff]  ;;  %v6431_v43 = vld [vmem:[#allocation65_spill] sm:$0xff] }
 0x34c   :  { %v1852_v8 = vrot.slane %v4629_v24, 3  ;;  %v2103_v36 = vmul.f32 %v6428_v51, %v6427_v4  ;;  %v2086_v60 = vadd.f32 %v2082_v33, %v2062_v0  ;;  %6429 = vst [vmem:[#allocation113_spill] sm:$0xff] %v5185_v39  ;;  %v1811_v35 = vsel %vm518_vm4, %v1810_v31, %v1809_v11  ;;  %v6432_v27 = vld [vmem:[#allocation97_spill] sm:$0xff]  ;;  %v6434_v51 = vld [vmem:[#allocation30_spill] sm:$0xff]  ;;  %v3091_v31 = vld [vmem:[%s5974_s1 + $0x68] sm:$0xff] }
 0x34d   :  { %v1851_v47 = vsel %vm515_vm3, %v1850_v28, %v1849_v3  ;;  %v2128_v13 = vmul.f32 %v6431_v43, %v6430_v1  ;;  %v2106_v42 = vmul.f32 %v6432_v27, %v6396_v46  ;;  %v2108_v45 = vadd.f32 %v2104_v15, %v2084_v53  ;;  %v2213_v33 = vpop.permute.xlu0 %2212  ;;  %v6435_v3 = vld [vmem:[#allocation35_spill] sm:$0xff]  ;;  %v6436_v15 = vld [vmem:[#allocation24_spill] sm:$0xff]  ;;  %v6439_v39 = vld [vmem:[#allocation57_spill] sm:$0xff] }
 0x34e   :  { %v1784_v52 = vadd.f32 %v1780_v41, %v1700_v9  ;;  %v6433_v59 = vmov 8   ;;  %v2107_v24 = vadd.f32 %v2103_v36, %v2083_v7  ;;  %v2127_v0 = vmul.f32 %v6434_v51, %v6378_v19  ;;  %v6437_v43 = vld [vmem:[#allocation43_spill] sm:$0xff]  ;;  %v6440_v4 = vld [vmem:[#allocation33_spill] sm:$0xff] }
 0x34f   :  { %3039 = vset.pattern.permute.xlu1 %v6433_v59  ;;  %v1814_v28 = vrot.slane %v3091_v31, 1  ;;  %v1854_v11 = vrot.slane %v4645_v30, 2  ;;  %v1695_v53 = vmul.f32 %v5112_v44, %v6435_v3  ;;  %v1813_v7 = vsel %vm521_vm5, %v1812_v56, %v1811_v35 }
 0x350   :  { %2448 = vperm.xlu1 %3039, %v6397_v26   ;;  %v1868_v9 = vadd.f32 %v6436_v15, %v1784_v52  ;;  %v1853_v41 = vsel %vm518_vm4, %v1852_v8, %v1851_v47  ;;  %v1615_v36 = vadd.f32 %v1611_v21, %v1531_v25  ;;  %v6438_v27 = vrot.slane %v4645_v30, 1  ;;  %v6441_v52 = vld [vmem:[#allocation98_spill] sm:$0xff]  ;;  %v5216_v35 = vpop.permute.xlu1 %1904 }
 0x351   :  { %v2110_v46 = vadd.f32 %v2106_v42, %v2086_v60  ;;  %v2130_v31 = vmul.f32 %v5093_v17, %v4902_v16  ;;  %v1534_v19 = vadd.f32 %v1530_v38, %v1450_v54  ;;  %v1614_v3 = vmul.f32 %v6440_v4, %v6439_v39  ;;  %v6442_v15 = vld [vmem:[#allocation130_spill] sm:$0xff]  ;;  %v2597_v25 = vpop.permute.xlu0 %2596  ;;  %v6444_v39 = vld [vmem:[#allocation21_spill] sm:$0xff]  ;;  %v6474_v16 = vld [vmem:[#allocation68_spill] sm:$0xff] }
 0x352   :  { %v1771_v51 = vsel %vm521_vm5, %v6438_v27, %v6437_v43  ;;  %v2132_v2 = vadd.f32 %v2128_v13, %v2108_v45  ;;  %v2152_v56 = vmul.f32 %v6442_v15, %v6441_v52  ;;  %2653 = vrot.lane.b32.xlu0 %v1868_v9, %s3109_s30  ;;  %v2131_v30 = vadd.f32 %v2127_v0, %v2107_v24  ;;  %v6446_v45 = vld [vmem:[#allocation83_spill] sm:$0xff] }
 0x353   :  { %v6443_v8 = vmov 10   ;;  %v1815_v21 = vsel %vm524_vm6, %v1814_v28, %v1813_v7  ;;  %v1855_v17 = vsel %vm521_vm5, %v1854_v11, %v1853_v41  ;;  %v1856_v54 = vrot.slane %v4674_v62, 1  ;;  %v6447_v28 = vld [vmem:[#allocation42_spill] sm:$0xff]  ;;  %v6450_v7 = vld [vmem:[#allocation105_spill] sm:$0xff]  ;;  %v6451_v43 = vld [vmem:[#allocation31_spill] sm:$0xff] }
 0x354   :  { %3041 = vset.pattern.permute.xlu1 %v6443_v8  ;;  %v2176_v38 = vmul.f32 %v6444_v39, %v4983_v6  ;;  %v1699_v60 = vadd.f32 %v1695_v53, %v1615_v36  ;;  %v1698_v47 = vmul.f32 %v5142_v18, %v5041_v57  ;;  %v5229_v13 = vmul.f32 %v2597_v25, %v5163_v29  ;;  %v6448_v11 = vld [vmem:[#allocation138_spill] sm:$0xff] }
 0x355   :  { %2496 = vperm.xlu1 %3041, %v6397_v26   ;;  %v1772_v42 = vsel %vm524_vm6, %v4674_v62, %v1771_v51  ;;  %v2151_v24 = vmul.f32 %v6446_v45, %v6391_v63  ;;  %v2134_v0 = vadd.f32 %v2130_v31, %v2110_v46  ;;  %v1779_v9 = vmul.f32 %v6448_v11, %v6447_v28  ;;  %v5245_v27 = vpop.permute.xlu1 %1928 }
 0x356   :  { %6445 = vst [vmem:[#allocation25_spill] sm:$0xff] %v5229_v13  ;;  %v1618_v6 = vadd.f32 %v1614_v3, %v1534_v19  ;;  %v2156_v53 = vadd.f32 %v2152_v56, %v2132_v2  ;;  %v5239_v57 = vsel %vm527_vm7, %v5086_v49, %v1815_v21  ;;  %v2154_v41 = vmul.f32 %v6450_v7, %v6425_v55  ;;  %v1789_v3 = vpop.permute.xlu0 %1788  ;;  %v6454_v21 = vld [vmem:[#allocation63_spill] sm:$0xff] }
 0x357   :  { %6449 = vst [vmem:[#allocation27_spill] sm:$0xff] %v5239_v57  ;;  %v2155_v36 = vadd.f32 %v2151_v24, %v2131_v30  ;;  %v2175_v62 = vmul.f32 %v6451_v43, %v6423_v32  ;;  %v1857_v46 = vsel %vm524_vm6, %v1856_v54, %v1855_v17  ;;  %v6452_v51 = vrot.slane %v4703_v12, 7  ;;  %v6455_v17 = vld [vmem:[#allocation100_spill] sm:$0xff] }
 0x358   :  { %v2180_v2 = vadd.f32 %v2176_v38, %v2156_v53  ;;  %v1702_v31 = vadd.f32 %v1698_v47, %v1618_v6  ;;  %v1783_v49 = vadd.f32 %v1779_v9, %v1699_v60  ;;  %v2199_v15 = vmul.f32 %v5071_v14, %v5112_v44  ;;  %v6456_v54 = vld [vmem:[#allocation132_spill] sm:$0xff]  ;;  %v6458_v60 = vld [vmem:[#allocation59_spill] sm:$0xff] }
 0x359   :  { %v5251_v19 = vsel %vm527_vm7, %v6452_v51, %v1772_v42  ;;  %3043 = vset.pattern.permute.xlu1 %v6394_v48  ;;  %v2158_v56 = vadd.f32 %v2154_v41, %v2134_v0  ;;  %v2178_v30 = vmul.f32 %v5124_v58, %v6440_v4  ;;  %v1863_v25 = vmul.f32 %v5239_v57, %v1789_v3  ;;  %v6461_v41 = vld [vmem:[#allocation102_spill] sm:$0xff] }
 0x35a   :  { %6453 = vst [vmem:[#allocation36_spill] sm:$0xff] %v5251_v19  ;;  %2272 = vperm.xlu1 %3043, %v6454_v21   ;;  %v2200_v39 = vmul.f32 %v6456_v54, %v6455_v17  ;;  %v5264_v38 = vsel %vm527_vm7, %v4703_v12, %v1857_v46  ;;  %v1782_v47 = vmul.f32 %v5251_v19, %v6458_v60  ;;  %v5271_v45 = vpop.permute.xlu1 %1952  ;;  %v1801_v24 = vpop.permute.xlu0 %1800  ;;  %v6460_v12 = vld [vmem:[#allocation41_spill] sm:$0xff]  ;;  %v3092_v60 = vld [vmem:[%s5973_s5] ss:$0 sm:$0xff] }
 0x35b   :  { %6457 = vst [vmem:[#allocation54_spill] sm:$0xff] %v5264_v38  ;;  %v2179_v42 = vadd.f32 %v2175_v62, %v2155_v36  ;;  %v2224_v14 = vmul.f32 %v2213_v33, %v5163_v29  ;;  %v5269_v44 = vadd.f32 %v1863_v25, %v1783_v49  ;;  %v2182_v28 = vadd.f32 %v2178_v30, %v2158_v56  ;;  %v6462_v36 = vld [vmem:[#allocation140_spill] sm:$0xff] }
 0x35c   :  { %v2204_v58 = vadd.f32 %v2200_v39, %v2180_v2  ;;  %v1786_v9 = vadd.f32 %v1782_v47, %v1702_v31  ;;  %v1866_v6 = vmul.f32 %v5264_v38, %v1801_v24  ;;  %v2223_v53 = vmul.f32 %v6460_v12, %v6448_v11  ;;  %v383_v39 = vpop.f32.mrf.mxu1  ;;  %v5347_v12 = vld [vmem:[%s5974_s1 + $0x130] sm:$0xff] }
 0x35d   :  { %6459 = vst [vmem:[#allocation56_spill] sm:$0xff] %v5269_v44  ;;  %v2203_v0 = vadd.f32 %v2199_v15, %v2179_v42  ;;  %v2202_v29 = vmul.f32 %v5095_v23, %v5142_v18  ;;  %v2248_v43 = vmul.f32 %v6462_v36, %v6461_v41  ;;  %v2226_v51 = vmul.f32 %v5160_v40, %v5251_v19  ;;  %v5359_v36 = vld [vmem:[%s5974_s1 + $0x140] sm:$0xff] }
 0x35e   :  { %3045 = vset.pattern.permute.xlu1 %v6401_v50  ;;  %v2228_v33 = vadd.f32 %v2224_v14, %v2204_v58  ;;  %v1870_v7 = vadd.f32 %v1866_v6, %v1786_v9  ;;  %v2233_v62 = vpop.permute.xlu0 %2232  ;;  %v5310_v47 = vadd.f32 %v3092_v60, %v383_v39  ;;  %v6464_v58 = vmov 1  }
 0x35f   :  { %2316 = vperm.xlu1 %3045, %v6454_v21   ;;  %v2206_v46 = vadd.f32 %v2202_v29, %v2182_v28  ;;  %v2227_v2 = vadd.f32 %v2223_v53, %v2203_v0  ;;  %v2247_v31 = vmul.f32 %v2233_v62, %v5239_v57  ;;  %v5285_v49 = vpop.permute.xlu1 %1976  ;;  %v5327_v0 = vld [vmem:[%s5974_s1 + $0x110] sm:$0xff]  ;;  %v5334_v28 = vld [vmem:[%s5974_s1 + $0x120] sm:$0xff]  ;;  %v6465_v6 = vmov 3  }
 0x360   :  { %2657 = vrot.lane.b32.xlu0 %v1870_v7, %s3109_s30  ;;  %v2252_v23 = vadd.f32 %v2248_v43, %v2228_v33  ;;  %v543_v9 = vrot.slane %v5327_v0, 7  ;;  %v545_v53 = vrot.slane %v5334_v28, 6  ;;  %v547_v43 = vrot.slane %v5347_v12, 5 }
 0x361   :  { %v5289_v18 = vadd.f32 %v2247_v31, %v2227_v2  ;;  %v2230_v15 = vadd.f32 %v2226_v51, %v2206_v46  ;;  %v625_v62 = vrot.slane %v5334_v28, 7  ;;  %v708_v51 = vrot.slane %v5327_v0, 1 }
 0x362   :  { %v2245_v3 = vpop.permute.xlu0 %2244  ;;  %v549_v31 = vrot.slane %v5359_v36, 4  ;;  %v6468_v60 = vmov 5   ;;  %v960_v19 = vrot.slane %v5327_v0, 4  ;;  %v962_v17 = vrot.slane %v5334_v28, 3 }
 0x363   :  { %3047 = vset.pattern.permute.xlu1 %v6409_v10  ;;  %6463 = vst [vmem:[#allocation67_spill] sm:$0xff] %v5289_v18  ;;  %v2250_v56 = vmul.f32 %v2245_v3, %v5264_v38  ;;  %v5375_v3 = vld [vmem:[%s5974_s1 + $0x150] sm:$0xff]  ;;  %v966_v55 = vrot.slane %v5359_v36, 1 }
 0x364   :  { %2364 = vperm.xlu1 %3047, %v6454_v21   ;;  %2661 = vrot.lane.b32.xlu0 %v2252_v23, %s3109_s30  ;;  %v5294_v40 = vpop.permute.xlu1 %2000  ;;  %v715_v4 = vrot.slane %v5375_v3, 5 }
 0x365   :  { %v2254_v30 = vadd.f32 %v2250_v56, %v2230_v15 }
 0x368   :  { %3049 = vset.pattern.permute.xlu1 %v6418_v5  ;;  %2665 = vrot.lane.b32.xlu0 %v2254_v30, %s3109_s30  ;;  %v627_v30 = vrot.slane %v5347_v12, 6 }
 0x369   :  { %2412 = vperm.xlu1 %3049, %v6454_v21   ;;  %v5299_v25 = vpop.permute.xlu1 %2024 }
 0x36d   :  { %3051 = vset.pattern.permute.xlu1 %v6433_v59 }
 0x36e   :  { %2460 = vperm.xlu1 %3051, %v6454_v21   ;;  %v5303_v54 = vpop.permute.xlu1 %2048 }
 0x372   :  { %3053 = vset.pattern.permute.xlu1 %v6443_v8 }
 0x373   :  { %2508 = vperm.xlu1 %3053, %v6454_v21   ;;  %v5312_v42 = vpop.permute.xlu1 %2072 }
 0x377   :  { %3054 = vset.pattern.permute.xlu1 %v6394_v48 }
 0x378   :  { %2267 = vperm.xlu1 %3054, %v5310_v47   ;;  %v5316_v14 = vpop.permute.xlu1 %2096 }
 0x37c   :  { %3055 = vset.pattern.permute.xlu1 %v6464_v58 }
 0x37d   :  { %2288 = vperm.xlu1 %3055, %v5310_v47   ;;  %v5320_v24 = vpop.permute.xlu1 %2120 }
 0x381   :  { %3056 = vset.pattern.permute.xlu1 %v6401_v50  ;;  %v5341_v50 = vld [vmem:[%s5974_s1 + $0x100] sm:$0xff] }
 0x382   :  { %2312 = vperm.xlu1 %3056, %v5310_v47   ;;  %v5329_v48 = vpop.permute.xlu1 %2144  ;;  %v623_v29 = vrot.slane %v5341_v50, 1  ;;  %v544_v33 = vsel %vm509_vm1, %v543_v9, %v5341_v50  ;;  %v707_v46 = vrot.slane %v5341_v50, 2  ;;  %v791_v58 = vrot.slane %v5341_v50, 3 }
 0x383   :  { %v546_v2 = vsel %vm512_vm2, %v545_v53, %v544_v33  ;;  %v792_v9 = vrot.slane %v5327_v0, 2  ;;  %v876_v53 = vrot.slane %v5327_v0, 3 }
 0x384   :  { %v548_v15 = vsel %vm515_vm3, %v547_v43, %v546_v2  ;;  %v709_v39 = vsel %vm509_vm1, %v708_v51, %v707_v46  ;;  %v551_v43 = vrot.slane %v5375_v3, 3  ;;  %v711_v46 = vrot.slane %v5347_v12, 7 }
 0x385   :  { %v550_v33 = vsel %vm518_vm4, %v549_v31, %v548_v15  ;;  %v710_v2 = vsel %vm512_vm2, %v5334_v28, %v709_v39  ;;  %v793_v38 = vsel %vm509_vm1, %v792_v9, %v791_v58  ;;  %v959_v15 = vrot.slane %v5341_v50, 5  ;;  %v5415_v58 = vld [vmem:[%s5974_s1 + $0x170] sm:$0xff] }
 0x386   :  { %3057 = vset.pattern.permute.xlu1 %v6465_v6  ;;  %v875_v6 = vrot.slane %v5341_v50, 4  ;;  %v713_v39 = vrot.slane %v5359_v36, 6  ;;  %v552_v9 = vsel %vm521_vm5, %v551_v43, %v550_v33  ;;  %v1043_v33 = vrot.slane %v5341_v50, 6 }
 0x387   :  { %2336 = vperm.xlu1 %3057, %v5310_v47   ;;  %v5353_v7 = vpop.permute.xlu1 %2168  ;;  %v961_v32 = vsel %vm509_vm1, %v960_v19, %v959_v15  ;;  %v1044_v43 = vrot.slane %v5327_v0, 5  ;;  %v964_v15 = vrot.slane %v5347_v12, 2  ;;  %v635_v52 = vrot.slane %v5415_v58, 2 }
 0x388   :  { %6466 = vst [vmem:[#allocation145_spill] sm:$0xff] %v5353_v7  ;;  %v877_v31 = vsel %vm509_vm1, %v876_v53, %v875_v6  ;;  %v712_v53 = vsel %vm515_vm3, %v711_v46, %v710_v2  ;;  %v555_v46 = vrot.slane %v5415_v58, 1  ;;  %v797_v2 = vrot.slane %v5359_v36, 7 }
 0x38b   :  { %3058 = vset.pattern.permute.xlu1 %v6409_v10  ;;  %v624_v10 = vsel %vm509_vm1, %v5327_v0, %v623_v29  ;;  %v5390_v29 = vld [vmem:[%s5974_s1 + $0x160] sm:$0xff] }
 0x38c   :  { %2360 = vperm.xlu1 %3058, %v5310_v47   ;;  %v5370_v23 = vpop.permute.xlu1 %2192  ;;  %v626_v56 = vsel %vm512_vm2, %v625_v62, %v624_v10  ;;  %v629_v62 = vrot.slane %v5359_v36, 5  ;;  %v794_v10 = vrot.slane %v5334_v28, 1  ;;  %v633_v57 = vrot.slane %v5390_v29, 3 }
 0x38d   :  { %6467 = vst [vmem:[#allocation87_spill] sm:$0xff] %v5370_v23  ;;  %v628_v51 = vsel %vm515_vm3, %v627_v30, %v626_v56  ;;  %v553_v56 = vrot.slane %v5390_v29, 2  ;;  %v631_v30 = vrot.slane %v5375_v3, 4  ;;  %v6503_v23 = vld [vmem:[#allocation70_spill] sm:$0xff] }
 0x38e   :  { %v630_v6 = vsel %vm518_vm4, %v629_v62, %v628_v51  ;;  %v795_v11 = vsel %vm512_vm2, %v794_v10, %v793_v38  ;;  %v714_v38 = vsel %vm518_vm4, %v713_v39, %v712_v53  ;;  %v6471_v10 = vmov 7  }
 0x38f   :  { %v632_v51 = vsel %vm521_vm5, %v631_v30, %v630_v6  ;;  %v796_v19 = vsel %vm515_vm3, %v5347_v12, %v795_v11  ;;  %v717_v30 = vrot.slane %v5390_v29, 4  ;;  %v963_v39 = vsel %vm512_vm2, %v962_v17, %v961_v32 }
 0x390   :  { %3059 = vset.pattern.permute.xlu1 %v6468_v60  ;;  %v878_v60 = vrot.slane %v5334_v28, 2  ;;  %v1046_v6 = vrot.slane %v5334_v28, 4  ;;  %v634_v53 = vsel %vm524_vm6, %v633_v57, %v632_v51  ;;  %v799_v11 = vrot.slane %v5375_v3, 6  ;;  %v6472_v51 = vld [vmem:[#allocation69_spill] sm:$0xff] }
 0x391   :  { %2384 = vperm.xlu1 %3059, %v5310_v47   ;;  %v5401_v41 = vpop.permute.xlu1 %2216  ;;  %v965_v17 = vsel %vm515_vm3, %v964_v15, %v963_v39  ;;  %v1048_v57 = vrot.slane %v5347_v12, 3  ;;  %v885_v15 = vrot.slane %v5390_v29, 6  ;;  %v6475_v39 = vld [vmem:[#allocation79_spill] sm:$0xff] }
 0x392   :  { %6469 = vst [vmem:[#allocation47_spill] sm:$0xff] %v5401_v41  ;;  %v879_v13 = vsel %vm512_vm2, %v878_v60, %v877_v31  ;;  %v554_v60 = vsel %vm524_vm6, %v553_v56, %v552_v9  ;;  %v716_v56 = vsel %vm521_vm5, %v715_v4, %v714_v38  ;;  %v798_v9 = vsel %vm518_vm4, %v797_v2, %v796_v19  ;;  %v6473_v4 = vld [vmem:[#allocation109_spill] sm:$0xff] }
 0x393   :  { %v2276_v38 = vmul.f32 %v6473_v4, %v6472_v51  ;;  %v803_v2 = vrot.slane %v5415_v58, 4  ;;  %v6476_v51 = vld [vmem:[#allocation111_spill] sm:$0xff]  ;;  %v1050_v41 = vrot.slane %v5359_v36, 2 }
 0x394   :  { %v2320_v4 = vmul.f32 %v6476_v51, %v6475_v39  ;;  %v6479_v39 = vld [vmem:[#allocation114_spill] sm:$0xff] }
 0x395   :  { %3060 = vset.pattern.permute.xlu1 %v6418_v5  ;;  %v880_v5 = vrot.slane %v5347_v12, 1 }
 0x396   :  { %2408 = vperm.xlu1 %3060, %v5310_v47   ;;  %v5429_v62 = vpop.permute.xlu1 %2240 }
 0x397   :  { %6470 = vst [vmem:[#allocation116_spill] sm:$0xff] %v5429_v62  ;;  %v881_v31 = vsel %vm515_vm3, %v880_v5, %v879_v13  ;;  %v1045_v13 = vsel %vm509_vm1, %v1044_v43, %v1043_v33  ;;  %v719_v33 = vrot.slane %v5415_v58, 3  ;;  %v801_v43 = vrot.slane %v5390_v29, 5 }
 0x398   :  { %v882_v5 = vsel %vm518_vm4, %v5359_v36, %v881_v31  ;;  %v1047_v19 = vsel %vm512_vm2, %v1046_v6, %v1045_v13  ;;  %v800_v31 = vsel %vm521_vm5, %v799_v11, %v798_v9  ;;  %v967_v62 = vsel %vm518_vm4, %v966_v55, %v965_v17  ;;  %v5480_v9 = vld [vmem:[%s5974_s1 + $0x118] sm:$0xff] }
 0x399   :  { %v1049_v6 = vsel %vm515_vm3, %v1048_v57, %v1047_v19  ;;  %v1127_v13 = vrot.slane %v5341_v50, 7  ;;  %v1128_v11 = vrot.slane %v5327_v0, 6  ;;  %v969_v55 = vrot.slane %v5390_v29, 7 }
 0x39a   :  { %3061 = vset.pattern.permute.xlu1 %v6471_v10  ;;  %v883_v10 = vrot.slane %v5375_v3, 7  ;;  %v968_v0 = vsel %vm521_vm5, %v5375_v3, %v967_v62  ;;  %v1052_v17 = vrot.slane %v5375_v3, 1  ;;  %v1130_v57 = vrot.slane %v5334_v28, 5 }
 0x39b   :  { %2432 = vperm.xlu1 %3061, %v5310_v47   ;;  %v2285_v32 = vpop.permute.xlu1 %2284  ;;  %v1243_v19 = vrot.slane %v5480_v9, 7  ;;  %v1129_v28 = vsel %vm509_vm1, %v1128_v11, %v1127_v13  ;;  %v6480_v13 = vld [vmem:[#allocation80_spill] sm:$0xff] }
 0x39c   :  { %v2296_v18 = vmul.f32 %v2285_v32, %v6474_v16  ;;  %v884_v32 = vsel %vm521_vm5, %v883_v10, %v882_v5  ;;  %v6477_v5 = vld [vmem:[#allocation78_spill] sm:$0xff] }
 0x39d   :  { %v886_v50 = vsel %vm524_vm6, %v885_v15, %v884_v32  ;;  %v5501_v15 = vsel %vm527_vm7, %v635_v52, %v634_v53 }
 0x39e   :  { %v2300_v16 = vadd.f32 %v2296_v18, %v2276_v38 }
 0x39f   :  { %3062 = vset.pattern.permute.xlu1 %v6433_v59  ;;  %v718_v59 = vsel %vm524_vm6, %v717_v30, %v716_v56  ;;  %v802_v30 = vsel %vm524_vm6, %v801_v43, %v800_v31  ;;  %v887_v56 = vrot.slane %v5415_v58, 5  ;;  %v1051_v43 = vsel %vm518_vm4, %v1050_v41, %v1049_v6  ;;  %v6478_v31 = vld [vmem:[#allocation81_spill] sm:$0xff]  ;;  %v5510_v41 = vld [vmem:[%s5974_s1 + $0x108] sm:$0xff] }
 0x3a0   :  { %2456 = vperm.xlu1 %3062, %v5310_v47   ;;  %v2333_v18 = vpop.permute.xlu1 %2332  ;;  %v2324_v38 = vadd.f32 %v2320_v4, %v2300_v16  ;;  %v2368_v51 = vmul.f32 %v6479_v39, %v6478_v31  ;;  %v5504_v62 = vsel %vm527_vm7, %v719_v33, %v718_v59  ;;  %v5515_v16 = vld [vmem:[%s5974_s1 + $0x128] sm:$0xff]  ;;  %v970_v59 = vsel %vm524_vm6, %v969_v55, %v968_v0  ;;  %v6481_v55 = vld [vmem:[#allocation117_spill] sm:$0xff] }
 0x3a1   :  { %v2344_v10 = vmul.f32 %v2333_v18, %v6477_v5  ;;  %v5521_v52 = vsel %vm527_vm7, %v887_v56, %v886_v50  ;;  %v1053_v32 = vsel %vm521_vm5, %v1052_v17, %v1051_v43  ;;  %v1132_v6 = vrot.slane %v5347_v12, 4  ;;  %v5533_v18 = vld [vmem:[%s5974_s1 + $0x138] sm:$0xff] }
 0x3a2   :  { %v1327_v56 = vrot.slane %v5510_v41, 1  ;;  %v1411_v12 = vrot.slane %v5510_v41, 2  ;;  %v2416_v5 = vmul.f32 %v6481_v55, %v6402_v20  ;;  %v1134_v17 = vrot.slane %v5359_v36, 3  ;;  %v5586_v55 = vld [vmem:[%s5974_s1 + $0x168] sm:$0xff] }
 0x3a3   :  { %v2348_v4 = vadd.f32 %v2344_v10, %v2324_v38  ;;  %v1244_v38 = vsel %vm509_vm1, %v1243_v19, %v5510_v41  ;;  %v1247_v19 = vrot.slane %v5533_v18, 5  ;;  %v1329_v31 = vrot.slane %v5515_v16, 7 }
 0x3a4   :  { %3063 = vset.pattern.permute.xlu1 %v6382_v61  ;;  %v5498_v61 = vsel %vm527_vm7, %v555_v46, %v554_v60  ;;  %v5518_v46 = vsel %vm527_vm7, %v803_v2, %v802_v30  ;;  %v971_v60 = vrot.slane %v5415_v58, 6  ;;  %v1131_v2 = vsel %vm512_vm2, %v1130_v57, %v1129_v28 }
 0x3a5   :  { %2480 = vperm.xlu1 %3063, %v5310_v47   ;;  %v2372_v33 = vadd.f32 %v2368_v51, %v2348_v4  ;;  %v1245_v30 = vrot.slane %v5515_v16, 6  ;;  %v1136_v57 = vrot.slane %v5375_v3, 2  ;;  %v1133_v43 = vsel %vm515_vm3, %v1132_v6, %v1131_v2  ;;  %v5558_v4 = vld [vmem:[%s5974_s1 + $0x148] sm:$0xff]  ;;  %v6483_v6 = vld [vmem:[#allocation37_spill] sm:$0xff]  ;;  %v6484_v2 = vld [vmem:[#allocation124_spill] sm:$0xff] }
 0x3a6   :  { %v2381_v53 = vpop.permute.xlu1 %2380  ;;  %v5545_v50 = vsel %vm527_vm7, %v971_v60, %v970_v59  ;;  %v1054_v20 = vsel %vm524_vm6, %v5390_v29, %v1053_v32  ;;  %v1328_v3 = vsel %vm509_vm1, %v5480_v9, %v1327_v56  ;;  %v6482_v60 = vmov 11  }
 0x3a7   :  { %v2392_v11 = vmul.f32 %v2381_v53, %v6480_v13  ;;  %v1246_v36 = vsel %vm512_vm2, %v1245_v30, %v1244_v38  ;;  %v1138_v53 = vrot.slane %v5390_v29, 1  ;;  %v1495_v59 = vrot.slane %v5510_v41, 3  ;;  %v5577_v29 = vld [vmem:[%s5974_s1 + $0x158] sm:$0xff] }
 0x3a8   :  { %v1496_v32 = vrot.slane %v5480_v9, 2  ;;  %v1135_v13 = vsel %vm518_vm4, %v1134_v17, %v1133_v43  ;;  %v2464_v38 = vmul.f32 %v6484_v2, %v6416_v37  ;;  %v1248_v30 = vsel %vm515_vm3, %v1247_v19, %v1246_v36 }
 0x3a9   :  { %3064 = vset.pattern.permute.xlu1 %v6443_v8  ;;  %v1412_v8 = vrot.slane %v5480_v9, 1  ;;  %v2396_v10 = vadd.f32 %v2392_v11, %v2372_v33  ;;  %v1331_v11 = vrot.slane %v5533_v18, 6  ;;  %v1249_v56 = vrot.slane %v5558_v4, 4 }
 0x3aa   :  { %2504 = vperm.xlu1 %3064, %v5310_v47   ;;  %v1333_v37 = vrot.slane %v5558_v4, 5  ;;  %v1497_v19 = vsel %vm509_vm1, %v1496_v32, %v1495_v59  ;;  %v1137_v36 = vsel %vm521_vm5, %v1136_v57, %v1135_v13  ;;  %v6485_v32 = vld [vmem:[#allocation127_spill] sm:$0xff]  ;;  %v1582_v13 = vrot.slane %v5515_v16, 2 }
 0x3ab   :  { %v2429_v39 = vpop.permute.xlu1 %2428  ;;  %v2420_v51 = vadd.f32 %v2416_v5, %v2396_v10  ;;  %v1413_v33 = vsel %vm509_vm1, %v1412_v8, %v1411_v12  ;;  %v1330_v12 = vsel %vm512_vm2, %v1329_v31, %v1328_v3  ;;  %v1415_v8 = vrot.slane %v5533_v18, 7 }
 0x3ac   :  { %v2440_v28 = vmul.f32 %v2429_v39, %v6404_v34  ;;  %v1414_v5 = vsel %vm512_vm2, %v5515_v16, %v1413_v33  ;;  %v1498_v10 = vrot.slane %v5515_v16, 1  ;;  %v1579_v31 = vrot.slane %v5510_v41, 4 }
 0x3ad   :  { %v1580_v39 = vrot.slane %v5480_v9, 3  ;;  %v1251_v3 = vrot.slane %v5577_v29, 3  ;;  %v1253_v33 = vrot.slane %v5586_v55, 2  ;;  %v1416_v59 = vsel %vm515_vm3, %v1415_v8, %v1414_v5 }
 0x3ae   :  { %3065 = vset.pattern.permute.xlu1 %v6482_v60  ;;  %v2444_v34 = vadd.f32 %v2440_v28, %v2420_v51  ;;  %v1332_v28 = vsel %vm515_vm3, %v1331_v11, %v1330_v12  ;;  %v1417_v60 = vrot.slane %v5558_v4, 6  ;;  %v2512_v2 = vmul.f32 %v6485_v32, %v6430_v1 }
 0x3af   :  { %2524 = vperm.xlu1 %3065, %v6483_v6   ;;  %v1499_v57 = vsel %vm512_vm2, %v1498_v10, %v1497_v19  ;;  %v1334_v11 = vsel %vm518_vm4, %v1333_v37, %v1332_v28  ;;  %v1419_v12 = vrot.slane %v5577_v29, 5  ;;  %v6486_v0 = vmov 12   ;;  %v6490_v19 = vld [vmem:[#allocation101_spill] sm:$0xff] }
 0x3b0   :  { %v2477_v17 = vpop.permute.xlu1 %2476  ;;  %v2468_v43 = vadd.f32 %v2464_v38, %v2444_v34  ;;  %v1335_v34 = vrot.slane %v5577_v29, 4  ;;  %v1418_v1 = vsel %vm518_vm4, %v1417_v60, %v1416_v59  ;;  %v6491_v37 = vrot.slane %v5415_v58, 7 }
 0x3b1   :  { %v2488_v51 = vmul.f32 %v2477_v17, %v6420_v22  ;;  %v1250_v22 = vsel %vm518_vm4, %v1249_v56, %v1248_v30  ;;  %v1581_v17 = vsel %vm509_vm1, %v1580_v39, %v1579_v31  ;;  %v1501_v30 = vrot.slane %v5558_v4, 7  ;;  %v6488_v56 = vld [vmem:[#allocation103_spill] sm:$0xff] }
 0x3b2   :  { %v5624_v31 = vsel %vm527_vm7, %v6491_v37, %v1054_v20  ;;  %v1252_v39 = vsel %vm521_vm5, %v1251_v3, %v1250_v22  ;;  %v1500_v28 = vsel %vm515_vm3, %v5533_v18, %v1499_v57  ;;  %v1584_v60 = vrot.slane %v5533_v18, 1  ;;  %v6493_v37 = vld [vmem:[#allocation115_spill] sm:$0xff] }
 0x3b3   :  { %2528 = vperm.xlu1 %3065, %v5310_v47   ;;  %v2492_v38 = vadd.f32 %v2488_v51, %v2468_v43  ;;  %v6489_v43 = vld [vmem:[#allocation129_spill] sm:$0xff]  ;;  %v1337_v59 = vrot.slane %v5586_v55, 3  ;;  %v1421_v32 = vrot.slane %v5586_v55, 4  ;;  %v1503_v3 = vrot.slane %v5577_v29, 6 }
 0x3b4   :  { %v2295_v10 = vmul.f32 %v6489_v43, %v6488_v56  ;;  %v1420_v56 = vsel %vm521_vm5, %v1419_v12, %v1418_v1  ;;  %v1254_v22 = vsel %vm524_vm6, %v1253_v33, %v1252_v39  ;;  %v6494_v39 = vld [vmem:[#allocation131_spill] sm:$0xff]  ;;  %v825_v44 = vmul.f32 %v5518_v46, %v6503_v23 }
 0x3b5   :  { %v5613_v5 = vadd.f32 %v2512_v2, %v2492_v38  ;;  %v1583_v2 = vsel %vm512_vm2, %v1582_v13, %v1581_v17  ;;  %v1139_v38 = vsel %vm524_vm6, %v1138_v53, %v1137_v36  ;;  %v1663_v53 = vrot.slane %v5510_v41, 5 }
 0x3b6   :  { %v2258_v8 = vpop.permute.xlu1 %2257  ;;  %v1585_v17 = vsel %vm515_vm3, %v1584_v60, %v1583_v2  ;;  %v1664_v36 = vrot.slane %v5480_v9, 4  ;;  %v1422_v33 = vsel %vm524_vm6, %v1421_v32, %v1420_v56  ;;  %v5661_v2 = vsel %vm527_vm7, %v5415_v58, %v1139_v38 }
 0x3b7   :  { %3068 = vset.pattern.permute.xlu1 %v6486_v0  ;;  %6487 = vst [vmem:[#allocation38_spill] sm:$0xff] %v5613_v5  ;;  %v2275_v51 = vmul.f32 %v2258_v8, %v6490_v19  ;;  %v5629_v0 = vld [vmem:[%s5974_s1 + $0x178] sm:$0xff]  ;;  %v1336_v8 = vsel %vm521_vm5, %v1335_v34, %v1334_v11  ;;  %v1502_v19 = vsel %vm518_vm4, %v1501_v30, %v1500_v28  ;;  %v6492_v34 = vld [vmem:[#allocation107_spill] sm:$0xff]  ;;  %s3110_s1 = smov 96  }
 0x3b8   :  { %2544 = vperm.xlu1 %3068, %v6397_v26   ;;  %v1255_v57 = vrot.slane %v5629_v0, 1  ;;  %v1339_v43 = vrot.slane %v5629_v0, 2  ;;  %v1338_v12 = vsel %vm524_vm6, %v1337_v59, %v1336_v8  ;;  %v1423_v1 = vrot.slane %v5629_v0, 3 }
 0x3b9   :  { %v2299_v20 = vadd.f32 %v2295_v10, %v2275_v51  ;;  %v1505_v10 = vrot.slane %v5586_v55, 5  ;;  %v1504_v30 = vsel %vm521_vm5, %v1503_v3, %v1502_v19  ;;  %v1587_v51 = vrot.slane %v5577_v29, 7 }
 0x3ba   :  { %v2343_v28 = vmul.f32 %v6494_v39, %v6493_v37  ;;  %v5664_v59 = vsel %vm527_vm7, %v1255_v57, %v1254_v22  ;;  %v1586_v32 = vsel %vm518_vm4, %v5558_v4, %v1585_v17  ;;  %v1666_v8 = vrot.slane %v5515_v16, 3  ;;  %v6498_v37 = vld [vmem:[#allocation133_spill] sm:$0xff] }
 0x3bb   :  { %v2305_v13 = vpop.permute.xlu1 %2304  ;;  %v5671_v56 = vsel %vm527_vm7, %v1339_v43, %v1338_v12  ;;  %v1507_v3 = vrot.slane %v5629_v0, 4  ;;  %v5676_v38 = vsel %vm527_vm7, %v1423_v1, %v1422_v33  ;;  %v1506_v22 = vsel %vm524_vm6, %v1505_v10, %v1504_v30  ;;  %v6497_v1 = vld [vmem:[#allocation119_spill] sm:$0xff] }
 0x3bc   :  { %2552 = vperm.xlu1 %3068, %v5310_v47   ;;  %v2319_v11 = vmul.f32 %v2305_v13, %v6492_v34  ;;  %v1589_v57 = vrot.slane %v5586_v55, 6  ;;  %v6495_v13 = vld [vmem:[#allocation118_spill] sm:$0xff]  ;;  %v1588_v34 = vsel %vm521_vm5, %v1587_v51, %v1586_v32  ;;  %v1668_v43 = vrot.slane %v5533_v18, 2 }
 0x3bd   :  { %v1748_v12 = vrot.slane %v5480_v9, 5  ;;  %v2391_v10 = vmul.f32 %v6498_v37, %v6497_v1  ;;  %v6499_v39 = vmov 13   ;;  %v1591_v51 = vrot.slane %v5629_v0, 5  ;;  %v6502_v37 = vld [vmem:[#allocation120_spill] sm:$0xff] }
 0x3be   :  { %v2323_v60 = vadd.f32 %v2319_v11, %v2299_v20  ;;  %v1665_v20 = vsel %vm509_vm1, %v1664_v36, %v1663_v53  ;;  %v1747_v11 = vrot.slane %v5510_v41, 6  ;;  %v6496_v53 = vld [vmem:[#allocation64_spill] sm:$0xff]  ;;  %v1673_v32 = vrot.slane %v5586_v55, 7 }
 0x3bf   :  { %v657_v36 = vmul.f32 %v5501_v15, %v6496_v53  ;;  %v1667_v33 = vsel %vm512_vm2, %v1666_v8, %v1665_v20  ;;  %v6501_v20 = vld [vmem:[#allocation66_spill] sm:$0xff]  ;;  %v1675_v7 = vrot.slane %v5629_v0, 6 }
 0x3c0   :  { %2556 = vperm.xlu1 %3068, %v6454_v21   ;;  %v2353_v19 = vpop.permute.xlu1 %2352  ;;  %v2347_v58 = vadd.f32 %v2343_v28, %v2323_v60  ;;  %v5692_v28 = vsel %vm527_vm7, %v1507_v3, %v1506_v22  ;;  %v1670_v60 = vrot.slane %v5558_v4, 1  ;;  %v1590_v3 = vsel %vm524_vm6, %v1589_v57, %v1588_v34  ;;  %v6505_v57 = vld [vmem:[#allocation141_spill] sm:$0xff] }
 0x3c1   :  { %v2367_v17 = vmul.f32 %v2353_v19, %v6495_v13  ;;  %v6500_v19 = vld [vmem:[#allocation61_spill] sm:$0xff]  ;;  %v741_v13 = vmul.f32 %v5504_v62, %v6501_v20  ;;  %v1669_v22 = vsel %vm515_vm3, %v1668_v43, %v1667_v33  ;;  %v1749_v1 = vsel %vm509_vm1, %v1748_v12, %v1747_v11  ;;  %v6506_v12 = vld [vmem:[#allocation72_spill] sm:$0xff] }
 0x3c2   :  { %v577_v8 = vmul.f32 %v5498_v61, %v6500_v19  ;;  %v1831_v19 = vrot.slane %v5510_v41, 7  ;;  %v1832_v20 = vrot.slane %v5480_v9, 6  ;;  %v5719_v23 = vsel %vm527_vm7, %v1591_v51, %v1590_v3 }
 0x3c3   :  { %v2371_v30 = vadd.f32 %v2367_v17, %v2347_v58  ;;  %v1750_v58 = vrot.slane %v5515_v16, 4  ;;  %v1671_v9 = vsel %vm518_vm4, %v1670_v60, %v1669_v22  ;;  %v1754_v33 = vrot.slane %v5558_v4, 2 }
 0x3c4   :  { %3070 = vset.pattern.permute.xlu1 %v6499_v39  ;;  %v661_v5 = vadd.f32 %v657_v36, %v577_v8  ;;  %v909_v36 = vmul.f32 %v5521_v52, %v6506_v12  ;;  %v1834_v8 = vrot.slane %v5515_v16, 5  ;;  %v1836_v60 = vrot.slane %v5533_v18, 4 }
 0x3c5   :  { %2572 = vperm.xlu1 %3070, %v6483_v6   ;;  %v2401_v17 = vpop.permute.xlu1 %2400  ;;  %v2395_v53 = vadd.f32 %v2391_v10, %v2371_v30  ;;  %v1752_v10 = vrot.slane %v5533_v18, 3  ;;  %v6504_v30 = vld [vmem:[#allocation121_spill] sm:$0xff]  ;;  %v1751_v41 = vsel %vm512_vm2, %v1750_v58, %v1749_v1  ;;  %v1756_v58 = vrot.slane %v5577_v29, 1 }
 0x3c6   :  { %v2415_v39 = vmul.f32 %v2401_v17, %v6502_v37  ;;  %v2439_v34 = vmul.f32 %v6505_v57, %v6504_v30  ;;  %v745_v11 = vadd.f32 %v741_v13, %v661_v5  ;;  %v1833_v13 = vsel %vm509_vm1, %v1832_v20, %v1831_v19  ;;  %v6508_v30 = vld [vmem:[#allocation122_spill] sm:$0xff] }
 0x3c7   :  { %v1753_v51 = vsel %vm515_vm3, %v1752_v10, %v1751_v41  ;;  %v1913_v3 = vmul.f32 %v5216_v35, %v5501_v15  ;;  %v6509_v16 = vmov 14   ;;  %v1672_v10 = vsel %vm521_vm5, %v5577_v29, %v1671_v9  ;;  %v6514_v41 = vld [vmem:[#allocation82_spill] sm:$0xff] }
 0x3c8   :  { %v2419_v43 = vadd.f32 %v2415_v39, %v2395_v53  ;;  %v829_v53 = vadd.f32 %v825_v44, %v745_v11  ;;  %v6507_v39 = vld [vmem:[#allocation74_spill] sm:$0xff]  ;;  %v6510_v44 = vld [vmem:[#allocation76_spill] sm:$0xff]  ;;  %v1835_v18 = vsel %vm512_vm2, %v1834_v8, %v1833_v13  ;;  %v6513_v11 = vld [vmem:[#allocation113_spill] sm:$0xff]  ;;  %v1937_v12 = vmul.f32 %v5245_v27, %v5504_v62 }
 0x3c9   :  { %2576 = vperm.xlu1 %3070, %v5310_v47   ;;  %v993_v5 = vmul.f32 %v5545_v50, %v6507_v39  ;;  %v1077_v1 = vmul.f32 %v5624_v31, %v6510_v44  ;;  %v1893_v35 = vmul.f32 %v6513_v11, %v5498_v61  ;;  %v1961_v9 = vmul.f32 %v5271_v45, %v5518_v46  ;;  %v6515_v8 = vld [vmem:[#allocation134_spill] sm:$0xff] }
 0x3ca   :  { %v2443_v37 = vadd.f32 %v2439_v34, %v2419_v43  ;;  %v913_v22 = vadd.f32 %v909_v36, %v829_v53  ;;  %v6511_v34 = vld [vmem:[#allocation125_spill] sm:$0xff]  ;;  %v6512_v43 = vld [vmem:[#allocation143_spill] sm:$0xff]  ;;  %v1755_v53 = vsel %vm518_vm4, %v1754_v33, %v1753_v51  ;;  %v6517_v33 = vld [vmem:[#allocation146_spill] sm:$0xff] }
 0x3cb   :  { %v2449_v17 = vpop.permute.xlu1 %2448  ;;  %v2487_v19 = vmul.f32 %v6512_v43, %v6511_v34  ;;  %v2535_v51 = vmul.f32 %v6517_v33, %v6391_v63  ;;  %v6518_v34 = vld [vmem:[#allocation88_spill] sm:$0xff]  ;;  %v1757_v43 = vsel %vm521_vm5, %v1756_v58, %v1755_v53 }
 0x3cc   :  { %v2463_v57 = vmul.f32 %v2449_v17, %v6508_v30  ;;  %v997_v36 = vadd.f32 %v993_v5, %v913_v22  ;;  %v1161_v17 = vmul.f32 %v5661_v2, %v6514_v41  ;;  %v1917_v30 = vadd.f32 %v1913_v3, %v1893_v35  ;;  %v6520_v35 = vld [vmem:[#allocation137_spill] sm:$0xff]  ;;  %v6522_v41 = vld [vmem:[#allocation142_spill] sm:$0xff] }
 0x3cd   :  { %3072 = vset.pattern.permute.xlu1 %v6509_v16  ;;  %v6516_v16 = vld [vmem:[#allocation86_spill] sm:$0xff]  ;;  %v1674_v5 = vsel %vm524_vm6, %v1673_v32, %v1672_v10  ;;  %v1837_v22 = vsel %vm515_vm3, %v1836_v60, %v1835_v18  ;;  %v1985_v3 = vmul.f32 %v5285_v49, %v5521_v52  ;;  %v1840_v32 = vrot.slane %v5577_v29, 2 }
 0x3ce   :  { %v2467_v20 = vadd.f32 %v2463_v57, %v2443_v37  ;;  %2592 = vperm.xlu1 %3072, %v6397_v26   ;;  %v1838_v26 = vrot.slane %v5558_v4, 3  ;;  %v1081_v57 = vadd.f32 %v1077_v1, %v997_v36  ;;  %v1277_v27 = vmul.f32 %v5664_v59, %v6516_v16  ;;  %v6519_v49 = vld [vmem:[#allocation90_spill] sm:$0xff]  ;;  %v6524_v16 = vld [vmem:[#allocation96_spill] sm:$0xff] }
 0x3cf   :  { %v1941_v4 = vadd.f32 %v1937_v12, %v1917_v30  ;;  %v1361_v1 = vmul.f32 %v5671_v56, %v6518_v34  ;;  %v1445_v11 = vmul.f32 %v5676_v38, %v6519_v49  ;;  %v6521_v12 = vld [vmem:[#allocation16_spill] sm:$0xff]  ;;  %v1759_v29 = vrot.slane %v5629_v0, 7  ;;  %v6528_v34 = vld [vmem:[#allocation139_spill] sm:$0xff] }
 0x3d0   :  { %v2497_v37 = vpop.permute.xlu1 %2496  ;;  %v2491_v39 = vadd.f32 %v2487_v19, %v2467_v20  ;;  %v1165_v44 = vadd.f32 %v1161_v17, %v1081_v57  ;;  %v1839_v60 = vsel %vm518_vm4, %v1838_v26, %v1837_v22  ;;  %v2009_v20 = vmul.f32 %v5294_v40, %v5545_v50 }
 0x3d1   :  { %v2511_v13 = vmul.f32 %v2497_v37, %v6515_v8  ;;  %v1965_v19 = vadd.f32 %v1961_v9, %v1941_v4  ;;  %v2298_v36 = vmul.f32 %v6521_v12, %v6520_v35  ;;  %v1842_v17 = vrot.slane %v5586_v55, 1  ;;  %v6531_v12 = vld [vmem:[#allocation15_spill] sm:$0xff] }
 0x3d2   :  { %2600 = vperm.xlu1 %3072, %v5310_v47   ;;  %v1281_v18 = vadd.f32 %v1277_v27, %v1165_v44  ;;  %v2033_v40 = vmul.f32 %v5299_v25, %v5624_v31  ;;  %v1841_v30 = vsel %vm521_vm5, %v1840_v32, %v1839_v60  ;;  %v5788_v8 = vsel %vm527_vm7, %v1675_v7, %v1674_v5  ;;  %v6526_v5 = vld [vmem:[#allocation147_spill] sm:$0xff] }
 0x3d3   :  { %v2515_v45 = vadd.f32 %v2511_v13, %v2491_v39  ;;  %v1989_v53 = vadd.f32 %v1985_v3, %v1965_v19  ;;  %v6523_v39 = vld [vmem:[#allocation92_spill] sm:$0xff]  ;;  %v2057_v57 = vmul.f32 %v5303_v54, %v5661_v2  ;;  %v1613_v27 = vmul.f32 %v5719_v23, %v6524_v16 }
 0x3d4   :  { %v1365_v37 = vadd.f32 %v1361_v1, %v1281_v18  ;;  %v1529_v26 = vmul.f32 %v5692_v28, %v6523_v39  ;;  %v6525_v22 = vmov 15   ;;  %v2081_v7 = vmul.f32 %v5312_v42, %v5664_v59  ;;  %v6529_v1 = vld [vmem:[#allocation150_spill] sm:$0xff] }
 0x3d5   :  { %v2273_v63 = vpop.permute.xlu1 %2272  ;;  %v5770_v10 = vadd.f32 %v2535_v51, %v2515_v45  ;;  %v2013_v13 = vadd.f32 %v2009_v20, %v1989_v53  ;;  %v1843_v51 = vsel %vm524_vm6, %v1842_v17, %v1841_v30  ;;  %v6527_v45 = vld [vmem:[#allocation104_spill] sm:$0xff]  ;;  %v2105_v60 = vmul.f32 %v5316_v14, %v5671_v56  ;;  %v6534_v53 = vld [vmem:[#allocation18_spill] sm:$0xff] }
 0x3d6   :  { %v2278_v58 = vmul.f32 %v2273_v63, %v6522_v41  ;;  %2604 = vperm.xlu1 %3072, %v6454_v21   ;;  %v1758_v21 = vsel %vm524_vm6, %v5586_v55, %v1757_v43  ;;  %v1449_v25 = vadd.f32 %v1445_v11, %v1365_v37  ;;  %v1697_v54 = vmul.f32 %v5788_v8, %v6527_v45  ;;  %v6532_v41 = vld [vmem:[#allocation110_spill] sm:$0xff]  ;;  %v6533_v17 = vld [vmem:[#allocation144_spill] sm:$0xff] }
 0x3d7   :  { %v2037_v4 = vadd.f32 %v2033_v40, %v2013_v13  ;;  %v5805_v44 = vsel %vm527_vm7, %v1759_v29, %v1758_v21  ;;  %v2346_v43 = vmul.f32 %v6529_v1, %v6528_v34  ;;  %v5813_v20 = vsel %vm527_vm7, %v5629_v0, %v1843_v51  ;;  %v6536_v30 = vld [vmem:[#allocation56_spill] sm:$0xff] }
 0x3d8   :  { %v2302_v9 = vadd.f32 %v2298_v36, %v2278_v58  ;;  %v1533_v55 = vadd.f32 %v1529_v26, %v1449_v25  ;;  %v2129_v49 = vmul.f32 %v5320_v24, %v5676_v38  ;;  %v1865_v58 = vmul.f32 %v5813_v20, %v6532_v41  ;;  %v6537_v25 = vld [vmem:[#allocation87_spill] sm:$0xff]  ;;  %v6542_v45 = vld [vmem:[#allocation116_spill] sm:$0xff]  ;;  %v6549_v41 = vld [vmem:[#allocation46_spill] sm:$0xff] }
 0x3d9   :  { %v2061_v32 = vadd.f32 %v2057_v57, %v2037_v4  ;;  %v2153_v0 = vmul.f32 %v5329_v48, %v5692_v28  ;;  %v2394_v40 = vmul.f32 %v6534_v53, %v6533_v17  ;;  %v2201_v16 = vmul.f32 %v6537_v25, %v5788_v8  ;;  %v6538_v48 = vld [vmem:[#allocation29_spill] sm:$0xff] }
 0x3da   :  { %3074 = vset.pattern.permute.xlu1 %v6525_v22  ;;  %v2317_v33 = vpop.permute.xlu1 %2316  ;;  %v1617_v42 = vadd.f32 %v1613_v27, %v1533_v55  ;;  %v6539_v22 = vld [vmem:[#allocation148_spill] sm:$0xff] }
 0x3db   :  { %v2322_v3 = vmul.f32 %v2317_v33, %v6526_v5  ;;  %2620 = vperm.xlu1 %3074, %v6483_v6   ;;  %v6530_v6 = vld [vmem:[#allocation108_spill] sm:$0xff]  ;;  %v2085_v18 = vadd.f32 %v2081_v7, %v2061_v32  ;;  %v6540_v33 = vld [vmem:[#allocation151_spill] sm:$0xff] }
 0x3dc   :  { %v1781_v63 = vmul.f32 %v5805_v44, %v6530_v6  ;;  %v1701_v14 = vadd.f32 %v1697_v54, %v1617_v42  ;;  %v2442_v51 = vmul.f32 %v6540_v33, %v6539_v22  ;;  %v6541_v7 = vld [vmem:[#allocation47_spill] sm:$0xff]  ;;  %v2249_v54 = vmul.f32 %v6542_v45, %v5813_v20  ;;  %v6545_v42 = vld [vmem:[#allocation26_spill] sm:$0xff]  ;;  %v6546_v6 = vld [vmem:[#allocation44_spill] sm:$0xff] }
 0x3dd   :  { %v2326_v19 = vadd.f32 %v2322_v3, %v2302_v9  ;;  %v2109_v29 = vadd.f32 %v2105_v60, %v2085_v18  ;;  %v2225_v5 = vmul.f32 %v6541_v7, %v5805_v44  ;;  %v6552_v22 = vld [vmem:[#allocation23_spill] sm:$0xff] }
 0x3de   :  { %v1785_v39 = vadd.f32 %v1781_v63, %v1701_v14  ;;  %v2490_v63 = vmul.f32 %v6546_v6, %v6545_v42  ;;  %v6548_v14 = vld [vmem:[#allocation17_spill] sm:$0xff]  ;;  %v6556_v6 = vld [vmem:[#allocation51_spill] sm:$0xff] }
 0x3df   :  { %2624 = vperm.xlu1 %3074, %v5310_v47   ;;  %v2365_v11 = vpop.permute.xlu1 %2364  ;;  %v2350_v35 = vadd.f32 %v2346_v43, %v2326_v19  ;;  %v2133_v24 = vadd.f32 %v2129_v49, %v2109_v29  ;;  %v6535_v47 = vld [vmem:[#allocation145_spill] sm:$0xff]  ;;  %v6543_v43 = vld [vmem:[#allocation19_spill] sm:$0xff] }
 0x3e0   :  { %v2370_v36 = vmul.f32 %v2365_v11, %v6531_v12  ;;  %v2177_v26 = vmul.f32 %v6535_v47, %v5719_v23  ;;  %v1869_v13 = vadd.f32 %v1865_v58, %v1785_v39  ;;  %v6544_v19 = vld [vmem:[#allocation67_spill] sm:$0xff]  ;;  %v6547_v12 = vld [vmem:[#allocation32_spill] sm:$0xff]  ;;  %v2538_v58 = vmul.f32 %v6549_v41, %v6548_v14 }
 0x3e1   :  { %v2157_v57 = vadd.f32 %v2153_v0, %v2133_v24 }
 0x3e2   :  { %v2374_v37 = vadd.f32 %v2370_v36, %v2350_v35 }
 0x3e3   :  { %2651 = vrot.lane.b32.xlu1 %v6536_v30, %s3109_s30  ;;  %v2181_v4 = vadd.f32 %v2177_v26, %v2157_v57  ;;  %v6550_v57 = vld [vmem:[#allocation98_spill] sm:$0xff] }
 0x3e4   :  { %v2413_v9 = vpop.permute.xlu1 %2412  ;;  %v2398_v21 = vadd.f32 %v2394_v40, %v2374_v37 }
 0x3e5   :  { %v2418_v27 = vmul.f32 %v2413_v9, %v6538_v48  ;;  %v2205_v55 = vadd.f32 %v2201_v16, %v2181_v4  ;;  %v6551_v16 = vld [vmem:[#allocation38_spill] sm:$0xff]  ;;  %v6553_v4 = vld [vmem:[#allocation136_spill] sm:$0xff] }
 0x3e7   :  { %v2422_v3 = vadd.f32 %v2418_v27, %v2398_v21  ;;  %2655 = vrot.lane.b32.xlu1 %v1869_v13, %s3109_s30  ;;  %v2229_v60 = vadd.f32 %v2225_v5, %v2205_v55  ;;  %v6554_v55 = vld [vmem:[#allocation106_spill] sm:$0xff] }
 0x3e9   :  { %v2461_v34 = vpop.permute.xlu1 %2460  ;;  %v2446_v1 = vadd.f32 %v2442_v51, %v2422_v3  ;;  %v2253_v49 = vadd.f32 %v2249_v54, %v2229_v60 }
 0x3ea   :  { %v2466_v32 = vmul.f32 %v2461_v34, %v6543_v43  ;;  %v6555_v34 = vld [vmem:[#allocation33_spill] sm:$0xff] }
 0x3eb   :  { %2659 = vrot.lane.b32.xlu1 %v6544_v19, %s3109_s30 }
 0x3ec   :  { %v2470_v18 = vadd.f32 %v2466_v32, %v2446_v1 }
 0x3ee   :  { %v2509_v11 = vpop.permute.xlu1 %2508  ;;  %v2494_v35 = vadd.f32 %v2490_v63, %v2470_v18 }
 0x3ef   :  { %v2514_v36 = vmul.f32 %v2509_v11, %v6547_v12  ;;  %2663 = vrot.lane.b32.xlu1 %v2253_v49, %s3109_s30 }
 0x3f1   :  { %v2518_v29 = vadd.f32 %v2514_v36, %v2494_v35 }
 0x3f3   :  { %v2268_v0 = vpop.permute.xlu1 %2267  ;;  %v2542_v17 = vadd.f32 %v2538_v58, %v2518_v29  ;;  %v6558_v58 = vld [vmem:[#allocation25_spill] sm:$0xff] }
 0x3f4   :  { %v2277_v60 = vmul.f32 %v2268_v0, %v5498_v61  ;;  %v2617_v0 = vpop.permute.xlu0 %2616 }
 0x3f8   :  { %v2289_v53 = vpop.permute.xlu1 %2288 }
 0x3f9   :  { %v2297_v43 = vmul.f32 %v2289_v53, %v5501_v15 }
 0x3fb   :  { %v2301_v18 = vadd.f32 %v2297_v43, %v2277_v60 }
 0x3fd   :  { %v2313_v40 = vpop.permute.xlu1 %2312 }
 0x3fe   :  { %v2321_v19 = vmul.f32 %v2313_v40, %v5504_v62  ;;  %v6559_v40 = vld [vmem:[#allocation138_spill] sm:$0xff] }
 0x400   :  { %v2325_v35 = vadd.f32 %v2321_v19, %v2301_v18 }
 0x402   :  { %v2337_v37 = vpop.permute.xlu1 %2336 }
 0x403   :  { %v2345_v49 = vmul.f32 %v2337_v37, %v5518_v46 }
 0x405   :  { %v2349_v41 = vadd.f32 %v2345_v49, %v2325_v35 }
 0x407   :  { %v2361_v39 = vpop.permute.xlu1 %2360 }
 0x408   :  { %v2369_v12 = vmul.f32 %v2361_v39, %v5521_v52  ;;  %v6560_v39 = vld [vmem:[#allocation27_spill] sm:$0xff] }
 0x40a   :  { %v2373_v29 = vadd.f32 %v2369_v12, %v2349_v41 }
 0x40c   :  { %v2385_v24 = vpop.permute.xlu1 %2384 }
 0x40d   :  { %v2393_v15 = vmul.f32 %v2385_v24, %v5545_v50 }
 0x411   :  { %v2409_v47 = vpop.permute.xlu1 %2408 }
 0x412   :  { %v2417_v62 = vmul.f32 %v2409_v47, %v5624_v31 }
 0x416   :  { %v2433_v26 = vpop.permute.xlu1 %2432 }
 0x417   :  { %v2441_v53 = vmul.f32 %v2433_v26, %v5661_v2 }
 0x41b   :  { %v2457_v30 = vpop.permute.xlu1 %2456 }
 0x41c   :  { %v2465_v52 = vmul.f32 %v2457_v30, %v5664_v59  ;;  %v2629_v59 = vpop.permute.xlu0 %2628 }
 0x420   :  { %v2481_v9 = vpop.permute.xlu1 %2480  ;;  %v2654_v43 = vpop.permute.xlu0 %2653 }
 0x421   :  { %v2489_v50 = vmul.f32 %v2481_v9, %v5671_v56 }
 0x424   :  { %v2658_v19 = vpop.permute.xlu0 %2657 }
 0x425   :  { %v2505_v21 = vpop.permute.xlu1 %2504 }
 0x426   :  { %v2513_v31 = vmul.f32 %v2505_v21, %v5676_v38 }
 0x42a   :  { %v2525_v13 = vpop.permute.xlu1 %2524 }
 0x42b   :  { %v2536_v25 = vmul.f32 %v2525_v13, %v6550_v57  ;;  %v2631_v57 = vmul.f32 %v2617_v0, %v6560_v39 }
 0x42d   :  { %v2540_v48 = vadd.f32 %v2536_v25, %v6551_v16 }
 0x42e   :  { %v2529_v27 = vpop.permute.xlu1 %2528 }
 0x42f   :  { %v2564_v33 = vadd.f32 %v6552_v22, %v2540_v48  ;;  %v2537_v47 = vmul.f32 %v2529_v27, %v5692_v28 }
 0x433   :  { %v2545_v51 = vpop.permute.xlu1 %2544 }
 0x434   :  { %v2559_v7 = vmul.f32 %v2545_v51, %v6553_v4 }
 0x436   :  { %v2563_v5 = vadd.f32 %v2559_v7, %v5770_v10  ;;  %v6557_v10 = vld [vmem:[#allocation100_spill] sm:$0xff]  ;;  %v6562_v7 = vld [vmem:[#allocation54_spill] sm:$0xff] }
 0x437   :  { %v2553_v3 = vpop.permute.xlu1 %2552 }
 0x438   :  { %v2587_v45 = vadd.f32 %v6554_v55, %v2563_v5  ;;  %v2561_v4 = vmul.f32 %v2553_v3, %v5719_v23  ;;  %v2634_v5 = vmul.f32 %v2629_v59, %v6562_v7 }
 0x43b   :  { %v2557_v54 = vpop.permute.xlu1 %2556 }
 0x43c   :  { %v2562_v1 = vmul.f32 %v2557_v54, %v6555_v34  ;;  %v6563_v34 = vld [vmem:[#allocation102_spill] sm:$0xff] }
 0x43e   :  { %v2566_v32 = vadd.f32 %v2562_v1, %v2542_v17  ;;  %v2397_v17 = vadd.f32 %v2393_v15, %v2373_v29 }
 0x440   :  { %v2573_v42 = vpop.permute.xlu1 %2572  ;;  %v2590_v63 = vadd.f32 %v6556_v6, %v2566_v32  ;;  %v2421_v13 = vadd.f32 %v2417_v62, %v2397_v17  ;;  %v6574_v62 = vld [vmem:[#allocation7_spill] sm:$0xff] }
 0x441   :  { %v2584_v11 = vmul.f32 %v2573_v42, %v6557_v10  ;;  %v6575_v0 = vmax.f32 %v6574_v62, 0.0 }
 0x442   :  { %v2445_v16 = vadd.f32 %v2441_v53, %v2421_v13 }
 0x443   :  { %v2588_v36 = vadd.f32 %v2584_v11, %v2564_v33  ;;  %v6561_v33 = vld [vmem:[#allocation36_spill] sm:$0xff] }
 0x444   :  { %v2577_v14 = vpop.permute.xlu1 %2576  ;;  %v2469_v22 = vadd.f32 %v2465_v52, %v2445_v16  ;;  %v6568_v11 = vld [vmem:[#allocation4_spill] sm:$0xff]  ;;  %v6578_v52 = vld [vmem:[#allocation9_spill] sm:$0xff]  ;;  %v6580_v16 = vld [vmem:[#allocation11_spill] sm:$0xff] }
 0x445   :  { %v2612_v61 = vadd.f32 %v6558_v58, %v2588_v36  ;;  %v2585_v55 = vmul.f32 %v2577_v14, %v5788_v8  ;;  %v6564_v8 = vld [vmem:[#allocation2_spill] sm:$0xff]  ;;  %v6569_v35 = vmax.f32 %v6568_v11, 0.0  ;;  %v6570_v36 = vld [vmem:[#allocation5_spill] sm:$0xff]  ;;  %v6579_v39 = vmax.f32 %v6578_v52, 0.0 }
 0x446   :  { %v2493_v2 = vadd.f32 %v2489_v50, %v2469_v22  ;;  %v6571_v14 = vmax.f32 %v6570_v36, 0.0  ;;  %v6572_v58 = vld [vmem:[#allocation6_spill] sm:$0xff]  ;;  %v6581_v50 = vmax.f32 %v6580_v16, 0.0 }
 0x447   :  { %v2690_v12 = vadd.f32 %v2658_v19, %v6569_v35  ;;  %v6582_v22 = vld [vmem:[#allocation10_spill] sm:$0xff] }
 0x448   :  { %v2517_v30 = vadd.f32 %v2513_v31, %v2493_v2  ;;  %v6583_v31 = vmax.f32 %v6582_v22, 0.0 }
 0x449   :  { %v2593_v46 = vpop.permute.xlu1 %2592 }
 0x44a   :  { %v2607_v37 = vmul.f32 %v2593_v46, %v6559_v40  ;;  %v2541_v9 = vadd.f32 %v2537_v47, %v2517_v30  ;;  %v6576_v40 = vld [vmem:[#allocation8_spill] sm:$0xff] }
 0x44b   :  { %v6586_v30 = vld [vmem:[#allocation12_spill] sm:$0xff] }
 0x44c   :  { %v2611_v25 = vadd.f32 %v2607_v37, %v2587_v45  ;;  %v2565_v21 = vadd.f32 %v2561_v4, %v2541_v9  ;;  %v6577_v37 = vmax.f32 %v6576_v40, 0.0  ;;  %v6587_v4 = vmax.f32 %v6586_v30, 0.0 }
 0x44d   :  { %v2601_v24 = vpop.permute.xlu1 %2600 }
 0x44e   :  { %v2635_v48 = vadd.f32 %v2631_v57, %v2611_v25  ;;  %v2609_v54 = vmul.f32 %v2601_v24, %v5805_v44  ;;  %v2589_v27 = vadd.f32 %v2585_v55, %v2565_v21  ;;  %v6565_v44 = vmax.f32 %v6564_v8, 0.0 }
 0x450   :  { %2667 = vrot.lane.b32.xlu1 %v2635_v48, %s3109_s30  ;;  %v2613_v60 = vadd.f32 %v2609_v54, %v2589_v27  ;;  %v2688_v6 = vadd.f32 %v2654_v43, %v6565_v44 }
 0x451   :  { %v2605_v26 = vpop.permute.xlu1 %2604 }
 0x452   :  { %v2610_v51 = vmul.f32 %v2605_v26, %v6561_v33  ;;  %v6584_v33 = vld [vmem:[#allocation13_spill] sm:$0xff] }
 0x454   :  { %v2614_v56 = vadd.f32 %v2610_v51, %v2590_v63  ;;  %v6566_v63 = vld [vmem:[#allocation3_spill] sm:$0xff]  ;;  %v6585_v51 = vmax.f32 %v6584_v33, 0.0 }
 0x455   :  { %v6567_v18 = vmax.f32 %v6566_v63, 0.0 }
 0x456   :  { %v2638_v45 = vadd.f32 %v2634_v5, %v2614_v56  ;;  %v2621_v38 = vpop.permute.xlu1 %2620 }
 0x457   :  { %v2632_v28 = vmul.f32 %v2621_v38, %v6563_v34 }
 0x459   :  { %v2636_v1 = vadd.f32 %v2632_v28, %v2612_v61  ;;  %v6573_v61 = vmax.f32 %v6572_v58, 0.0 }
 0x45a   :  { %v2625_v32 = vpop.permute.xlu1 %2624 }
 0x45b   :  { %v2633_v23 = vmul.f32 %v2625_v32, %v5813_v20  ;;  %2669 = vrot.lane.b32.xlu0 %v2636_v1, %s3109_s30  ;;  %v2662_v20 = vpop.permute.xlu0 %2661 }
 0x45c   :  { %v2692_v29 = vadd.f32 %v2662_v20, %v6573_v61 }
 0x45d   :  { %v2637_v3 = vadd.f32 %v2633_v23, %v2613_v60 }
 0x45e   :  { %v2652_v42 = vpop.permute.xlu1 %2651 }
 0x45f   :  { %2671 = vrot.lane.b32.xlu1 %v2637_v3, %s3109_s30  ;;  %2673 = vrot.lane.b32.xlu0 %v2638_v45, %s3109_s30  ;;  %v2687_v49 = vadd.f32 %v2652_v42, %v6567_v18  ;;  %v2666_v53 = vpop.permute.xlu0 %2665 }
 0x460   :  { %v2694_v13 = vadd.f32 %v2666_v53, %v6577_v37 }
 0x462   :  { %v2656_v10 = vpop.permute.xlu1 %2655 }
 0x463   :  { %2711 = vrot.lane.b32.xlu1 %v2687_v49, %s3110_s1  ;;  %2713 = vrot.lane.b32.xlu0 %v2688_v6, %s3110_s1  ;;  %v2689_v41 = vadd.f32 %v2656_v10, %v6571_v14 }
 0x466   :  { %v2660_v15 = vpop.permute.xlu1 %2659 }
 0x467   :  { %2715 = vrot.lane.b32.xlu1 %v2689_v41, %s3110_s1  ;;  %2717 = vrot.lane.b32.xlu0 %v2690_v12, %s3110_s1  ;;  %v2691_v17 = vadd.f32 %v2660_v15, %v6575_v0 }
 0x46a   :  { %v2664_v46 = vpop.permute.xlu1 %2663 }
 0x46b   :  { %2719 = vrot.lane.b32.xlu1 %v2691_v17, %s3110_s1  ;;  %2721 = vrot.lane.b32.xlu0 %v2692_v29, %s3110_s1  ;;  %v2693_v57 = vadd.f32 %v2664_v46, %v6579_v39 }
 0x46f   :  { %2723 = vrot.lane.b32.xlu1 %v2693_v57, %s3110_s1  ;;  %2725 = vrot.lane.b32.xlu0 %v2694_v13, %s3110_s1 }
 0x4c2   :  { %v2668_v25 = vpop.permute.xlu1 %2667 }
 0x4c3   :  { %v2695_v24 = vadd.f32 %v2668_v25, %v6581_v50 }
 0x4c5   :  { %2727 = vrot.lane.b32.xlu1 %v2695_v24, %s3110_s1 }
 0x4cd   :  { %v2670_v48 = vpop.permute.xlu0 %2669 }
 0x4ce   :  { %v2696_v2 = vadd.f32 %v2670_v48, %v6583_v31 }
 0x4d0   :  { %2729 = vrot.lane.b32.xlu0 %v2696_v2, %s3110_s1 }
 0x4d1   :  { %v2672_v47 = vpop.permute.xlu1 %2671  ;;  %v2674_v26 = vpop.permute.xlu0 %2673 }
 0x4d2   :  { %v2697_v59 = vadd.f32 %v2672_v47, %v6585_v51  ;;  %v2698_v7 = vadd.f32 %v2674_v26, %v6587_v4 }
 0x4d4   :  { %2731 = vrot.lane.b32.xlu1 %v2697_v59, %s3110_s1  ;;  %2733 = vrot.lane.b32.xlu0 %v2698_v7, %s3110_s1 }
 0x4d5   :  { %v2712_v5 = vpop.permute.xlu1 %2711  ;;  %v2714_v56 = vpop.permute.xlu0 %2713 }
 0x4d6   :  { %v2747_v9 = vsel %vm46_vm0, %v2712_v5, %v2652_v42  ;;  %v2748_v55 = vsel %vm46_vm0, %v2714_v56, %v2654_v43 }
 0x4d7   :  { %2760 = vst.msk [vmem:[%s5975_s6] sm:$0xff] %vm2759_vm8, %v2747_v9  ;;  %2761 = vst.msk [vmem:[%s5975_s6 + $0x8] sm:$0xff] %vm2759_vm8, %v2748_v55 }
 0x4d9   :  { %v2716_v45 = vpop.permute.xlu1 %2715  ;;  %v2718_v38 = vpop.permute.xlu0 %2717 }
 0x4da   :  { %v2749_v21 = vsel %vm46_vm0, %v2716_v45, %v2656_v10  ;;  %v2750_v54 = vsel %vm46_vm0, %v2718_v38, %v2658_v19 }
 0x4db   :  { %2762 = vst.msk [vmem:[%s5975_s6 + $0x10] sm:$0xff] %vm2759_vm8, %v2749_v21  ;;  %2763 = vst.msk [vmem:[%s5975_s6 + $0x18] sm:$0xff] %vm2759_vm8, %v2750_v54 }
 0x4dd   :  { %v2720_v34 = vpop.permute.xlu1 %2719  ;;  %v2722_v28 = vpop.permute.xlu0 %2721 }
 0x4de   :  { %v2751_v27 = vsel %vm46_vm0, %v2720_v34, %v2660_v15  ;;  %v2752_v1 = vsel %vm46_vm0, %v2722_v28, %v2662_v20 }
 0x4df   :  { %2764 = vst.msk [vmem:[%s5975_s6 + $0x20] sm:$0xff] %vm2759_vm8, %v2751_v27  ;;  %2765 = vst.msk [vmem:[%s5975_s6 + $0x28] sm:$0xff] %vm2759_vm8, %v2752_v1 }
 0x4e1   :  { %v2724_v43 = vpop.permute.xlu1 %2723  ;;  %v2726_v32 = vpop.permute.xlu0 %2725 }
 0x4e2   :  { %v2753_v60 = vsel %vm46_vm0, %v2724_v43, %v2664_v46  ;;  %v2754_v23 = vsel %vm46_vm0, %v2726_v32, %v2666_v53 }
 0x4e3   :  { %2766 = vst.msk [vmem:[%s5975_s6 + $0x30] sm:$0xff] %vm2759_vm8, %v2753_v60  ;;  %2767 = vst.msk [vmem:[%s5975_s6 + $0x38] sm:$0xff] %vm2759_vm8, %v2754_v23 }
 0x537   :  { %v2728_v3 = vpop.permute.xlu1 %2727 }
 0x538   :  { %v2755_v19 = vsel %vm46_vm0, %v2728_v3, %v2668_v25 }
 0x539   :  { %2768 = vst.msk [vmem:[%s5975_s6 + $0x40] sm:$0xff] %vm2759_vm8, %v2755_v19 }
 0x542   :  { %v2730_v42 = vpop.permute.xlu0 %2729 }
 0x543   :  { %v2756_v8 = vsel %vm46_vm0, %v2730_v42, %v2670_v48 }
 0x544   :  { %2769 = vst.msk [vmem:[%s5975_s6 + $0x48] sm:$0xff] %vm2759_vm8, %v2756_v8 }
 0x546   :  { %v2732_v44 = vpop.permute.xlu1 %2731  ;;  %v2734_v6 = vpop.permute.xlu0 %2733 }
 0x547   :  { %v2757_v63 = vsel %vm46_vm0, %v2732_v44, %v2672_v47  ;;  %v2758_v18 = vsel %vm46_vm0, %v2734_v6, %v2674_v26 }
 0x548   :  { %2770 = vst.msk [vmem:[%s5975_s6 + $0x50] sm:$0xff] %vm2759_vm8, %v2757_v63  ;;  %2771 = vst.msk [vmem:[%s5975_s6 + $0x58] sm:$0xff] %vm2759_vm8, %v2758_v18 }

</bundles_post_ra>
